<compile_context>
chip_gen: v7x
topology: tpu7x:2x2x1
jax: 0.10.0
libtpu: 0.0.40
codegen_flags: <defaults>
</compile_context>

<pallas_src>
import math
import jax
import jax.numpy as jnp
from jax.experimental import pallas as pl
from jax.experimental.pallas import tpu as pltpu

_VMEM_LIMIT = 32 * 1024 * 1024   # explicit scoped-VMEM budget (fits v5e/v6e/v7x)


def _round_up(x, m):
    return (x + m - 1) // m * m


# ----------------------------------------------------------------------------
# Pallas GEMM kernels (used by every conv via im2col)
#   grid = (M tiles [parallel], K tiles [arbitrary]); B (K, N) block is N-resident.
# ----------------------------------------------------------------------------
def _gemm_kernel(a_ref, b_ref, o_ref, acc_ref):
    @pl.when(pl.program_id(1) == 0)
    def _():
        acc_ref[...] = jnp.zeros_like(acc_ref)

    acc_ref[...] += jnp.dot(a_ref[...], b_ref[...],
                            preferred_element_type=jnp.float32)

    @pl.when(pl.program_id(1) == pl.num_programs(1) - 1)
    def _():
        o_ref[...] = acc_ref[...].astype(o_ref.dtype)


def _gemm_bn_kernel(a_ref, b_ref, s_ref, t_ref, o_ref, acc_ref):
    """Same as _gemm_kernel, but applies per-K-column BN affine + ReLU to the A tile
    (fuses norm+relu of the preceding BatchNorm into the 1x1 conv)."""
    @pl.when(pl.program_id(1) == 0)
    def _():
        acc_ref[...] = jnp.zeros_like(acc_ref)

    a = jnp.maximum(a_ref[...].astype(jnp.float32) * s_ref[...] + t_ref[...], 0.0)
    acc_ref[...] += jnp.dot(a.astype(jnp.bfloat16), b_ref[...],
                            preferred_element_type=jnp.float32)

    @pl.when(pl.program_id(1) == pl.num_programs(1) - 1)
    def _():
        o_ref[...] = acc_ref[...].astype(o_ref.dtype)


def matmul_pallas(a, b, scale=None, shift=None, out_dtype=jnp.bfloat16):
    """a: (M, K), b: (K, N) -> (M, N).  Optionally fuses relu(a*scale+shift) @ b."""
    M, K = a.shape
    K2, N = b.shape
    assert K == K2
    a = a.astype(jnp.bfloat16)
    b = b.astype(jnp.bfloat16)

    # M tiling: one full block when small, 256-row tiles otherwise (bounded VMEM,
    # enough grid tiles for megacore sharding on v7x).
    tm = _round_up(M, 8) if M <= 512 else 256
    Mp = _round_up(M, tm)
    # K tiling: keep the whole K resident when small (single reduction step, no padding);
    # otherwise 256-wide (MXU-native on v6e/v7x, multiple of 128 for v5e).
    if K <= 512:
        tk, Kp = K, K
    else:
        tk, Kp = 256, _round_up(K, 256)

    if (Mp, Kp) != (M, K):
        a = jnp.pad(a, ((0, Mp - M), (0, Kp - K)))
    if Kp != K:
        b = jnp.pad(b, ((0, Kp - K), (0, 0)))

    grid = (Mp // tm, Kp // tk)
    a_spec = pl.BlockSpec((tm, tk), lambda m, k: (m, k))
    b_spec = pl.BlockSpec((tk, N), lambda m, k: (k, 0))       # B fully N-resident
    out_spec = pl.BlockSpec((tm, N), lambda m, k: (m, 0))
    scratch = [pltpu.VMEM((tm, N), jnp.float32)]
    cparams = pltpu.CompilerParams(
        dimension_semantics=("parallel", "arbitrary"),
        vmem_limit_bytes=_VMEM_LIMIT)

    if scale is None:
        out = pl.pallas_call(
            _gemm_kernel,
            out_shape=jax.ShapeDtypeStruct((Mp, N), out_dtype),
            grid_spec=pltpu.PrefetchScalarGridSpec(
                num_scalar_prefetch=0, grid=grid,
                in_specs=[a_spec, b_spec], out_specs=out_spec,
                scratch_shapes=scratch),
            compiler_params=cparams,
        )(a, b)
    else:
        s = scale.reshape(1, K).astype(jnp.float32)
        t = shift.reshape(1, K).astype(jnp.float32)
        if Kp != K:   # zero-padded cols hit zero B rows -> contribute nothing
            s = jnp.pad(s, ((0, 0), (0, Kp - K)))
            t = jnp.pad(t, ((0, 0), (0, Kp - K)))
        v_spec = pl.BlockSpec((1, tk), lambda m, k: (0, k))
        out = pl.pallas_call(
            _gemm_bn_kernel,
            out_shape=jax.ShapeDtypeStruct((Mp, N), out_dtype),
            grid_spec=pltpu.PrefetchScalarGridSpec(
                num_scalar_prefetch=0, grid=grid,
                in_specs=[a_spec, b_spec, v_spec, v_spec],
                out_specs=out_spec, scratch_shapes=scratch),
            compiler_params=cparams,
        )(a, b, s, t)

    return out[:M] if Mp != M else out


# ----------------------------------------------------------------------------
# Single-pass BN batch statistics (per-channel sum and sum-of-squares)
# ----------------------------------------------------------------------------
def _stats_kernel(x_ref, s_out, q_out):
    @pl.when(pl.program_id(0) == 0)
    def _():
        s_out[...] = jnp.zeros_like(s_out)
        q_out[...] = jnp.zeros_like(q_out)
    x = x_ref[...].astype(jnp.float32)
    s_out[...] += jnp.sum(x, axis=0, keepdims=True)
    q_out[...] += jnp.sum(x * x, axis=0, keepdims=True)


def channel_stats(x_nhwc):
    """Batch mean / biased variance over (N, H, W) per channel, one HBM pass."""
    N, H, W, C = x_nhwc.shape
    M = N * H * W
    x2 = x_nhwc.reshape(M, C)
    tm = min(1024, _round_up(M, 8))
    Mp = _round_up(M, tm)
    if Mp != M:
        x2 = jnp.pad(x2, ((0, Mp - M), (0, 0)))   # zero rows add nothing to sums
    s, q = pl.pallas_call(
        _stats_kernel,
        out_shape=(jax.ShapeDtypeStruct((1, C), jnp.float32),
                   jax.ShapeDtypeStruct((1, C), jnp.float32)),
        grid_spec=pltpu.PrefetchScalarGridSpec(
            num_scalar_prefetch=0,
            grid=(Mp // tm,),
            in_specs=[pl.BlockSpec((tm, C), lambda m: (m, 0))],
            out_specs=(pl.BlockSpec((1, C), lambda m: (0, 0)),
                       pl.BlockSpec((1, C), lambda m: (0, 0)))),
        compiler_params=pltpu.CompilerParams(
            dimension_semantics=("arbitrary",),
            vmem_limit_bytes=_VMEM_LIMIT),
    )(x2)
    cnt = jnp.float32(M)
    mean = s[0] / cnt
    var = jnp.maximum(q[0] / cnt - mean * mean, 0.0)   # biased variance
    return mean, var


def bn_scale_shift(gamma, beta, mean, var, eps=1e-5):
    scale = gamma.astype(jnp.float32) * jax.lax.rsqrt(var + eps)
    shift = beta.astype(jnp.float32) - mean * scale
    return scale, shift


# ----------------------------------------------------------------------------
# Tiled BN-affine + ReLU elementwise kernel (only where GEMM fusion is not possible)
# ----------------------------------------------------------------------------
def _bn_relu_kernel(x_ref, s_ref, t_ref, o_ref):
    y = jnp.maximum(x_ref[...].astype(jnp.float32) * s_ref[...] + t_ref[...], 0.0)
    o_ref[...] = y.astype(o_ref.dtype)


def batchnorm_relu(x_nhwc, gamma, beta, eps=1e-5):
    mean, var = channel_stats(x_nhwc)
    scale, shift = bn_scale_shift(gamma, beta, mean, var, eps)
    N, H, W, C = x_nhwc.shape
    M = N * H * W
    x2 = x_nhwc.reshape(M, C)
    tm = min(1024, _round_up(M, 8))
    Mp = _round_up(M, tm)
    if Mp != M:
        x2 = jnp.pad(x2, ((0, Mp - M), (0, 0)))
    out = pl.pallas_call(
        _bn_relu_kernel,
        out_shape=jax.ShapeDtypeStruct((Mp, C), x_nhwc.dtype),
        grid_spec=pltpu.PrefetchScalarGridSpec(
            num_scalar_prefetch=0,
            grid=(Mp // tm,),
            in_specs=[pl.BlockSpec((tm, C), lambda m: (m, 0)),
                      pl.BlockSpec((1, C), lambda m: (0, 0)),
                      pl.BlockSpec((1, C), lambda m: (0, 0))],
            out_specs=pl.BlockSpec((tm, C), lambda m: (m, 0))),
        compiler_params=pltpu.CompilerParams(
            dimension_semantics=("parallel",),
            vmem_limit_bytes=_VMEM_LIMIT),
    )(x2, scale.reshape(1, C), shift.reshape(1, C))
    if Mp != M:
        out = out[:M]
    return out.reshape(N, H, W, C)


# ----------------------------------------------------------------------------
# Convolution = im2col (glue) + Pallas GEMM (optionally with fused BN+ReLU on A)
# ----------------------------------------------------------------------------
def conv2d(x_nhwc, w_oihw, stride=1, pad=0, scale=None, shift=None):
    """x: (N,H,W,Cin), w: (Cout,Cin,kh,kw) (PyTorch layout), no bias.
    scale/shift (only for 1x1, stride 1, pad 0) fuse relu(bn(x)) into the GEMM."""
    Cout, Cin, kh, kw = w_oihw.shape
    if scale is not None:
        assert kh == 1 and kw == 1 and stride == 1 and pad == 0
    x = jnp.pad(x_nhwc, ((0, 0), (pad, pad), (pad, pad), (0, 0))) if pad else x_nhwc
    N, H, W, _ = x.shape
    Ho = (H - kh) // stride + 1
    Wo = (W - kw) // stride + 1
    if kh == 1 and kw == 1 and stride == 1:
        patches = x
    else:
        # TODO(synk): fold the kh*kw taps into the GEMM K loop (halo blocks) instead of
        #             materializing the im2col matrix in HBM.
        cols = []
        for i in range(kh):
            for j in range(kw):
                cols.append(x[:, i:i + stride * Ho:stride,
                              j:j + stride * Wo:stride, :])
        patches = jnp.concatenate(cols, axis=-1)              # (N,Ho,Wo,kh*kw*Cin)
    a = patches.reshape(N * Ho * Wo, kh * kw * Cin)
    wmat = jnp.transpose(w_oihw, (2, 3, 1, 0)).reshape(kh * kw * Cin, Cout)
    out = matmul_pallas(a, wmat, scale=scale, shift=shift)
    return out.reshape(N, Ho, Wo, Cout)


# ----------------------------------------------------------------------------
# Pooling (window extraction glue; tiny)
# ----------------------------------------------------------------------------
def maxpool_3x3_s2_p1(x):
    # Input is post-ReLU (>= 0), so zero padding is equivalent to -inf padding here.
    # TODO(synk): fuse the 3x3 max-pool into the preceding BN+ReLU Pallas kernel.
    N, H, W, C = x.shape
    xp = jnp.pad(x, ((0, 0), (1, 1), (1, 1), (0, 0)))
    Ho = (H + 2 - 3) // 2 + 1
    Wo = (W + 2 - 3) // 2 + 1
    out = None
    for i in range(3):
        for j in range(3):
            s = xp[:, i:i + 2 * Ho:2, j:j + 2 * Wo:2, :]
            out = s if out is None else jnp.maximum(out, s)
    return out


def avgpool_2x2(x):
    # TODO(synk): fuse the 2x2 avg-pool into the transition GEMM epilogue.
    N, H, W, C = x.shape
    y = x.reshape(N, H // 2, 2, W // 2, 2, C).astype(jnp.float32).mean(axis=(2, 4))
    return y.astype(x.dtype)


# ----------------------------------------------------------------------------
# Fused head kernel: BN(norm5)+ReLU -> global avg pool -> Linear -> L2 Normalize
# ----------------------------------------------------------------------------
def _head_kernel(f_ref, s_ref, t_ref, w_ref, b_ref, o_ref):
    x = jnp.maximum(f_ref[...].astype(jnp.float32) * s_ref[...] + t_ref[...], 0.0)
    pooled = jnp.mean(x, axis=1)                              # (N, C) global avg pool
    y = jnp.dot(pooled, w_ref[...], preferred_element_type=jnp.float32) + b_ref[...]
    # F.normalize(p=2, dim=1): x / max(||x||, 1e-12) == x * rsqrt(max(||x||^2, 1e-24))
    inv = jax.lax.rsqrt(jnp.maximum(jnp.sum(y * y, axis=1, keepdims=True), 1e-24))
    o_ref[...] = y * inv


def head_pallas(x_nhwc, scale, shift, w, b):
    N, H, W, C = x_nhwc.shape
    f = x_nhwc.reshape(N, H * W, C)
    return pl.pallas_call(
        _head_kernel,
        out_shape=jax.ShapeDtypeStruct((N, w.shape[1]), jnp.float32),
    )(f,
      scale.reshape(1, 1, C).astype(jnp.float32),
      shift.reshape(1, 1, C).astype(jnp.float32),
      w.astype(jnp.float32),
      b.reshape(1, -1).astype(jnp.float32))


# ----------------------------------------------------------------------------
# DenseNet forward (structure mirrors the PyTorch module)
# ----------------------------------------------------------------------------
def _dense_layer_forward(prev_feats, p):
    x = jnp.concatenate(prev_feats, axis=-1)                  # torch.cat(inputs, 1)
    mean, var = channel_stats(x)                              # norm1 batch stats (1 pass)
    s, t = bn_scale_shift(p['norm1_g'], p['norm1_b'], mean, var)
    x = conv2d(x, p['conv1_w'], scale=s, shift=t)             # norm1+relu1+conv1 fused
    x = batchnorm_relu(x, p['norm2_g'], p['norm2_b'])         # norm2 + relu2
    x = conv2d(x, p['conv2_w'], stride=1, pad=1)              # conv2 (3x3, pad 1)
    return x                                                  # drop_rate=0 -> no dropout


def _dense_block_forward(x, layers):
    feats = [x]
    for p in layers:
        feats.append(_dense_layer_forward(feats, p))
    return jnp.concatenate(feats, axis=-1)


def _transition_forward(x, p):
    mean, var = channel_stats(x)
    s, t = bn_scale_shift(p['norm_g'], p['norm_b'], mean, var)
    x = conv2d(x, p['conv_w'], scale=s, shift=t)              # norm+relu+1x1 conv fused
    return avgpool_2x2(x)


def densenet_forward(x_nchw, params):
    x = jnp.transpose(x_nchw, (0, 2, 3, 1)).astype(jnp.bfloat16)   # NCHW -> NHWC bf16
    x = conv2d(x, params['conv0_w'], stride=2, pad=3)         # conv0 7x7 s2 p3
    x = batchnorm_relu(x, params['norm0_g'], params['norm0_b'])    # norm0 + relu0
    x = maxpool_3x3_s2_p1(x)                                  # pool0
    for block in params['blocks']:
        x = _dense_block_forward(x, block['layers'])
        if 'transition' in block:
            x = _transition_forward(x, block['transition'])
    # norm5 + final F.relu + adaptive_avg_pool2d + Linear + Normalize, fused in one kernel
    mean, var = channel_stats(x)
    s, t = bn_scale_shift(params['norm5_g'], params['norm5_b'], mean, var)
    return head_pallas(x, s, t, params['cls_w'], params['cls_b'])


# ----------------------------------------------------------------------------
# Deterministic parameter construction (shapes follow DenseNet.__init__)
# ----------------------------------------------------------------------------
def init_params(key, growth_rate=8, block_config=(2, 2), num_init_features=16,
                bn_size=2, low_dim=16):
    keys = iter(jax.random.split(key, 256))

    def kaiming(shape):  # (Cout, Cin, kh, kw); nn.init.kaiming_normal_ (fan_in, gain=sqrt(2))
        fan_in = shape[1] * shape[2] * shape[3]
        return jax.random.normal(next(keys), shape, jnp.float32) * math.sqrt(2.0 / fan_in)

    params = {
        'conv0_w': kaiming((num_init_features, 3, 7, 7)),
        'norm0_g': jnp.ones((num_init_features,), jnp.float32),
        'norm0_b': jnp.zeros((num_init_features,), jnp.float32),
    }
    nf = num_init_features
    blocks = []
    for i, num_layers in enumerate(block_config):
        layers = []
        for j in range(num_layers):
            cin = nf + j * growth_rate
            layers.append(dict(
                norm1_g=jnp.ones((cin,), jnp.float32),
                norm1_b=jnp.zeros((cin,), jnp.float32),
                conv1_w=kaiming((bn_size * growth_rate, cin, 1, 1)),
                norm2_g=jnp.ones((bn_size * growth_rate,), jnp.float32),
                norm2_b=jnp.zeros((bn_size * growth_rate,), jnp.float32),
                conv2_w=kaiming((growth_rate, bn_size * growth_rate, 3, 3)),
            ))
        nf = nf + num_layers * growth_rate
        block = {'layers': layers}
        if i != len(block_config) - 1:
            block['transition'] = dict(
                norm_g=jnp.ones((nf,), jnp.float32),
                norm_b=jnp.zeros((nf,), jnp.float32),
                conv_w=kaiming((nf // 2, nf, 1, 1)),
            )
            nf = nf // 2
        blocks.append(block)
    params['blocks'] = blocks
    params['norm5_g'] = jnp.ones((nf,), jnp.float32)
    params['norm5_b'] = jnp.zeros((nf,), jnp.float32)
    # NOTE: the original code hard-codes nn.Linear(2208, low_dim) (densenet161 feature
    # count); for this small synthetic config the in-dim follows the actual feature count.
    params['cls_w'] = jax.random.normal(next(keys), (nf, low_dim), jnp.float32) / math.sqrt(nf)
    params['cls_b'] = jnp.zeros((low_dim,), jnp.float32)       # nn.init.constant_(bias, 0)
    return params


if __name__ == "__main__":
    key = jax.random.PRNGKey(0)
    kx, kp = jax.random.split(key)
    x = jax.random.normal(kx, (2, 3, 16, 16), jnp.float32)     # NCHW, like PyTorch input
    params = init_params(kp)
    out = jax.jit(densenet_forward)(x, params)
    out = jax.block_until_ready(out)
    assert out.shape == (2, 16)
    assert bool(jnp.all(jnp.isfinite(out)))
    print("KERNEL_OK")
</pallas_src>

<mosaic_0001>
module attributes {stable_mosaic.version = 11 : i64} {
  func.func @_gemm_kernel(%arg0: i32, %arg1: i32, %arg2: memref<128x147xbf16, #tpu.memory_space<vmem>>, %arg3: memref<147x16xbf16, #tpu.memory_space<vmem>>, %arg4: memref<128x16xbf16, #tpu.memory_space<vmem>>, %arg5: memref<128x16xf32, #tpu.memory_space<vmem>>) attributes {dimension_semantics = [#tpu.dimension_semantics<parallel>, #tpu.dimension_semantics<arbitrary>], iteration_bounds = array<i64: 1, 1>, scalar_prefetch = 0 : i64, scratch_operands = 1 : i64, tpu.core_type = #tpu.core_type<tc>, window_params = [{transform_indices = @transform_0, window_bounds = array<i64: 128, 147>}, {transform_indices = @transform_1, window_bounds = array<i64: 147, 16>}, {transform_indices = @transform_2, window_bounds = array<i64: 128, 16>}]} {
    %c0_i32 = arith.constant 0 : i32
    %0 = arith.cmpi eq, %arg1, %c0_i32 : i32
    %1 = arith.extui %0 : i1 to i32
    %c0_i32_0 = arith.constant 0 : i32
    %2 = arith.cmpi ne, %1, %c0_i32_0 : i32
    scf.if %2 {
      %cst_10 = arith.constant 0.000000e+00 : f32
      %12 = vector.broadcast %cst_10 : f32 to vector<128x16xf32>
      %c0_11 = arith.constant 0 : index
      %c0_12 = arith.constant 0 : index
      %13 = vector.load %arg5[%c0_11, %c0_12] : memref<128x16xf32, #tpu.memory_space<vmem>>, vector<128x16xf32>
      tpu.vector_store %arg5[%c0_11, %c0_12], %12 {strides = array<i32>} : memref<128x16xf32, #tpu.memory_space<vmem>>, vector<128x16xf32>,
    } else {
    }
    %c0 = arith.constant 0 : index
    %c0_1 = arith.constant 0 : index
    %3 = vector.load %arg5[%c0, %c0_1] : memref<128x16xf32, #tpu.memory_space<vmem>>, vector<128x16xf32>
    %c0_2 = arith.constant 0 : index
    %c0_3 = arith.constant 0 : index
    %4 = vector.load %arg2[%c0_2, %c0_3] : memref<128x147xbf16, #tpu.memory_space<vmem>>, vector<128x147xbf16>
    %c0_4 = arith.constant 0 : index
    %c0_5 = arith.constant 0 : index
    %5 = vector.load %arg3[%c0_4, %c0_5] : memref<147x16xbf16, #tpu.memory_space<vmem>>, vector<147x16xbf16>
    %cst = arith.constant dense<0.000000e+00> : vector<128x16xf32>
    %6 = tpu.matmul %4, %5, %cst {dimension_numbers = #tpu.dot_dimension_numbers<[1], [0], [0], [1], [0, 0, 1, 1], [], []>} : vector<128x147xbf16>, vector<147x16xbf16>, vector<128x16xf32> -> vector<128x16xf32>
    %7 = arith.addf %3, %6 : vector<128x16xf32>
    %c0_6 = arith.constant 0 : index
    %c0_7 = arith.constant 0 : index
    %8 = vector.load %arg5[%c0_6, %c0_7] : memref<128x16xf32, #tpu.memory_space<vmem>>, vector<128x16xf32>
    tpu.vector_store %arg5[%c0_6, %c0_7], %7 {strides = array<i32>} : memref<128x16xf32, #tpu.memory_space<vmem>>, vector<128x16xf32>,
    %c0_i32_8 = arith.constant 0 : i32
    %9 = arith.cmpi eq, %arg1, %c0_i32_8 : i32
    %10 = arith.extui %9 : i1 to i32
    %c0_i32_9 = arith.constant 0 : i32
    %11 = arith.cmpi ne, %10, %c0_i32_9 : i32
    scf.if %11 {
      %c0_10 = arith.constant 0 : index
      %c0_11 = arith.constant 0 : index
      %12 = vector.load %arg5[%c0_10, %c0_11] : memref<128x16xf32, #tpu.memory_space<vmem>>, vector<128x16xf32>
      %13 = arith.truncf %12 : vector<128x16xf32> to vector<128x16xbf16>
      %c0_12 = arith.constant 0 : index
      %c0_13 = arith.constant 0 : index
      %14 = vector.load %arg4[%c0_12, %c0_13] : memref<128x16xbf16, #tpu.memory_space<vmem>>, vector<128x16xbf16>
      tpu.vector_store %arg4[%c0_12, %c0_13], %13 {strides = array<i32>} : memref<128x16xbf16, #tpu.memory_space<vmem>>, vector<128x16xbf16>,
    } else {
    }
    return
  }
  func.func @transform_0(%arg0: i32, %arg1: i32) -> (i32, i32) {
    %c0_i32 = arith.constant 0 : i32
    return %arg0, %arg1 : i32, i32
  }
  func.func @transform_1(%arg0: i32, %arg1: i32) -> (i32, i32) {
    %c0_i32 = arith.constant 0 : i32
    %c0_i32_0 = arith.constant 0 : i32
    return %arg1, %c0_i32 : i32, i32
  }
  func.func @transform_2(%arg0: i32, %arg1: i32) -> (i32, i32) {
    %c0_i32 = arith.constant 0 : i32
    %c0_i32_0 = arith.constant 0 : i32
    return %arg0, %c0_i32 : i32, i32
  }
}

module attributes {stable_mosaic.version = 11 : i64} {
  func.func @_stats_kernel(%arg0: i32, %arg1: memref<128x16xbf16, #tpu.memory_space<vmem>>, %arg2: memref<1x16xf32, #tpu.memory_space<vmem>>, %arg3: memref<1x16xf32, #tpu.memory_space<vmem>>) attributes {dimension_semantics = [#tpu.dimension_semantics<arbitrary>], iteration_bounds = array<i64: 1>, scalar_prefetch = 0 : i64, scratch_operands = 0 : i64, tpu.core_type = #tpu.core_type<tc>, window_params = [{transform_indices = @transform_0, window_bounds = array<i64: 128, 16>}, {pipeline_mode = #tpu.pipeline_mode<synchronous>, transform_indices = @transform_1, window_bounds = array<i64: 1, 16>}, {pipeline_mode = #tpu.pipeline_mode<synchronous>, transform_indices = @transform_2, window_bounds = array<i64: 1, 16>}]} {
    %c0_i32 = arith.constant 0 : i32
    %0 = arith.cmpi eq, %arg0, %c0_i32 : i32
    %1 = arith.extui %0 : i1 to i32
    %c0_i32_0 = arith.constant 0 : i32
    %2 = arith.cmpi ne, %1, %c0_i32_0 : i32
    scf.if %2 {
      %cst_11 = arith.constant 0.000000e+00 : f32
      %16 = vector.broadcast %cst_11 : f32 to vector<1x16xf32>
      %c0_12 = arith.constant 0 : index
      %c0_13 = arith.constant 0 : index
      %17 = vector.load %arg2[%c0_12, %c0_13] : memref<1x16xf32, #tpu.memory_space<vmem>>, vector<1x16xf32>
      tpu.vector_store %arg2[%c0_12, %c0_13], %16 {strides = array<i32>} : memref<1x16xf32, #tpu.memory_space<vmem>>, vector<1x16xf32>,
      %cst_14 = arith.constant 0.000000e+00 : f32
      %18 = vector.broadcast %cst_14 : f32 to vector<1x16xf32>
      %c0_15 = arith.constant 0 : index
      %c0_16 = arith.constant 0 : index
      %19 = vector.load %arg3[%c0_15, %c0_16] : memref<1x16xf32, #tpu.memory_space<vmem>>, vector<1x16xf32>
      tpu.vector_store %arg3[%c0_15, %c0_16], %18 {strides = array<i32>} : memref<1x16xf32, #tpu.memory_space<vmem>>, vector<1x16xf32>,
    } else {
    }
    %c0 = arith.constant 0 : index
    %c0_1 = arith.constant 0 : index
    %3 = vector.load %arg1[%c0, %c0_1] : memref<128x16xbf16, #tpu.memory_space<vmem>>, vector<128x16xbf16>
    %4 = arith.extf %3 : vector<128x16xbf16> to vector<128x16xf32>
    %c0_2 = arith.constant 0 : index
    %c0_3 = arith.constant 0 : index
    %5 = vector.load %arg2[%c0_2, %c0_3] : memref<1x16xf32, #tpu.memory_space<vmem>>, vector<1x16xf32>
    %cst = arith.constant dense<0.000000e+00> : vector<16xf32>
    %6 = vector.multi_reduction <add>, %4, %cst [0] : vector<128x16xf32> to vector<16xf32>
    %7 = vector.shape_cast %6 : vector<16xf32> to vector<1x16xf32>
    %8 = arith.addf %5, %7 : vector<1x16xf32>
    %c0_4 = arith.constant 0 : index
    %c0_5 = arith.constant 0 : index
    %9 = vector.load %arg2[%c0_4, %c0_5] : memref<1x16xf32, #tpu.memory_space<vmem>>, vector<1x16xf32>
    tpu.vector_store %arg2[%c0_4, %c0_5], %8 {strides = array<i32>} : memref<1x16xf32, #tpu.memory_space<vmem>>, vector<1x16xf32>,
    %c0_6 = arith.constant 0 : index
    %c0_7 = arith.constant 0 : index
    %10 = vector.load %arg3[%c0_6, %c0_7] : memref<1x16xf32, #tpu.memory_space<vmem>>, vector<1x16xf32>
    %11 = arith.mulf %4, %4 : vector<128x16xf32>
    %cst_8 = arith.constant dense<0.000000e+00> : vector<16xf32>
    %12 = vector.multi_reduction <add>, %11, %cst_8 [0] : vector<128x16xf32> to vector<16xf32>
    %13 = vector.shape_cast %12 : vector<16xf32> to vector<1x16xf32>
    %14 = arith.addf %10, %13 : vector<1x16xf32>
    %c0_9 = arith.constant 0 : index
    %c0_10 = arith.constant 0 : index
    %15 = vector.load %arg3[%c0_9, %c0_10] : memref<1x16xf32, #tpu.memory_space<vmem>>, vector<1x16xf32>
    tpu.vector_store %arg3[%c0_9, %c0_10], %14 {strides = array<i32>} : memref<1x16xf32, #tpu.memory_space<vmem>>, vector<1x16xf32>,
    return
  }
  func.func @transform_0(%arg0: i32) -> (i32, i32) {
    %c0_i32 = arith.constant 0 : i32
    %c0_i32_0 = arith.constant 0 : i32
    return %arg0, %c0_i32 : i32, i32
  }
  func.func @transform_1(%arg0: i32) -> (i32, i32) {
    %c0_i32 = arith.constant 0 : i32
    %c0_i32_0 = arith.constant 0 : i32
    %c0_i32_1 = arith.constant 0 : i32
    return %c0_i32, %c0_i32_0 : i32, i32
  }
  func.func @transform_2(%arg0: i32) -> (i32, i32) {
    %c0_i32 = arith.constant 0 : i32
    %c0_i32_0 = arith.constant 0 : i32
    %c0_i32_1 = arith.constant 0 : i32
    return %c0_i32, %c0_i32_0 : i32, i32
  }
}

module attributes {stable_mosaic.version = 11 : i64} {
  func.func @_bn_relu_kernel(%arg0: i32, %arg1: memref<128x16xbf16, #tpu.memory_space<vmem>>, %arg2: memref<1x16xf32, #tpu.memory_space<vmem>>, %arg3: memref<1x16xf32, #tpu.memory_space<vmem>>, %arg4: memref<128x16xbf16, #tpu.memory_space<vmem>>) attributes {dimension_semantics = [#tpu.dimension_semantics<parallel>], iteration_bounds = array<i64: 1>, scalar_prefetch = 0 : i64, scratch_operands = 0 : i64, tpu.core_type = #tpu.core_type<tc>, window_params = [{transform_indices = @transform_0, window_bounds = array<i64: 128, 16>}, {pipeline_mode = #tpu.pipeline_mode<synchronous>, transform_indices = @transform_1, window_bounds = array<i64: 1, 16>}, {pipeline_mode = #tpu.pipeline_mode<synchronous>, transform_indices = @transform_2, window_bounds = array<i64: 1, 16>}, {transform_indices = @transform_3, window_bounds = array<i64: 128, 16>}]} {
    %c0 = arith.constant 0 : index
    %c0_0 = arith.constant 0 : index
    %0 = vector.load %arg1[%c0, %c0_0] : memref<128x16xbf16, #tpu.memory_space<vmem>>, vector<128x16xbf16>
    %1 = arith.extf %0 : vector<128x16xbf16> to vector<128x16xf32>
    %c0_1 = arith.constant 0 : index
    %c0_2 = arith.constant 0 : index
    %2 = vector.load %arg2[%c0_1, %c0_2] : memref<1x16xf32, #tpu.memory_space<vmem>>, vector<1x16xf32>
    %3 = vector.broadcast %2 : vector<1x16xf32> to vector<128x16xf32>
    %4 = arith.mulf %1, %3 : vector<128x16xf32>
    %c0_3 = arith.constant 0 : index
    %c0_4 = arith.constant 0 : index
    %5 = vector.load %arg3[%c0_3, %c0_4] : memref<1x16xf32, #tpu.memory_space<vmem>>, vector<1x16xf32>
    %6 = vector.broadcast %5 : vector<1x16xf32> to vector<128x16xf32>
    %7 = arith.addf %4, %6 : vector<128x16xf32>
    %cst = arith.constant 0.000000e+00 : f32
    %8 = vector.broadcast %cst : f32 to vector<128x16xf32>
    %9 = arith.maximumf %7, %8 : vector<128x16xf32>
    %10 = arith.truncf %9 : vector<128x16xf32> to vector<128x16xbf16>
    %c0_5 = arith.constant 0 : index
    %c0_6 = arith.constant 0 : index
    %11 = vector.load %arg4[%c0_5, %c0_6] : memref<128x16xbf16, #tpu.memory_space<vmem>>, vector<128x16xbf16>
    tpu.vector_store %arg4[%c0_5, %c0_6], %10 {strides = array<i32>} : memref<128x16xbf16, #tpu.memory_space<vmem>>, vector<128x16xbf16>,
    return
  }
  func.func @transform_0(%arg0: i32) -> (i32, i32) {
    %c0_i32 = arith.constant 0 : i32
    %c0_i32_0 = arith.constant 0 : i32
    return %arg0, %c0_i32 : i32, i32
  }
  func.func @transform_1(%arg0: i32) -> (i32, i32) {
    %c0_i32 = arith.constant 0 : i32
    %c0_i32_0 = arith.constant 0 : i32
    %c0_i32_1 = arith.constant 0 : i32
    return %c0_i32, %c0_i32_0 : i32, i32
  }
  func.func @transform_2(%arg0: i32) -> (i32, i32) {
    %c0_i32 = arith.constant 0 : i32
    %c0_i32_0 = arith.constant 0 : i32
    %c0_i32_1 = arith.constant 0 : i32
    return %c0_i32, %c0_i32_0 : i32, i32
  }
  func.func @transform_3(%arg0: i32) -> (i32, i32) {
    %c0_i32 = arith.constant 0 : i32
    %c0_i32_0 = arith.constant 0 : i32
    return %arg0, %c0_i32 : i32, i32
  }
}

module attributes {stable_mosaic.version = 11 : i64} {
  func.func @_stats_kernel(%arg0: i32, %arg1: memref<32x16xbf16, #tpu.memory_space<vmem>>, %arg2: memref<1x16xf32, #tpu.memory_space<vmem>>, %arg3: memref<1x16xf32, #tpu.memory_space<vmem>>) attributes {dimension_semantics = [#tpu.dimension_semantics<arbitrary>], iteration_bounds = array<i64: 1>, scalar_prefetch = 0 : i64, scratch_operands = 0 : i64, tpu.core_type = #tpu.core_type<tc>, window_params = [{transform_indices = @transform_0, window_bounds = array<i64: 32, 16>}, {pipeline_mode = #tpu.pipeline_mode<synchronous>, transform_indices = @transform_1, window_bounds = array<i64: 1, 16>}, {pipeline_mode = #tpu.pipeline_mode<synchronous>, transform_indices = @transform_2, window_bounds = array<i64: 1, 16>}]} {
    %c0_i32 = arith.constant 0 : i32
    %0 = arith.cmpi eq, %arg0, %c0_i32 : i32
    %1 = arith.extui %0 : i1 to i32
    %c0_i32_0 = arith.constant 0 : i32
    %2 = arith.cmpi ne, %1, %c0_i32_0 : i32
    scf.if %2 {
      %cst_11 = arith.constant 0.000000e+00 : f32
      %16 = vector.broadcast %cst_11 : f32 to vector<1x16xf32>
      %c0_12 = arith.constant 0 : index
      %c0_13 = arith.constant 0 : index
      %17 = vector.load %arg2[%c0_12, %c0_13] : memref<1x16xf32, #tpu.memory_space<vmem>>, vector<1x16xf32>
      tpu.vector_store %arg2[%c0_12, %c0_13], %16 {strides = array<i32>} : memref<1x16xf32, #tpu.memory_space<vmem>>, vector<1x16xf32>,
      %cst_14 = arith.constant 0.000000e+00 : f32
      %18 = vector.broadcast %cst_14 : f32 to vector<1x16xf32>
      %c0_15 = arith.constant 0 : index
      %c0_16 = arith.constant 0 : index
      %19 = vector.load %arg3[%c0_15, %c0_16] : memref<1x16xf32, #tpu.memory_space<vmem>>, vector<1x16xf32>
      tpu.vector_store %arg3[%c0_15, %c0_16], %18 {strides = array<i32>} : memref<1x16xf32, #tpu.memory_space<vmem>>, vector<1x16xf32>,
    } else {
    }
    %c0 = arith.constant 0 : index
    %c0_1 = arith.constant 0 : index
    %3 = vector.load %arg1[%c0, %c0_1] : memref<32x16xbf16, #tpu.memory_space<vmem>>, vector<32x16xbf16>
    %4 = arith.extf %3 : vector<32x16xbf16> to vector<32x16xf32>
    %c0_2 = arith.constant 0 : index
    %c0_3 = arith.constant 0 : index
    %5 = vector.load %arg2[%c0_2, %c0_3] : memref<1x16xf32, #tpu.memory_space<vmem>>, vector<1x16xf32>
    %cst = arith.constant dense<0.000000e+00> : vector<16xf32>
    %6 = vector.multi_reduction <add>, %4, %cst [0] : vector<32x16xf32> to vector<16xf32>
    %7 = vector.shape_cast %6 : vector<16xf32> to vector<1x16xf32>
    %8 = arith.addf %5, %7 : vector<1x16xf32>
    %c0_4 = arith.constant 0 : index
    %c0_5 = arith.constant 0 : index
    %9 = vector.load %arg2[%c0_4, %c0_5] : memref<1x16xf32, #tpu.memory_space<vmem>>, vector<1x16xf32>
    tpu.vector_store %arg2[%c0_4, %c0_5], %8 {strides = array<i32>} : memref<1x16xf32, #tpu.memory_space<vmem>>, vector<1x16xf32>,
    %c0_6 = arith.constant 0 : index
    %c0_7 = arith.constant 0 : index
    %10 = vector.load %arg3[%c0_6, %c0_7] : memref<1x16xf32, #tpu.memory_space<vmem>>, vector<1x16xf32>
    %11 = arith.mulf %4, %4 : vector<32x16xf32>
    %cst_8 = arith.constant dense<0.000000e+00> : vector<16xf32>
    %12 = vector.multi_reduction <add>, %11, %cst_8 [0] : vector<32x16xf32> to vector<16xf32>
    %13 = vector.shape_cast %12 : vector<16xf32> to vector<1x16xf32>
    %14 = arith.addf %10, %13 : vector<1x16xf32>
    %c0_9 = arith.constant 0 : index
    %c0_10 = arith.constant 0 : index
    %15 = vector.load %arg3[%c0_9, %c0_10] : memref<1x16xf32, #tpu.memory_space<vmem>>, vector<1x16xf32>
    tpu.vector_store %arg3[%c0_9, %c0_10], %14 {strides = array<i32>} : memref<1x16xf32, #tpu.memory_space<vmem>>, vector<1x16xf32>,
    return
  }
  func.func @transform_0(%arg0: i32) -> (i32, i32) {
    %c0_i32 = arith.constant 0 : i32
    %c0_i32_0 = arith.constant 0 : i32
    return %arg0, %c0_i32 : i32, i32
  }
  func.func @transform_1(%arg0: i32) -> (i32, i32) {
    %c0_i32 = arith.constant 0 : i32
    %c0_i32_0 = arith.constant 0 : i32
    %c0_i32_1 = arith.constant 0 : i32
    return %c0_i32, %c0_i32_0 : i32, i32
  }
  func.func @transform_2(%arg0: i32) -> (i32, i32) {
    %c0_i32 = arith.constant 0 : i32
    %c0_i32_0 = arith.constant 0 : i32
    %c0_i32_1 = arith.constant 0 : i32
    return %c0_i32, %c0_i32_0 : i32, i32
  }
}

module attributes {stable_mosaic.version = 11 : i64} {
  func.func @_bn_relu_kernel(%arg0: i32, %arg1: memref<32x16xbf16, #tpu.memory_space<vmem>>, %arg2: memref<1x16xf32, #tpu.memory_space<vmem>>, %arg3: memref<1x16xf32, #tpu.memory_space<vmem>>, %arg4: memref<32x16xbf16, #tpu.memory_space<vmem>>) attributes {dimension_semantics = [#tpu.dimension_semantics<parallel>], iteration_bounds = array<i64: 1>, scalar_prefetch = 0 : i64, scratch_operands = 0 : i64, tpu.core_type = #tpu.core_type<tc>, window_params = [{transform_indices = @transform_0, window_bounds = array<i64: 32, 16>}, {pipeline_mode = #tpu.pipeline_mode<synchronous>, transform_indices = @transform_1, window_bounds = array<i64: 1, 16>}, {pipeline_mode = #tpu.pipeline_mode<synchronous>, transform_indices = @transform_2, window_bounds = array<i64: 1, 16>}, {transform_indices = @transform_3, window_bounds = array<i64: 32, 16>}]} {
    %c0 = arith.constant 0 : index
    %c0_0 = arith.constant 0 : index
    %0 = vector.load %arg1[%c0, %c0_0] : memref<32x16xbf16, #tpu.memory_space<vmem>>, vector<32x16xbf16>
    %1 = arith.extf %0 : vector<32x16xbf16> to vector<32x16xf32>
    %c0_1 = arith.constant 0 : index
    %c0_2 = arith.constant 0 : index
    %2 = vector.load %arg2[%c0_1, %c0_2] : memref<1x16xf32, #tpu.memory_space<vmem>>, vector<1x16xf32>
    %3 = vector.broadcast %2 : vector<1x16xf32> to vector<32x16xf32>
    %4 = arith.mulf %1, %3 : vector<32x16xf32>
    %c0_3 = arith.constant 0 : index
    %c0_4 = arith.constant 0 : index
    %5 = vector.load %arg3[%c0_3, %c0_4] : memref<1x16xf32, #tpu.memory_space<vmem>>, vector<1x16xf32>
    %6 = vector.broadcast %5 : vector<1x16xf32> to vector<32x16xf32>
    %7 = arith.addf %4, %6 : vector<32x16xf32>
    %cst = arith.constant 0.000000e+00 : f32
    %8 = vector.broadcast %cst : f32 to vector<32x16xf32>
    %9 = arith.maximumf %7, %8 : vector<32x16xf32>
    %10 = arith.truncf %9 : vector<32x16xf32> to vector<32x16xbf16>
    %c0_5 = arith.constant 0 : index
    %c0_6 = arith.constant 0 : index
    %11 = vector.load %arg4[%c0_5, %c0_6] : memref<32x16xbf16, #tpu.memory_space<vmem>>, vector<32x16xbf16>
    tpu.vector_store %arg4[%c0_5, %c0_6], %10 {strides = array<i32>} : memref<32x16xbf16, #tpu.memory_space<vmem>>, vector<32x16xbf16>,
    return
  }
  func.func @transform_0(%arg0: i32) -> (i32, i32) {
    %c0_i32 = arith.constant 0 : i32
    %c0_i32_0 = arith.constant 0 : i32
    return %arg0, %c0_i32 : i32, i32
  }
  func.func @transform_1(%arg0: i32) -> (i32, i32) {
    %c0_i32 = arith.constant 0 : i32
    %c0_i32_0 = arith.constant 0 : i32
    %c0_i32_1 = arith.constant 0 : i32
    return %c0_i32, %c0_i32_0 : i32, i32
  }
  func.func @transform_2(%arg0: i32) -> (i32, i32) {
    %c0_i32 = arith.constant 0 : i32
    %c0_i32_0 = arith.constant 0 : i32
    %c0_i32_1 = arith.constant 0 : i32
    return %c0_i32, %c0_i32_0 : i32, i32
  }
  func.func @transform_3(%arg0: i32) -> (i32, i32) {
    %c0_i32 = arith.constant 0 : i32
    %c0_i32_0 = arith.constant 0 : i32
    return %arg0, %c0_i32 : i32, i32
  }
}

module attributes {stable_mosaic.version = 11 : i64} {
  func.func @_gemm_bn_kernel(%arg0: i32, %arg1: i32, %arg2: memref<32x16xbf16, #tpu.memory_space<vmem>>, %arg3: memref<16x16xbf16, #tpu.memory_space<vmem>>, %arg4: memref<1x16xf32, #tpu.memory_space<vmem>>, %arg5: memref<1x16xf32, #tpu.memory_space<vmem>>, %arg6: memref<32x16xbf16, #tpu.memory_space<vmem>>, %arg7: memref<32x16xf32, #tpu.memory_space<vmem>>) attributes {dimension_semantics = [#tpu.dimension_semantics<parallel>, #tpu.dimension_semantics<arbitrary>], iteration_bounds = array<i64: 1, 1>, scalar_prefetch = 0 : i64, scratch_operands = 1 : i64, tpu.core_type = #tpu.core_type<tc>, window_params = [{transform_indices = @transform_0, window_bounds = array<i64: 32, 16>}, {transform_indices = @transform_1, window_bounds = array<i64: 16, 16>}, {transform_indices = @transform_2, window_bounds = array<i64: 1, 16>}, {transform_indices = @transform_3, window_bounds = array<i64: 1, 16>}, {transform_indices = @transform_4, window_bounds = array<i64: 32, 16>}]} {
    %c0_i32 = arith.constant 0 : i32
    %0 = arith.cmpi eq, %arg1, %c0_i32 : i32
    %1 = arith.extui %0 : i1 to i32
    %c0_i32_0 = arith.constant 0 : i32
    %2 = arith.cmpi ne, %1, %c0_i32_0 : i32
    scf.if %2 {
      %cst_15 = arith.constant 0.000000e+00 : f32
      %22 = vector.broadcast %cst_15 : f32 to vector<32x16xf32>
      %c0_16 = arith.constant 0 : index
      %c0_17 = arith.constant 0 : index
      %23 = vector.load %arg7[%c0_16, %c0_17] : memref<32x16xf32, #tpu.memory_space<vmem>>, vector<32x16xf32>
      tpu.vector_store %arg7[%c0_16, %c0_17], %22 {strides = array<i32>} : memref<32x16xf32, #tpu.memory_space<vmem>>, vector<32x16xf32>,
    } else {
    }
    %c0 = arith.constant 0 : index
    %c0_1 = arith.constant 0 : index
    %3 = vector.load %arg2[%c0, %c0_1] : memref<32x16xbf16, #tpu.memory_space<vmem>>, vector<32x16xbf16>
    %4 = arith.extf %3 : vector<32x16xbf16> to vector<32x16xf32>
    %c0_2 = arith.constant 0 : index
    %c0_3 = arith.constant 0 : index
    %5 = vector.load %arg4[%c0_2, %c0_3] : memref<1x16xf32, #tpu.memory_space<vmem>>, vector<1x16xf32>
    %6 = vector.broadcast %5 : vector<1x16xf32> to vector<32x16xf32>
    %7 = arith.mulf %4, %6 : vector<32x16xf32>
    %c0_4 = arith.constant 0 : index
    %c0_5 = arith.constant 0 : index
    %8 = vector.load %arg5[%c0_4, %c0_5] : memref<1x16xf32, #tpu.memory_space<vmem>>, vector<1x16xf32>
    %9 = vector.broadcast %8 : vector<1x16xf32> to vector<32x16xf32>
    %10 = arith.addf %7, %9 : vector<32x16xf32>
    %cst = arith.constant 0.000000e+00 : f32
    %11 = vector.broadcast %cst : f32 to vector<32x16xf32>
    %12 = arith.maximumf %10, %11 : vector<32x16xf32>
    %c0_6 = arith.constant 0 : index
    %c0_7 = arith.constant 0 : index
    %13 = vector.load %arg7[%c0_6, %c0_7] : memref<32x16xf32, #tpu.memory_space<vmem>>, vector<32x16xf32>
    %14 = arith.truncf %12 : vector<32x16xf32> to vector<32x16xbf16>
    %c0_8 = arith.constant 0 : index
    %c0_9 = arith.constant 0 : index
    %15 = vector.load %arg3[%c0_8, %c0_9] : memref<16x16xbf16, #tpu.memory_space<vmem>>, vector<16x16xbf16>
    %cst_10 = arith.constant dense<0.000000e+00> : vector<32x16xf32>
    %16 = tpu.matmul %14, %15, %cst_10 {dimension_numbers = #tpu.dot_dimension_numbers<[1], [0], [0], [1], [0, 0, 1, 1], [], []>} : vector<32x16xbf16>, vector<16x16xbf16>, vector<32x16xf32> -> vector<32x16xf32>
    %17 = arith.addf %13, %16 : vector<32x16xf32>
    %c0_11 = arith.constant 0 : index
    %c0_12 = arith.constant 0 : index
    %18 = vector.load %arg7[%c0_11, %c0_12] : memref<32x16xf32, #tpu.memory_space<vmem>>, vector<32x16xf32>
    tpu.vector_store %arg7[%c0_11, %c0_12], %17 {strides = array<i32>} : memref<32x16xf32, #tpu.memory_space<vmem>>, vector<32x16xf32>,
    %c0_i32_13 = arith.constant 0 : i32
    %19 = arith.cmpi eq, %arg1, %c0_i32_13 : i32
    %20 = arith.extui %19 : i1 to i32
    %c0_i32_14 = arith.constant 0 : i32
    %21 = arith.cmpi ne, %20, %c0_i32_14 : i32
    scf.if %21 {
      %c0_15 = arith.constant 0 : index
      %c0_16 = arith.constant 0 : index
      %22 = vector.load %arg7[%c0_15, %c0_16] : memref<32x16xf32, #tpu.memory_space<vmem>>, vector<32x16xf32>
      %23 = arith.truncf %22 : vector<32x16xf32> to vector<32x16xbf16>
      %c0_17 = arith.constant 0 : index
      %c0_18 = arith.constant 0 : index
      %24 = vector.load %arg6[%c0_17, %c0_18] : memref<32x16xbf16, #tpu.memory_space<vmem>>, vector<32x16xbf16>
      tpu.vector_store %arg6[%c0_17, %c0_18], %23 {strides = array<i32>} : memref<32x16xbf16, #tpu.memory_space<vmem>>, vector<32x16xbf16>,
    } else {
    }
    return
  }
  func.func @transform_0(%arg0: i32, %arg1: i32) -> (i32, i32) {
    %c0_i32 = arith.constant 0 : i32
    return %arg0, %arg1 : i32, i32
  }
  func.func @transform_1(%arg0: i32, %arg1: i32) -> (i32, i32) {
    %c0_i32 = arith.constant 0 : i32
    %c0_i32_0 = arith.constant 0 : i32
    return %arg1, %c0_i32 : i32, i32
  }
  func.func @transform_2(%arg0: i32, %arg1: i32) -> (i32, i32) {
    %c0_i32 = arith.constant 0 : i32
    %c0_i32_0 = arith.constant 0 : i32
    return %c0_i32, %arg1 : i32, i32
  }
  func.func @transform_3(%arg0: i32, %arg1: i32) -> (i32, i32) {
    %c0_i32 = arith.constant 0 : i32
    %c0_i32_0 = arith.constant 0 : i32
    return %c0_i32, %arg1 : i32, i32
  }
  func.func @transform_4(%arg0: i32, %arg1: i32) -> (i32, i32) {
    %c0_i32 = arith.constant 0 : i32
    %c0_i32_0 = arith.constant 0 : i32
    return %arg0, %c0_i32 : i32, i32
  }
}

module attributes {stable_mosaic.version = 11 : i64} {
  func.func @_gemm_kernel(%arg0: i32, %arg1: i32, %arg2: memref<32x144xbf16, #tpu.memory_space<vmem>>, %arg3: memref<144x8xbf16, #tpu.memory_space<vmem>>, %arg4: memref<32x8xbf16, #tpu.memory_space<vmem>>, %arg5: memref<32x8xf32, #tpu.memory_space<vmem>>) attributes {dimension_semantics = [#tpu.dimension_semantics<parallel>, #tpu.dimension_semantics<arbitrary>], iteration_bounds = array<i64: 1, 1>, scalar_prefetch = 0 : i64, scratch_operands = 1 : i64, tpu.core_type = #tpu.core_type<tc>, window_params = [{transform_indices = @transform_0, window_bounds = array<i64: 32, 144>}, {transform_indices = @transform_1, window_bounds = array<i64: 144, 8>}, {transform_indices = @transform_2, window_bounds = array<i64: 32, 8>}]} {
    %c0_i32 = arith.constant 0 : i32
    %0 = arith.cmpi eq, %arg1, %c0_i32 : i32
    %1 = arith.extui %0 : i1 to i32
    %c0_i32_0 = arith.constant 0 : i32
    %2 = arith.cmpi ne, %1, %c0_i32_0 : i32
    scf.if %2 {
      %cst_10 = arith.constant 0.000000e+00 : f32
      %12 = vector.broadcast %cst_10 : f32 to vector<32x8xf32>
      %c0_11 = arith.constant 0 : index
      %c0_12 = arith.constant 0 : index
      %13 = vector.load %arg5[%c0_11, %c0_12] : memref<32x8xf32, #tpu.memory_space<vmem>>, vector<32x8xf32>
      tpu.vector_store %arg5[%c0_11, %c0_12], %12 {strides = array<i32>} : memref<32x8xf32, #tpu.memory_space<vmem>>, vector<32x8xf32>,
    } else {
    }
    %c0 = arith.constant 0 : index
    %c0_1 = arith.constant 0 : index
    %3 = vector.load %arg5[%c0, %c0_1] : memref<32x8xf32, #tpu.memory_space<vmem>>, vector<32x8xf32>
    %c0_2 = arith.constant 0 : index
    %c0_3 = arith.constant 0 : index
    %4 = vector.load %arg2[%c0_2, %c0_3] : memref<32x144xbf16, #tpu.memory_space<vmem>>, vector<32x144xbf16>
    %c0_4 = arith.constant 0 : index
    %c0_5 = arith.constant 0 : index
    %5 = vector.load %arg3[%c0_4, %c0_5] : memref<144x8xbf16, #tpu.memory_space<vmem>>, vector<144x8xbf16>
    %cst = arith.constant dense<0.000000e+00> : vector<32x8xf32>
    %6 = tpu.matmul %4, %5, %cst {dimension_numbers = #tpu.dot_dimension_numbers<[1], [0], [0], [1], [0, 0, 1, 1], [], []>} : vector<32x144xbf16>, vector<144x8xbf16>, vector<32x8xf32> -> vector<32x8xf32>
    %7 = arith.addf %3, %6 : vector<32x8xf32>
    %c0_6 = arith.constant 0 : index
    %c0_7 = arith.constant 0 : index
    %8 = vector.load %arg5[%c0_6, %c0_7] : memref<32x8xf32, #tpu.memory_space<vmem>>, vector<32x8xf32>
    tpu.vector_store %arg5[%c0_6, %c0_7], %7 {strides = array<i32>} : memref<32x8xf32, #tpu.memory_space<vmem>>, vector<32x8xf32>,
    %c0_i32_8 = arith.constant 0 : i32
    %9 = arith.cmpi eq, %arg1, %c0_i32_8 : i32
    %10 = arith.extui %9 : i1 to i32
    %c0_i32_9 = arith.constant 0 : i32
    %11 = arith.cmpi ne, %10, %c0_i32_9 : i32
    scf.if %11 {
      %c0_10 = arith.constant 0 : index
      %c0_11 = arith.constant 0 : index
      %12 = vector.load %arg5[%c0_10, %c0_11] : memref<32x8xf32, #tpu.memory_space<vmem>>, vector<32x8xf32>
      %13 = arith.truncf %12 : vector<32x8xf32> to vector<32x8xbf16>
      %c0_12 = arith.constant 0 : index
      %c0_13 = arith.constant 0 : index
      %14 = vector.load %arg4[%c0_12, %c0_13] : memref<32x8xbf16, #tpu.memory_space<vmem>>, vector<32x8xbf16>
      tpu.vector_store %arg4[%c0_12, %c0_13], %13 {strides = array<i32>} : memref<32x8xbf16, #tpu.memory_space<vmem>>, vector<32x8xbf16>,
    } else {
    }
    return
  }
  func.func @transform_0(%arg0: i32, %arg1: i32) -> (i32, i32) {
    %c0_i32 = arith.constant 0 : i32
    return %arg0, %arg1 : i32, i32
  }
  func.func @transform_1(%arg0: i32, %arg1: i32) -> (i32, i32) {
    %c0_i32 = arith.constant 0 : i32
    %c0_i32_0 = arith.constant 0 : i32
    return %arg1, %c0_i32 : i32, i32
  }
  func.func @transform_2(%arg0: i32, %arg1: i32) -> (i32, i32) {
    %c0_i32 = arith.constant 0 : i32
    %c0_i32_0 = arith.constant 0 : i32
    return %arg0, %c0_i32 : i32, i32
  }
}

module attributes {stable_mosaic.version = 11 : i64} {
  func.func @_gemm_bn_kernel(%arg0: i32, %arg1: i32, %arg2: memref<32x24xbf16, #tpu.memory_space<vmem>>, %arg3: memref<24x16xbf16, #tpu.memory_space<vmem>>, %arg4: memref<1x24xf32, #tpu.memory_space<vmem>>, %arg5: memref<1x24xf32, #tpu.memory_space<vmem>>, %arg6: memref<32x16xbf16, #tpu.memory_space<vmem>>, %arg7: memref<32x16xf32, #tpu.memory_space<vmem>>) attributes {dimension_semantics = [#tpu.dimension_semantics<parallel>, #tpu.dimension_semantics<arbitrary>], iteration_bounds = array<i64: 1, 1>, scalar_prefetch = 0 : i64, scratch_operands = 1 : i64, tpu.core_type = #tpu.core_type<tc>, window_params = [{transform_indices = @transform_0, window_bounds = array<i64: 32, 24>}, {transform_indices = @transform_1, window_bounds = array<i64: 24, 16>}, {transform_indices = @transform_2, window_bounds = array<i64: 1, 24>}, {transform_indices = @transform_3, window_bounds = array<i64: 1, 24>}, {transform_indices = @transform_4, window_bounds = array<i64: 32, 16>}]} {
    %c0_i32 = arith.constant 0 : i32
    %0 = arith.cmpi eq, %arg1, %c0_i32 : i32
    %1 = arith.extui %0 : i1 to i32
    %c0_i32_0 = arith.constant 0 : i32
    %2 = arith.cmpi ne, %1, %c0_i32_0 : i32
    scf.if %2 {
      %cst_15 = arith.constant 0.000000e+00 : f32
      %22 = vector.broadcast %cst_15 : f32 to vector<32x16xf32>
      %c0_16 = arith.constant 0 : index
      %c0_17 = arith.constant 0 : index
      %23 = vector.load %arg7[%c0_16, %c0_17] : memref<32x16xf32, #tpu.memory_space<vmem>>, vector<32x16xf32>
      tpu.vector_store %arg7[%c0_16, %c0_17], %22 {strides = array<i32>} : memref<32x16xf32, #tpu.memory_space<vmem>>, vector<32x16xf32>,
    } else {
    }
    %c0 = arith.constant 0 : index
    %c0_1 = arith.constant 0 : index
    %3 = vector.load %arg2[%c0, %c0_1] : memref<32x24xbf16, #tpu.memory_space<vmem>>, vector<32x24xbf16>
    %4 = arith.extf %3 : vector<32x24xbf16> to vector<32x24xf32>
    %c0_2 = arith.constant 0 : index
    %c0_3 = arith.constant 0 : index
    %5 = vector.load %arg4[%c0_2, %c0_3] : memref<1x24xf32, #tpu.memory_space<vmem>>, vector<1x24xf32>
    %6 = vector.broadcast %5 : vector<1x24xf32> to vector<32x24xf32>
    %7 = arith.mulf %4, %6 : vector<32x24xf32>
    %c0_4 = arith.constant 0 : index
    %c0_5 = arith.constant 0 : index
    %8 = vector.load %arg5[%c0_4, %c0_5] : memref<1x24xf32, #tpu.memory_space<vmem>>, vector<1x24xf32>
    %9 = vector.broadcast %8 : vector<1x24xf32> to vector<32x24xf32>
    %10 = arith.addf %7, %9 : vector<32x24xf32>
    %cst = arith.constant 0.000000e+00 : f32
    %11 = vector.broadcast %cst : f32 to vector<32x24xf32>
    %12 = arith.maximumf %10, %11 : vector<32x24xf32>
    %c0_6 = arith.constant 0 : index
    %c0_7 = arith.constant 0 : index
    %13 = vector.load %arg7[%c0_6, %c0_7] : memref<32x16xf32, #tpu.memory_space<vmem>>, vector<32x16xf32>
    %14 = arith.truncf %12 : vector<32x24xf32> to vector<32x24xbf16>
    %c0_8 = arith.constant 0 : index
    %c0_9 = arith.constant 0 : index
    %15 = vector.load %arg3[%c0_8, %c0_9] : memref<24x16xbf16, #tpu.memory_space<vmem>>, vector<24x16xbf16>
    %cst_10 = arith.constant dense<0.000000e+00> : vector<32x16xf32>
    %16 = tpu.matmul %14, %15, %cst_10 {dimension_numbers = #tpu.dot_dimension_numbers<[1], [0], [0], [1], [0, 0, 1, 1], [], []>} : vector<32x24xbf16>, vector<24x16xbf16>, vector<32x16xf32> -> vector<32x16xf32>
    %17 = arith.addf %13, %16 : vector<32x16xf32>
    %c0_11 = arith.constant 0 : index
    %c0_12 = arith.constant 0 : index
    %18 = vector.load %arg7[%c0_11, %c0_12] : memref<32x16xf32, #tpu.memory_space<vmem>>, vector<32x16xf32>
    tpu.vector_store %arg7[%c0_11, %c0_12], %17 {strides = array<i32>} : memref<32x16xf32, #tpu.memory_space<vmem>>, vector<32x16xf32>,
    %c0_i32_13 = arith.constant 0 : i32
    %19 = arith.cmpi eq, %arg1, %c0_i32_13 : i32
    %20 = arith.extui %19 : i1 to i32
    %c0_i32_14 = arith.constant 0 : i32
    %21 = arith.cmpi ne, %20, %c0_i32_14 : i32
    scf.if %21 {
      %c0_15 = arith.constant 0 : index
      %c0_16 = arith.constant 0 : index
      %22 = vector.load %arg7[%c0_15, %c0_16] : memref<32x16xf32, #tpu.memory_space<vmem>>, vector<32x16xf32>
      %23 = arith.truncf %22 : vector<32x16xf32> to vector<32x16xbf16>
      %c0_17 = arith.constant 0 : index
      %c0_18 = arith.constant 0 : index
      %24 = vector.load %arg6[%c0_17, %c0_18] : memref<32x16xbf16, #tpu.memory_space<vmem>>, vector<32x16xbf16>
      tpu.vector_store %arg6[%c0_17, %c0_18], %23 {strides = array<i32>} : memref<32x16xbf16, #tpu.memory_space<vmem>>, vector<32x16xbf16>,
    } else {
    }
    return
  }
  func.func @transform_0(%arg0: i32, %arg1: i32) -> (i32, i32) {
    %c0_i32 = arith.constant 0 : i32
    return %arg0, %arg1 : i32, i32
  }
  func.func @transform_1(%arg0: i32, %arg1: i32) -> (i32, i32) {
    %c0_i32 = arith.constant 0 : i32
    %c0_i32_0 = arith.constant 0 : i32
    return %arg1, %c0_i32 : i32, i32
  }
  func.func @transform_2(%arg0: i32, %arg1: i32) -> (i32, i32) {
    %c0_i32 = arith.constant 0 : i32
    %c0_i32_0 = arith.constant 0 : i32
    return %c0_i32, %arg1 : i32, i32
  }
  func.func @transform_3(%arg0: i32, %arg1: i32) -> (i32, i32) {
    %c0_i32 = arith.constant 0 : i32
    %c0_i32_0 = arith.constant 0 : i32
    return %c0_i32, %arg1 : i32, i32
  }
  func.func @transform_4(%arg0: i32, %arg1: i32) -> (i32, i32) {
    %c0_i32 = arith.constant 0 : i32
    %c0_i32_0 = arith.constant 0 : i32
    return %arg0, %c0_i32 : i32, i32
  }
}

module attributes {stable_mosaic.version = 11 : i64} {
  func.func @_stats_kernel(%arg0: i32, %arg1: memref<32x24xbf16, #tpu.memory_space<vmem>>, %arg2: memref<1x24xf32, #tpu.memory_space<vmem>>, %arg3: memref<1x24xf32, #tpu.memory_space<vmem>>) attributes {dimension_semantics = [#tpu.dimension_semantics<arbitrary>], iteration_bounds = array<i64: 1>, scalar_prefetch = 0 : i64, scratch_operands = 0 : i64, tpu.core_type = #tpu.core_type<tc>, window_params = [{transform_indices = @transform_0, window_bounds = array<i64: 32, 24>}, {pipeline_mode = #tpu.pipeline_mode<synchronous>, transform_indices = @transform_1, window_bounds = array<i64: 1, 24>}, {pipeline_mode = #tpu.pipeline_mode<synchronous>, transform_indices = @transform_2, window_bounds = array<i64: 1, 24>}]} {
    %c0_i32 = arith.constant 0 : i32
    %0 = arith.cmpi eq, %arg0, %c0_i32 : i32
    %1 = arith.extui %0 : i1 to i32
    %c0_i32_0 = arith.constant 0 : i32
    %2 = arith.cmpi ne, %1, %c0_i32_0 : i32
    scf.if %2 {
      %cst_11 = arith.constant 0.000000e+00 : f32
      %16 = vector.broadcast %cst_11 : f32 to vector<1x24xf32>
      %c0_12 = arith.constant 0 : index
      %c0_13 = arith.constant 0 : index
      %17 = vector.load %arg2[%c0_12, %c0_13] : memref<1x24xf32, #tpu.memory_space<vmem>>, vector<1x24xf32>
      tpu.vector_store %arg2[%c0_12, %c0_13], %16 {strides = array<i32>} : memref<1x24xf32, #tpu.memory_space<vmem>>, vector<1x24xf32>,
      %cst_14 = arith.constant 0.000000e+00 : f32
      %18 = vector.broadcast %cst_14 : f32 to vector<1x24xf32>
      %c0_15 = arith.constant 0 : index
      %c0_16 = arith.constant 0 : index
      %19 = vector.load %arg3[%c0_15, %c0_16] : memref<1x24xf32, #tpu.memory_space<vmem>>, vector<1x24xf32>
      tpu.vector_store %arg3[%c0_15, %c0_16], %18 {strides = array<i32>} : memref<1x24xf32, #tpu.memory_space<vmem>>, vector<1x24xf32>,
    } else {
    }
    %c0 = arith.constant 0 : index
    %c0_1 = arith.constant 0 : index
    %3 = vector.load %arg1[%c0, %c0_1] : memref<32x24xbf16, #tpu.memory_space<vmem>>, vector<32x24xbf16>
    %4 = arith.extf %3 : vector<32x24xbf16> to vector<32x24xf32>
    %c0_2 = arith.constant 0 : index
    %c0_3 = arith.constant 0 : index
    %5 = vector.load %arg2[%c0_2, %c0_3] : memref<1x24xf32, #tpu.memory_space<vmem>>, vector<1x24xf32>
    %cst = arith.constant dense<0.000000e+00> : vector<24xf32>
    %6 = vector.multi_reduction <add>, %4, %cst [0] : vector<32x24xf32> to vector<24xf32>
    %7 = vector.shape_cast %6 : vector<24xf32> to vector<1x24xf32>
    %8 = arith.addf %5, %7 : vector<1x24xf32>
    %c0_4 = arith.constant 0 : index
    %c0_5 = arith.constant 0 : index
    %9 = vector.load %arg2[%c0_4, %c0_5] : memref<1x24xf32, #tpu.memory_space<vmem>>, vector<1x24xf32>
    tpu.vector_store %arg2[%c0_4, %c0_5], %8 {strides = array<i32>} : memref<1x24xf32, #tpu.memory_space<vmem>>, vector<1x24xf32>,
    %c0_6 = arith.constant 0 : index
    %c0_7 = arith.constant 0 : index
    %10 = vector.load %arg3[%c0_6, %c0_7] : memref<1x24xf32, #tpu.memory_space<vmem>>, vector<1x24xf32>
    %11 = arith.mulf %4, %4 : vector<32x24xf32>
    %cst_8 = arith.constant dense<0.000000e+00> : vector<24xf32>
    %12 = vector.multi_reduction <add>, %11, %cst_8 [0] : vector<32x24xf32> to vector<24xf32>
    %13 = vector.shape_cast %12 : vector<24xf32> to vector<1x24xf32>
    %14 = arith.addf %10, %13 : vector<1x24xf32>
    %c0_9 = arith.constant 0 : index
    %c0_10 = arith.constant 0 : index
    %15 = vector.load %arg3[%c0_9, %c0_10] : memref<1x24xf32, #tpu.memory_space<vmem>>, vector<1x24xf32>
    tpu.vector_store %arg3[%c0_9, %c0_10], %14 {strides = array<i32>} : memref<1x24xf32, #tpu.memory_space<vmem>>, vector<1x24xf32>,
    return
  }
  func.func @transform_0(%arg0: i32) -> (i32, i32) {
    %c0_i32 = arith.constant 0 : i32
    %c0_i32_0 = arith.constant 0 : i32
    return %arg0, %c0_i32 : i32, i32
  }
  func.func @transform_1(%arg0: i32) -> (i32, i32) {
    %c0_i32 = arith.constant 0 : i32
    %c0_i32_0 = arith.constant 0 : i32
    %c0_i32_1 = arith.constant 0 : i32
    return %c0_i32, %c0_i32_0 : i32, i32
  }
  func.func @transform_2(%arg0: i32) -> (i32, i32) {
    %c0_i32 = arith.constant 0 : i32
    %c0_i32_0 = arith.constant 0 : i32
    %c0_i32_1 = arith.constant 0 : i32
    return %c0_i32, %c0_i32_0 : i32, i32
  }
}

module attributes {stable_mosaic.version = 11 : i64} {
  func.func @_stats_kernel(%arg0: i32, %arg1: memref<32x32xbf16, #tpu.memory_space<vmem>>, %arg2: memref<1x32xf32, #tpu.memory_space<vmem>>, %arg3: memref<1x32xf32, #tpu.memory_space<vmem>>) attributes {dimension_semantics = [#tpu.dimension_semantics<arbitrary>], iteration_bounds = array<i64: 1>, scalar_prefetch = 0 : i64, scratch_operands = 0 : i64, tpu.core_type = #tpu.core_type<tc>, window_params = [{transform_indices = @transform_0, window_bounds = array<i64: 32, 32>}, {pipeline_mode = #tpu.pipeline_mode<synchronous>, transform_indices = @transform_1, window_bounds = array<i64: 1, 32>}, {pipeline_mode = #tpu.pipeline_mode<synchronous>, transform_indices = @transform_2, window_bounds = array<i64: 1, 32>}]} {
    %c0_i32 = arith.constant 0 : i32
    %0 = arith.cmpi eq, %arg0, %c0_i32 : i32
    %1 = arith.extui %0 : i1 to i32
    %c0_i32_0 = arith.constant 0 : i32
    %2 = arith.cmpi ne, %1, %c0_i32_0 : i32
    scf.if %2 {
      %cst_11 = arith.constant 0.000000e+00 : f32
      %16 = vector.broadcast %cst_11 : f32 to vector<1x32xf32>
      %c0_12 = arith.constant 0 : index
      %c0_13 = arith.constant 0 : index
      %17 = vector.load %arg2[%c0_12, %c0_13] : memref<1x32xf32, #tpu.memory_space<vmem>>, vector<1x32xf32>
      tpu.vector_store %arg2[%c0_12, %c0_13], %16 {strides = array<i32>} : memref<1x32xf32, #tpu.memory_space<vmem>>, vector<1x32xf32>,
      %cst_14 = arith.constant 0.000000e+00 : f32
      %18 = vector.broadcast %cst_14 : f32 to vector<1x32xf32>
      %c0_15 = arith.constant 0 : index
      %c0_16 = arith.constant 0 : index
      %19 = vector.load %arg3[%c0_15, %c0_16] : memref<1x32xf32, #tpu.memory_space<vmem>>, vector<1x32xf32>
      tpu.vector_store %arg3[%c0_15, %c0_16], %18 {strides = array<i32>} : memref<1x32xf32, #tpu.memory_space<vmem>>, vector<1x32xf32>,
    } else {
    }
    %c0 = arith.constant 0 : index
    %c0_1 = arith.constant 0 : index
    %3 = vector.load %arg1[%c0, %c0_1] : memref<32x32xbf16, #tpu.memory_space<vmem>>, vector<32x32xbf16>
    %4 = arith.extf %3 : vector<32x32xbf16> to vector<32x32xf32>
    %c0_2 = arith.constant 0 : index
    %c0_3 = arith.constant 0 : index
    %5 = vector.load %arg2[%c0_2, %c0_3] : memref<1x32xf32, #tpu.memory_space<vmem>>, vector<1x32xf32>
    %cst = arith.constant dense<0.000000e+00> : vector<32xf32>
    %6 = vector.multi_reduction <add>, %4, %cst [0] : vector<32x32xf32> to vector<32xf32>
    %7 = vector.shape_cast %6 : vector<32xf32> to vector<1x32xf32>
    %8 = arith.addf %5, %7 : vector<1x32xf32>
    %c0_4 = arith.constant 0 : index
    %c0_5 = arith.constant 0 : index
    %9 = vector.load %arg2[%c0_4, %c0_5] : memref<1x32xf32, #tpu.memory_space<vmem>>, vector<1x32xf32>
    tpu.vector_store %arg2[%c0_4, %c0_5], %8 {strides = array<i32>} : memref<1x32xf32, #tpu.memory_space<vmem>>, vector<1x32xf32>,
    %c0_6 = arith.constant 0 : index
    %c0_7 = arith.constant 0 : index
    %10 = vector.load %arg3[%c0_6, %c0_7] : memref<1x32xf32, #tpu.memory_space<vmem>>, vector<1x32xf32>
    %11 = arith.mulf %4, %4 : vector<32x32xf32>
    %cst_8 = arith.constant dense<0.000000e+00> : vector<32xf32>
    %12 = vector.multi_reduction <add>, %11, %cst_8 [0] : vector<32x32xf32> to vector<32xf32>
    %13 = vector.shape_cast %12 : vector<32xf32> to vector<1x32xf32>
    %14 = arith.addf %10, %13 : vector<1x32xf32>
    %c0_9 = arith.constant 0 : index
    %c0_10 = arith.constant 0 : index
    %15 = vector.load %arg3[%c0_9, %c0_10] : memref<1x32xf32, #tpu.memory_space<vmem>>, vector<1x32xf32>
    tpu.vector_store %arg3[%c0_9, %c0_10], %14 {strides = array<i32>} : memref<1x32xf32, #tpu.memory_space<vmem>>, vector<1x32xf32>,
    return
  }
  func.func @transform_0(%arg0: i32) -> (i32, i32) {
    %c0_i32 = arith.constant 0 : i32
    %c0_i32_0 = arith.constant 0 : i32
    return %arg0, %c0_i32 : i32, i32
  }
  func.func @transform_1(%arg0: i32) -> (i32, i32) {
    %c0_i32 = arith.constant 0 : i32
    %c0_i32_0 = arith.constant 0 : i32
    %c0_i32_1 = arith.constant 0 : i32
    return %c0_i32, %c0_i32_0 : i32, i32
  }
  func.func @transform_2(%arg0: i32) -> (i32, i32) {
    %c0_i32 = arith.constant 0 : i32
    %c0_i32_0 = arith.constant 0 : i32
    %c0_i32_1 = arith.constant 0 : i32
    return %c0_i32, %c0_i32_0 : i32, i32
  }
}

module attributes {stable_mosaic.version = 11 : i64} {
  func.func @_gemm_bn_kernel(%arg0: i32, %arg1: i32, %arg2: memref<32x32xbf16, #tpu.memory_space<vmem>>, %arg3: memref<32x16xbf16, #tpu.memory_space<vmem>>, %arg4: memref<1x32xf32, #tpu.memory_space<vmem>>, %arg5: memref<1x32xf32, #tpu.memory_space<vmem>>, %arg6: memref<32x16xbf16, #tpu.memory_space<vmem>>, %arg7: memref<32x16xf32, #tpu.memory_space<vmem>>) attributes {dimension_semantics = [#tpu.dimension_semantics<parallel>, #tpu.dimension_semantics<arbitrary>], iteration_bounds = array<i64: 1, 1>, scalar_prefetch = 0 : i64, scratch_operands = 1 : i64, tpu.core_type = #tpu.core_type<tc>, window_params = [{transform_indices = @transform_0, window_bounds = array<i64: 32, 32>}, {transform_indices = @transform_1, window_bounds = array<i64: 32, 16>}, {transform_indices = @transform_2, window_bounds = array<i64: 1, 32>}, {transform_indices = @transform_3, window_bounds = array<i64: 1, 32>}, {transform_indices = @transform_4, window_bounds = array<i64: 32, 16>}]} {
    %c0_i32 = arith.constant 0 : i32
    %0 = arith.cmpi eq, %arg1, %c0_i32 : i32
    %1 = arith.extui %0 : i1 to i32
    %c0_i32_0 = arith.constant 0 : i32
    %2 = arith.cmpi ne, %1, %c0_i32_0 : i32
    scf.if %2 {
      %cst_15 = arith.constant 0.000000e+00 : f32
      %22 = vector.broadcast %cst_15 : f32 to vector<32x16xf32>
      %c0_16 = arith.constant 0 : index
      %c0_17 = arith.constant 0 : index
      %23 = vector.load %arg7[%c0_16, %c0_17] : memref<32x16xf32, #tpu.memory_space<vmem>>, vector<32x16xf32>
      tpu.vector_store %arg7[%c0_16, %c0_17], %22 {strides = array<i32>} : memref<32x16xf32, #tpu.memory_space<vmem>>, vector<32x16xf32>,
    } else {
    }
    %c0 = arith.constant 0 : index
    %c0_1 = arith.constant 0 : index
    %3 = vector.load %arg2[%c0, %c0_1] : memref<32x32xbf16, #tpu.memory_space<vmem>>, vector<32x32xbf16>
    %4 = arith.extf %3 : vector<32x32xbf16> to vector<32x32xf32>
    %c0_2 = arith.constant 0 : index
    %c0_3 = arith.constant 0 : index
    %5 = vector.load %arg4[%c0_2, %c0_3] : memref<1x32xf32, #tpu.memory_space<vmem>>, vector<1x32xf32>
    %6 = vector.broadcast %5 : vector<1x32xf32> to vector<32x32xf32>
    %7 = arith.mulf %4, %6 : vector<32x32xf32>
    %c0_4 = arith.constant 0 : index
    %c0_5 = arith.constant 0 : index
    %8 = vector.load %arg5[%c0_4, %c0_5] : memref<1x32xf32, #tpu.memory_space<vmem>>, vector<1x32xf32>
    %9 = vector.broadcast %8 : vector<1x32xf32> to vector<32x32xf32>
    %10 = arith.addf %7, %9 : vector<32x32xf32>
    %cst = arith.constant 0.000000e+00 : f32
    %11 = vector.broadcast %cst : f32 to vector<32x32xf32>
    %12 = arith.maximumf %10, %11 : vector<32x32xf32>
    %c0_6 = arith.constant 0 : index
    %c0_7 = arith.constant 0 : index
    %13 = vector.load %arg7[%c0_6, %c0_7] : memref<32x16xf32, #tpu.memory_space<vmem>>, vector<32x16xf32>
    %14 = arith.truncf %12 : vector<32x32xf32> to vector<32x32xbf16>
    %c0_8 = arith.constant 0 : index
    %c0_9 = arith.constant 0 : index
    %15 = vector.load %arg3[%c0_8, %c0_9] : memref<32x16xbf16, #tpu.memory_space<vmem>>, vector<32x16xbf16>
    %cst_10 = arith.constant dense<0.000000e+00> : vector<32x16xf32>
    %16 = tpu.matmul %14, %15, %cst_10 {dimension_numbers = #tpu.dot_dimension_numbers<[1], [0], [0], [1], [0, 0, 1, 1], [], []>} : vector<32x32xbf16>, vector<32x16xbf16>, vector<32x16xf32> -> vector<32x16xf32>
    %17 = arith.addf %13, %16 : vector<32x16xf32>
    %c0_11 = arith.constant 0 : index
    %c0_12 = arith.constant 0 : index
    %18 = vector.load %arg7[%c0_11, %c0_12] : memref<32x16xf32, #tpu.memory_space<vmem>>, vector<32x16xf32>
    tpu.vector_store %arg7[%c0_11, %c0_12], %17 {strides = array<i32>} : memref<32x16xf32, #tpu.memory_space<vmem>>, vector<32x16xf32>,
    %c0_i32_13 = arith.constant 0 : i32
    %19 = arith.cmpi eq, %arg1, %c0_i32_13 : i32
    %20 = arith.extui %19 : i1 to i32
    %c0_i32_14 = arith.constant 0 : i32
    %21 = arith.cmpi ne, %20, %c0_i32_14 : i32
    scf.if %21 {
      %c0_15 = arith.constant 0 : index
      %c0_16 = arith.constant 0 : index
      %22 = vector.load %arg7[%c0_15, %c0_16] : memref<32x16xf32, #tpu.memory_space<vmem>>, vector<32x16xf32>
      %23 = arith.truncf %22 : vector<32x16xf32> to vector<32x16xbf16>
      %c0_17 = arith.constant 0 : index
      %c0_18 = arith.constant 0 : index
      %24 = vector.load %arg6[%c0_17, %c0_18] : memref<32x16xbf16, #tpu.memory_space<vmem>>, vector<32x16xbf16>
      tpu.vector_store %arg6[%c0_17, %c0_18], %23 {strides = array<i32>} : memref<32x16xbf16, #tpu.memory_space<vmem>>, vector<32x16xbf16>,
    } else {
    }
    return
  }
  func.func @transform_0(%arg0: i32, %arg1: i32) -> (i32, i32) {
    %c0_i32 = arith.constant 0 : i32
    return %arg0, %arg1 : i32, i32
  }
  func.func @transform_1(%arg0: i32, %arg1: i32) -> (i32, i32) {
    %c0_i32 = arith.constant 0 : i32
    %c0_i32_0 = arith.constant 0 : i32
    return %arg1, %c0_i32 : i32, i32
  }
  func.func @transform_2(%arg0: i32, %arg1: i32) -> (i32, i32) {
    %c0_i32 = arith.constant 0 : i32
    %c0_i32_0 = arith.constant 0 : i32
    return %c0_i32, %arg1 : i32, i32
  }
  func.func @transform_3(%arg0: i32, %arg1: i32) -> (i32, i32) {
    %c0_i32 = arith.constant 0 : i32
    %c0_i32_0 = arith.constant 0 : i32
    return %c0_i32, %arg1 : i32, i32
  }
  func.func @transform_4(%arg0: i32, %arg1: i32) -> (i32, i32) {
    %c0_i32 = arith.constant 0 : i32
    %c0_i32_0 = arith.constant 0 : i32
    return %arg0, %c0_i32 : i32, i32
  }
}

module attributes {stable_mosaic.version = 11 : i64} {
  func.func @_stats_kernel(%arg0: i32, %arg1: memref<8x16xbf16, #tpu.memory_space<vmem>>, %arg2: memref<1x16xf32, #tpu.memory_space<vmem>>, %arg3: memref<1x16xf32, #tpu.memory_space<vmem>>) attributes {dimension_semantics = [#tpu.dimension_semantics<arbitrary>], iteration_bounds = array<i64: 1>, scalar_prefetch = 0 : i64, scratch_operands = 0 : i64, tpu.core_type = #tpu.core_type<tc>, window_params = [{transform_indices = @transform_0, window_bounds = array<i64: 8, 16>}, {pipeline_mode = #tpu.pipeline_mode<synchronous>, transform_indices = @transform_1, window_bounds = array<i64: 1, 16>}, {pipeline_mode = #tpu.pipeline_mode<synchronous>, transform_indices = @transform_2, window_bounds = array<i64: 1, 16>}]} {
    %c0_i32 = arith.constant 0 : i32
    %0 = arith.cmpi eq, %arg0, %c0_i32 : i32
    %1 = arith.extui %0 : i1 to i32
    %c0_i32_0 = arith.constant 0 : i32
    %2 = arith.cmpi ne, %1, %c0_i32_0 : i32
    scf.if %2 {
      %cst_11 = arith.constant 0.000000e+00 : f32
      %16 = vector.broadcast %cst_11 : f32 to vector<1x16xf32>
      %c0_12 = arith.constant 0 : index
      %c0_13 = arith.constant 0 : index
      %17 = vector.load %arg2[%c0_12, %c0_13] : memref<1x16xf32, #tpu.memory_space<vmem>>, vector<1x16xf32>
      tpu.vector_store %arg2[%c0_12, %c0_13], %16 {strides = array<i32>} : memref<1x16xf32, #tpu.memory_space<vmem>>, vector<1x16xf32>,
      %cst_14 = arith.constant 0.000000e+00 : f32
      %18 = vector.broadcast %cst_14 : f32 to vector<1x16xf32>
      %c0_15 = arith.constant 0 : index
      %c0_16 = arith.constant 0 : index
      %19 = vector.load %arg3[%c0_15, %c0_16] : memref<1x16xf32, #tpu.memory_space<vmem>>, vector<1x16xf32>
      tpu.vector_store %arg3[%c0_15, %c0_16], %18 {strides = array<i32>} : memref<1x16xf32, #tpu.memory_space<vmem>>, vector<1x16xf32>,
    } else {
    }
    %c0 = arith.constant 0 : index
    %c0_1 = arith.constant 0 : index
    %3 = vector.load %arg1[%c0, %c0_1] : memref<8x16xbf16, #tpu.memory_space<vmem>>, vector<8x16xbf16>
    %4 = arith.extf %3 : vector<8x16xbf16> to vector<8x16xf32>
    %c0_2 = arith.constant 0 : index
    %c0_3 = arith.constant 0 : index
    %5 = vector.load %arg2[%c0_2, %c0_3] : memref<1x16xf32, #tpu.memory_space<vmem>>, vector<1x16xf32>
    %cst = arith.constant dense<0.000000e+00> : vector<16xf32>
    %6 = vector.multi_reduction <add>, %4, %cst [0] : vector<8x16xf32> to vector<16xf32>
    %7 = vector.shape_cast %6 : vector<16xf32> to vector<1x16xf32>
    %8 = arith.addf %5, %7 : vector<1x16xf32>
    %c0_4 = arith.constant 0 : index
    %c0_5 = arith.constant 0 : index
    %9 = vector.load %arg2[%c0_4, %c0_5] : memref<1x16xf32, #tpu.memory_space<vmem>>, vector<1x16xf32>
    tpu.vector_store %arg2[%c0_4, %c0_5], %8 {strides = array<i32>} : memref<1x16xf32, #tpu.memory_space<vmem>>, vector<1x16xf32>,
    %c0_6 = arith.constant 0 : index
    %c0_7 = arith.constant 0 : index
    %10 = vector.load %arg3[%c0_6, %c0_7] : memref<1x16xf32, #tpu.memory_space<vmem>>, vector<1x16xf32>
    %11 = arith.mulf %4, %4 : vector<8x16xf32>
    %cst_8 = arith.constant dense<0.000000e+00> : vector<16xf32>
    %12 = vector.multi_reduction <add>, %11, %cst_8 [0] : vector<8x16xf32> to vector<16xf32>
    %13 = vector.shape_cast %12 : vector<16xf32> to vector<1x16xf32>
    %14 = arith.addf %10, %13 : vector<1x16xf32>
    %c0_9 = arith.constant 0 : index
    %c0_10 = arith.constant 0 : index
    %15 = vector.load %arg3[%c0_9, %c0_10] : memref<1x16xf32, #tpu.memory_space<vmem>>, vector<1x16xf32>
    tpu.vector_store %arg3[%c0_9, %c0_10], %14 {strides = array<i32>} : memref<1x16xf32, #tpu.memory_space<vmem>>, vector<1x16xf32>,
    return
  }
  func.func @transform_0(%arg0: i32) -> (i32, i32) {
    %c0_i32 = arith.constant 0 : i32
    %c0_i32_0 = arith.constant 0 : i32
    return %arg0, %c0_i32 : i32, i32
  }
  func.func @transform_1(%arg0: i32) -> (i32, i32) {
    %c0_i32 = arith.constant 0 : i32
    %c0_i32_0 = arith.constant 0 : i32
    %c0_i32_1 = arith.constant 0 : i32
    return %c0_i32, %c0_i32_0 : i32, i32
  }
  func.func @transform_2(%arg0: i32) -> (i32, i32) {
    %c0_i32 = arith.constant 0 : i32
    %c0_i32_0 = arith.constant 0 : i32
    %c0_i32_1 = arith.constant 0 : i32
    return %c0_i32, %c0_i32_0 : i32, i32
  }
}

module attributes {stable_mosaic.version = 11 : i64} {
  func.func @_gemm_bn_kernel(%arg0: i32, %arg1: i32, %arg2: memref<8x16xbf16, #tpu.memory_space<vmem>>, %arg3: memref<16x16xbf16, #tpu.memory_space<vmem>>, %arg4: memref<1x16xf32, #tpu.memory_space<vmem>>, %arg5: memref<1x16xf32, #tpu.memory_space<vmem>>, %arg6: memref<8x16xbf16, #tpu.memory_space<vmem>>, %arg7: memref<8x16xf32, #tpu.memory_space<vmem>>) attributes {dimension_semantics = [#tpu.dimension_semantics<parallel>, #tpu.dimension_semantics<arbitrary>], iteration_bounds = array<i64: 1, 1>, scalar_prefetch = 0 : i64, scratch_operands = 1 : i64, tpu.core_type = #tpu.core_type<tc>, window_params = [{transform_indices = @transform_0, window_bounds = array<i64: 8, 16>}, {transform_indices = @transform_1, window_bounds = array<i64: 16, 16>}, {transform_indices = @transform_2, window_bounds = array<i64: 1, 16>}, {transform_indices = @transform_3, window_bounds = array<i64: 1, 16>}, {transform_indices = @transform_4, window_bounds = array<i64: 8, 16>}]} {
    %c0_i32 = arith.constant 0 : i32
    %0 = arith.cmpi eq, %arg1, %c0_i32 : i32
    %1 = arith.extui %0 : i1 to i32
    %c0_i32_0 = arith.constant 0 : i32
    %2 = arith.cmpi ne, %1, %c0_i32_0 : i32
    scf.if %2 {
      %cst_15 = arith.constant 0.000000e+00 : f32
      %22 = vector.broadcast %cst_15 : f32 to vector<8x16xf32>
      %c0_16 = arith.constant 0 : index
      %c0_17 = arith.constant 0 : index
      %23 = vector.load %arg7[%c0_16, %c0_17] : memref<8x16xf32, #tpu.memory_space<vmem>>, vector<8x16xf32>
      tpu.vector_store %arg7[%c0_16, %c0_17], %22 {strides = array<i32>} : memref<8x16xf32, #tpu.memory_space<vmem>>, vector<8x16xf32>,
    } else {
    }
    %c0 = arith.constant 0 : index
    %c0_1 = arith.constant 0 : index
    %3 = vector.load %arg2[%c0, %c0_1] : memref<8x16xbf16, #tpu.memory_space<vmem>>, vector<8x16xbf16>
    %4 = arith.extf %3 : vector<8x16xbf16> to vector<8x16xf32>
    %c0_2 = arith.constant 0 : index
    %c0_3 = arith.constant 0 : index
    %5 = vector.load %arg4[%c0_2, %c0_3] : memref<1x16xf32, #tpu.memory_space<vmem>>, vector<1x16xf32>
    %6 = vector.broadcast %5 : vector<1x16xf32> to vector<8x16xf32>
    %7 = arith.mulf %4, %6 : vector<8x16xf32>
    %c0_4 = arith.constant 0 : index
    %c0_5 = arith.constant 0 : index
    %8 = vector.load %arg5[%c0_4, %c0_5] : memref<1x16xf32, #tpu.memory_space<vmem>>, vector<1x16xf32>
    %9 = vector.broadcast %8 : vector<1x16xf32> to vector<8x16xf32>
    %10 = arith.addf %7, %9 : vector<8x16xf32>
    %cst = arith.constant 0.000000e+00 : f32
    %11 = vector.broadcast %cst : f32 to vector<8x16xf32>
    %12 = arith.maximumf %10, %11 : vector<8x16xf32>
    %c0_6 = arith.constant 0 : index
    %c0_7 = arith.constant 0 : index
    %13 = vector.load %arg7[%c0_6, %c0_7] : memref<8x16xf32, #tpu.memory_space<vmem>>, vector<8x16xf32>
    %14 = arith.truncf %12 : vector<8x16xf32> to vector<8x16xbf16>
    %c0_8 = arith.constant 0 : index
    %c0_9 = arith.constant 0 : index
    %15 = vector.load %arg3[%c0_8, %c0_9] : memref<16x16xbf16, #tpu.memory_space<vmem>>, vector<16x16xbf16>
    %cst_10 = arith.constant dense<0.000000e+00> : vector<8x16xf32>
    %16 = tpu.matmul %14, %15, %cst_10 {dimension_numbers = #tpu.dot_dimension_numbers<[1], [0], [0], [1], [0, 0, 1, 1], [], []>} : vector<8x16xbf16>, vector<16x16xbf16>, vector<8x16xf32> -> vector<8x16xf32>
    %17 = arith.addf %13, %16 : vector<8x16xf32>
    %c0_11 = arith.constant 0 : index
    %c0_12 = arith.constant 0 : index
    %18 = vector.load %arg7[%c0_11, %c0_12] : memref<8x16xf32, #tpu.memory_space<vmem>>, vector<8x16xf32>
    tpu.vector_store %arg7[%c0_11, %c0_12], %17 {strides = array<i32>} : memref<8x16xf32, #tpu.memory_space<vmem>>, vector<8x16xf32>,
    %c0_i32_13 = arith.constant 0 : i32
    %19 = arith.cmpi eq, %arg1, %c0_i32_13 : i32
    %20 = arith.extui %19 : i1 to i32
    %c0_i32_14 = arith.constant 0 : i32
    %21 = arith.cmpi ne, %20, %c0_i32_14 : i32
    scf.if %21 {
      %c0_15 = arith.constant 0 : index
      %c0_16 = arith.constant 0 : index
      %22 = vector.load %arg7[%c0_15, %c0_16] : memref<8x16xf32, #tpu.memory_space<vmem>>, vector<8x16xf32>
      %23 = arith.truncf %22 : vector<8x16xf32> to vector<8x16xbf16>
      %c0_17 = arith.constant 0 : index
      %c0_18 = arith.constant 0 : index
      %24 = vector.load %arg6[%c0_17, %c0_18] : memref<8x16xbf16, #tpu.memory_space<vmem>>, vector<8x16xbf16>
      tpu.vector_store %arg6[%c0_17, %c0_18], %23 {strides = array<i32>} : memref<8x16xbf16, #tpu.memory_space<vmem>>, vector<8x16xbf16>,
    } else {
    }
    return
  }
  func.func @transform_0(%arg0: i32, %arg1: i32) -> (i32, i32) {
    %c0_i32 = arith.constant 0 : i32
    return %arg0, %arg1 : i32, i32
  }
  func.func @transform_1(%arg0: i32, %arg1: i32) -> (i32, i32) {
    %c0_i32 = arith.constant 0 : i32
    %c0_i32_0 = arith.constant 0 : i32
    return %arg1, %c0_i32 : i32, i32
  }
  func.func @transform_2(%arg0: i32, %arg1: i32) -> (i32, i32) {
    %c0_i32 = arith.constant 0 : i32
    %c0_i32_0 = arith.constant 0 : i32
    return %c0_i32, %arg1 : i32, i32
  }
  func.func @transform_3(%arg0: i32, %arg1: i32) -> (i32, i32) {
    %c0_i32 = arith.constant 0 : i32
    %c0_i32_0 = arith.constant 0 : i32
    return %c0_i32, %arg1 : i32, i32
  }
  func.func @transform_4(%arg0: i32, %arg1: i32) -> (i32, i32) {
    %c0_i32 = arith.constant 0 : i32
    %c0_i32_0 = arith.constant 0 : i32
    return %arg0, %c0_i32 : i32, i32
  }
}

module attributes {stable_mosaic.version = 11 : i64} {
  func.func @_bn_relu_kernel(%arg0: i32, %arg1: memref<8x16xbf16, #tpu.memory_space<vmem>>, %arg2: memref<1x16xf32, #tpu.memory_space<vmem>>, %arg3: memref<1x16xf32, #tpu.memory_space<vmem>>, %arg4: memref<8x16xbf16, #tpu.memory_space<vmem>>) attributes {dimension_semantics = [#tpu.dimension_semantics<parallel>], iteration_bounds = array<i64: 1>, scalar_prefetch = 0 : i64, scratch_operands = 0 : i64, tpu.core_type = #tpu.core_type<tc>, window_params = [{transform_indices = @transform_0, window_bounds = array<i64: 8, 16>}, {pipeline_mode = #tpu.pipeline_mode<synchronous>, transform_indices = @transform_1, window_bounds = array<i64: 1, 16>}, {pipeline_mode = #tpu.pipeline_mode<synchronous>, transform_indices = @transform_2, window_bounds = array<i64: 1, 16>}, {transform_indices = @transform_3, window_bounds = array<i64: 8, 16>}]} {
    %c0 = arith.constant 0 : index
    %c0_0 = arith.constant 0 : index
    %0 = vector.load %arg1[%c0, %c0_0] : memref<8x16xbf16, #tpu.memory_space<vmem>>, vector<8x16xbf16>
    %1 = arith.extf %0 : vector<8x16xbf16> to vector<8x16xf32>
    %c0_1 = arith.constant 0 : index
    %c0_2 = arith.constant 0 : index
    %2 = vector.load %arg2[%c0_1, %c0_2] : memref<1x16xf32, #tpu.memory_space<vmem>>, vector<1x16xf32>
    %3 = vector.broadcast %2 : vector<1x16xf32> to vector<8x16xf32>
    %4 = arith.mulf %1, %3 : vector<8x16xf32>
    %c0_3 = arith.constant 0 : index
    %c0_4 = arith.constant 0 : index
    %5 = vector.load %arg3[%c0_3, %c0_4] : memref<1x16xf32, #tpu.memory_space<vmem>>, vector<1x16xf32>
    %6 = vector.broadcast %5 : vector<1x16xf32> to vector<8x16xf32>
    %7 = arith.addf %4, %6 : vector<8x16xf32>
    %cst = arith.constant 0.000000e+00 : f32
    %8 = vector.broadcast %cst : f32 to vector<8x16xf32>
    %9 = arith.maximumf %7, %8 : vector<8x16xf32>
    %10 = arith.truncf %9 : vector<8x16xf32> to vector<8x16xbf16>
    %c0_5 = arith.constant 0 : index
    %c0_6 = arith.constant 0 : index
    %11 = vector.load %arg4[%c0_5, %c0_6] : memref<8x16xbf16, #tpu.memory_space<vmem>>, vector<8x16xbf16>
    tpu.vector_store %arg4[%c0_5, %c0_6], %10 {strides = array<i32>} : memref<8x16xbf16, #tpu.memory_space<vmem>>, vector<8x16xbf16>,
    return
  }
  func.func @transform_0(%arg0: i32) -> (i32, i32) {
    %c0_i32 = arith.constant 0 : i32
    %c0_i32_0 = arith.constant 0 : i32
    return %arg0, %c0_i32 : i32, i32
  }
  func.func @transform_1(%arg0: i32) -> (i32, i32) {
    %c0_i32 = arith.constant 0 : i32
    %c0_i32_0 = arith.constant 0 : i32
    %c0_i32_1 = arith.constant 0 : i32
    return %c0_i32, %c0_i32_0 : i32, i32
  }
  func.func @transform_2(%arg0: i32) -> (i32, i32) {
    %c0_i32 = arith.constant 0 : i32
    %c0_i32_0 = arith.constant 0 : i32
    %c0_i32_1 = arith.constant 0 : i32
    return %c0_i32, %c0_i32_0 : i32, i32
  }
  func.func @transform_3(%arg0: i32) -> (i32, i32) {
    %c0_i32 = arith.constant 0 : i32
    %c0_i32_0 = arith.constant 0 : i32
    return %arg0, %c0_i32 : i32, i32
  }
}

module attributes {stable_mosaic.version = 11 : i64} {
  func.func @_gemm_kernel(%arg0: i32, %arg1: i32, %arg2: memref<8x144xbf16, #tpu.memory_space<vmem>>, %arg3: memref<144x8xbf16, #tpu.memory_space<vmem>>, %arg4: memref<8x8xbf16, #tpu.memory_space<vmem>>, %arg5: memref<8x8xf32, #tpu.memory_space<vmem>>) attributes {dimension_semantics = [#tpu.dimension_semantics<parallel>, #tpu.dimension_semantics<arbitrary>], iteration_bounds = array<i64: 1, 1>, scalar_prefetch = 0 : i64, scratch_operands = 1 : i64, tpu.core_type = #tpu.core_type<tc>, window_params = [{transform_indices = @transform_0, window_bounds = array<i64: 8, 144>}, {transform_indices = @transform_1, window_bounds = array<i64: 144, 8>}, {transform_indices = @transform_2, window_bounds = array<i64: 8, 8>}]} {
    %c0_i32 = arith.constant 0 : i32
    %0 = arith.cmpi eq, %arg1, %c0_i32 : i32
    %1 = arith.extui %0 : i1 to i32
    %c0_i32_0 = arith.constant 0 : i32
    %2 = arith.cmpi ne, %1, %c0_i32_0 : i32
    scf.if %2 {
      %cst_10 = arith.constant 0.000000e+00 : f32
      %12 = vector.broadcast %cst_10 : f32 to vector<8x8xf32>
      %c0_11 = arith.constant 0 : index
      %c0_12 = arith.constant 0 : index
      %13 = vector.load %arg5[%c0_11, %c0_12] : memref<8x8xf32, #tpu.memory_space<vmem>>, vector<8x8xf32>
      tpu.vector_store %arg5[%c0_11, %c0_12], %12 {strides = array<i32>} : memref<8x8xf32, #tpu.memory_space<vmem>>, vector<8x8xf32>,
    } else {
    }
    %c0 = arith.constant 0 : index
    %c0_1 = arith.constant 0 : index
    %3 = vector.load %arg5[%c0, %c0_1] : memref<8x8xf32, #tpu.memory_space<vmem>>, vector<8x8xf32>
    %c0_2 = arith.constant 0 : index
    %c0_3 = arith.constant 0 : index
    %4 = vector.load %arg2[%c0_2, %c0_3] : memref<8x144xbf16, #tpu.memory_space<vmem>>, vector<8x144xbf16>
    %c0_4 = arith.constant 0 : index
    %c0_5 = arith.constant 0 : index
    %5 = vector.load %arg3[%c0_4, %c0_5] : memref<144x8xbf16, #tpu.memory_space<vmem>>, vector<144x8xbf16>
    %cst = arith.constant dense<0.000000e+00> : vector<8x8xf32>
    %6 = tpu.matmul %4, %5, %cst {dimension_numbers = #tpu.dot_dimension_numbers<[1], [0], [0], [1], [0, 0, 1, 1], [], []>} : vector<8x144xbf16>, vector<144x8xbf16>, vector<8x8xf32> -> vector<8x8xf32>
    %7 = arith.addf %3, %6 : vector<8x8xf32>
    %c0_6 = arith.constant 0 : index
    %c0_7 = arith.constant 0 : index
    %8 = vector.load %arg5[%c0_6, %c0_7] : memref<8x8xf32, #tpu.memory_space<vmem>>, vector<8x8xf32>
    tpu.vector_store %arg5[%c0_6, %c0_7], %7 {strides = array<i32>} : memref<8x8xf32, #tpu.memory_space<vmem>>, vector<8x8xf32>,
    %c0_i32_8 = arith.constant 0 : i32
    %9 = arith.cmpi eq, %arg1, %c0_i32_8 : i32
    %10 = arith.extui %9 : i1 to i32
    %c0_i32_9 = arith.constant 0 : i32
    %11 = arith.cmpi ne, %10, %c0_i32_9 : i32
    scf.if %11 {
      %c0_10 = arith.constant 0 : index
      %c0_11 = arith.constant 0 : index
      %12 = vector.load %arg5[%c0_10, %c0_11] : memref<8x8xf32, #tpu.memory_space<vmem>>, vector<8x8xf32>
      %13 = arith.truncf %12 : vector<8x8xf32> to vector<8x8xbf16>
      %c0_12 = arith.constant 0 : index
      %c0_13 = arith.constant 0 : index
      %14 = vector.load %arg4[%c0_12, %c0_13] : memref<8x8xbf16, #tpu.memory_space<vmem>>, vector<8x8xbf16>
      tpu.vector_store %arg4[%c0_12, %c0_13], %13 {strides = array<i32>} : memref<8x8xbf16, #tpu.memory_space<vmem>>, vector<8x8xbf16>,
    } else {
    }
    return
  }
  func.func @transform_0(%arg0: i32, %arg1: i32) -> (i32, i32) {
    %c0_i32 = arith.constant 0 : i32
    return %arg0, %arg1 : i32, i32
  }
  func.func @transform_1(%arg0: i32, %arg1: i32) -> (i32, i32) {
    %c0_i32 = arith.constant 0 : i32
    %c0_i32_0 = arith.constant 0 : i32
    return %arg1, %c0_i32 : i32, i32
  }
  func.func @transform_2(%arg0: i32, %arg1: i32) -> (i32, i32) {
    %c0_i32 = arith.constant 0 : i32
    %c0_i32_0 = arith.constant 0 : i32
    return %arg0, %c0_i32 : i32, i32
  }
}

module attributes {stable_mosaic.version = 11 : i64} {
  func.func @_stats_kernel(%arg0: i32, %arg1: memref<8x24xbf16, #tpu.memory_space<vmem>>, %arg2: memref<1x24xf32, #tpu.memory_space<vmem>>, %arg3: memref<1x24xf32, #tpu.memory_space<vmem>>) attributes {dimension_semantics = [#tpu.dimension_semantics<arbitrary>], iteration_bounds = array<i64: 1>, scalar_prefetch = 0 : i64, scratch_operands = 0 : i64, tpu.core_type = #tpu.core_type<tc>, window_params = [{transform_indices = @transform_0, window_bounds = array<i64: 8, 24>}, {pipeline_mode = #tpu.pipeline_mode<synchronous>, transform_indices = @transform_1, window_bounds = array<i64: 1, 24>}, {pipeline_mode = #tpu.pipeline_mode<synchronous>, transform_indices = @transform_2, window_bounds = array<i64: 1, 24>}]} {
    %c0_i32 = arith.constant 0 : i32
    %0 = arith.cmpi eq, %arg0, %c0_i32 : i32
    %1 = arith.extui %0 : i1 to i32
    %c0_i32_0 = arith.constant 0 : i32
    %2 = arith.cmpi ne, %1, %c0_i32_0 : i32
    scf.if %2 {
      %cst_11 = arith.constant 0.000000e+00 : f32
      %16 = vector.broadcast %cst_11 : f32 to vector<1x24xf32>
      %c0_12 = arith.constant 0 : index
      %c0_13 = arith.constant 0 : index
      %17 = vector.load %arg2[%c0_12, %c0_13] : memref<1x24xf32, #tpu.memory_space<vmem>>, vector<1x24xf32>
      tpu.vector_store %arg2[%c0_12, %c0_13], %16 {strides = array<i32>} : memref<1x24xf32, #tpu.memory_space<vmem>>, vector<1x24xf32>,
      %cst_14 = arith.constant 0.000000e+00 : f32
      %18 = vector.broadcast %cst_14 : f32 to vector<1x24xf32>
      %c0_15 = arith.constant 0 : index
      %c0_16 = arith.constant 0 : index
      %19 = vector.load %arg3[%c0_15, %c0_16] : memref<1x24xf32, #tpu.memory_space<vmem>>, vector<1x24xf32>
      tpu.vector_store %arg3[%c0_15, %c0_16], %18 {strides = array<i32>} : memref<1x24xf32, #tpu.memory_space<vmem>>, vector<1x24xf32>,
    } else {
    }
    %c0 = arith.constant 0 : index
    %c0_1 = arith.constant 0 : index
    %3 = vector.load %arg1[%c0, %c0_1] : memref<8x24xbf16, #tpu.memory_space<vmem>>, vector<8x24xbf16>
    %4 = arith.extf %3 : vector<8x24xbf16> to vector<8x24xf32>
    %c0_2 = arith.constant 0 : index
    %c0_3 = arith.constant 0 : index
    %5 = vector.load %arg2[%c0_2, %c0_3] : memref<1x24xf32, #tpu.memory_space<vmem>>, vector<1x24xf32>
    %cst = arith.constant dense<0.000000e+00> : vector<24xf32>
    %6 = vector.multi_reduction <add>, %4, %cst [0] : vector<8x24xf32> to vector<24xf32>
    %7 = vector.shape_cast %6 : vector<24xf32> to vector<1x24xf32>
    %8 = arith.addf %5, %7 : vector<1x24xf32>
    %c0_4 = arith.constant 0 : index
    %c0_5 = arith.constant 0 : index
    %9 = vector.load %arg2[%c0_4, %c0_5] : memref<1x24xf32, #tpu.memory_space<vmem>>, vector<1x24xf32>
    tpu.vector_store %arg2[%c0_4, %c0_5], %8 {strides = array<i32>} : memref<1x24xf32, #tpu.memory_space<vmem>>, vector<1x24xf32>,
    %c0_6 = arith.constant 0 : index
    %c0_7 = arith.constant 0 : index
    %10 = vector.load %arg3[%c0_6, %c0_7] : memref<1x24xf32, #tpu.memory_space<vmem>>, vector<1x24xf32>
    %11 = arith.mulf %4, %4 : vector<8x24xf32>
    %cst_8 = arith.constant dense<0.000000e+00> : vector<24xf32>
    %12 = vector.multi_reduction <add>, %11, %cst_8 [0] : vector<8x24xf32> to vector<24xf32>
    %13 = vector.shape_cast %12 : vector<24xf32> to vector<1x24xf32>
    %14 = arith.addf %10, %13 : vector<1x24xf32>
    %c0_9 = arith.constant 0 : index
    %c0_10 = arith.constant 0 : index
    %15 = vector.load %arg3[%c0_9, %c0_10] : memref<1x24xf32, #tpu.memory_space<vmem>>, vector<1x24xf32>
    tpu.vector_store %arg3[%c0_9, %c0_10], %14 {strides = array<i32>} : memref<1x24xf32, #tpu.memory_space<vmem>>, vector<1x24xf32>,
    return
  }
  func.func @transform_0(%arg0: i32) -> (i32, i32) {
    %c0_i32 = arith.constant 0 : i32
    %c0_i32_0 = arith.constant 0 : i32
    return %arg0, %c0_i32 : i32, i32
  }
  func.func @transform_1(%arg0: i32) -> (i32, i32) {
    %c0_i32 = arith.constant 0 : i32
    %c0_i32_0 = arith.constant 0 : i32
    %c0_i32_1 = arith.constant 0 : i32
    return %c0_i32, %c0_i32_0 : i32, i32
  }
  func.func @transform_2(%arg0: i32) -> (i32, i32) {
    %c0_i32 = arith.constant 0 : i32
    %c0_i32_0 = arith.constant 0 : i32
    %c0_i32_1 = arith.constant 0 : i32
    return %c0_i32, %c0_i32_0 : i32, i32
  }
}

module attributes {stable_mosaic.version = 11 : i64} {
  func.func @_gemm_bn_kernel(%arg0: i32, %arg1: i32, %arg2: memref<8x24xbf16, #tpu.memory_space<vmem>>, %arg3: memref<24x16xbf16, #tpu.memory_space<vmem>>, %arg4: memref<1x24xf32, #tpu.memory_space<vmem>>, %arg5: memref<1x24xf32, #tpu.memory_space<vmem>>, %arg6: memref<8x16xbf16, #tpu.memory_space<vmem>>, %arg7: memref<8x16xf32, #tpu.memory_space<vmem>>) attributes {dimension_semantics = [#tpu.dimension_semantics<parallel>, #tpu.dimension_semantics<arbitrary>], iteration_bounds = array<i64: 1, 1>, scalar_prefetch = 0 : i64, scratch_operands = 1 : i64, tpu.core_type = #tpu.core_type<tc>, window_params = [{transform_indices = @transform_0, window_bounds = array<i64: 8, 24>}, {transform_indices = @transform_1, window_bounds = array<i64: 24, 16>}, {transform_indices = @transform_2, window_bounds = array<i64: 1, 24>}, {transform_indices = @transform_3, window_bounds = array<i64: 1, 24>}, {transform_indices = @transform_4, window_bounds = array<i64: 8, 16>}]} {
    %c0_i32 = arith.constant 0 : i32
    %0 = arith.cmpi eq, %arg1, %c0_i32 : i32
    %1 = arith.extui %0 : i1 to i32
    %c0_i32_0 = arith.constant 0 : i32
    %2 = arith.cmpi ne, %1, %c0_i32_0 : i32
    scf.if %2 {
      %cst_15 = arith.constant 0.000000e+00 : f32
      %22 = vector.broadcast %cst_15 : f32 to vector<8x16xf32>
      %c0_16 = arith.constant 0 : index
      %c0_17 = arith.constant 0 : index
      %23 = vector.load %arg7[%c0_16, %c0_17] : memref<8x16xf32, #tpu.memory_space<vmem>>, vector<8x16xf32>
      tpu.vector_store %arg7[%c0_16, %c0_17], %22 {strides = array<i32>} : memref<8x16xf32, #tpu.memory_space<vmem>>, vector<8x16xf32>,
    } else {
    }
    %c0 = arith.constant 0 : index
    %c0_1 = arith.constant 0 : index
    %3 = vector.load %arg2[%c0, %c0_1] : memref<8x24xbf16, #tpu.memory_space<vmem>>, vector<8x24xbf16>
    %4 = arith.extf %3 : vector<8x24xbf16> to vector<8x24xf32>
    %c0_2 = arith.constant 0 : index
    %c0_3 = arith.constant 0 : index
    %5 = vector.load %arg4[%c0_2, %c0_3] : memref<1x24xf32, #tpu.memory_space<vmem>>, vector<1x24xf32>
    %6 = vector.broadcast %5 : vector<1x24xf32> to vector<8x24xf32>
    %7 = arith.mulf %4, %6 : vector<8x24xf32>
    %c0_4 = arith.constant 0 : index
    %c0_5 = arith.constant 0 : index
    %8 = vector.load %arg5[%c0_4, %c0_5] : memref<1x24xf32, #tpu.memory_space<vmem>>, vector<1x24xf32>
    %9 = vector.broadcast %8 : vector<1x24xf32> to vector<8x24xf32>
    %10 = arith.addf %7, %9 : vector<8x24xf32>
    %cst = arith.constant 0.000000e+00 : f32
    %11 = vector.broadcast %cst : f32 to vector<8x24xf32>
    %12 = arith.maximumf %10, %11 : vector<8x24xf32>
    %c0_6 = arith.constant 0 : index
    %c0_7 = arith.constant 0 : index
    %13 = vector.load %arg7[%c0_6, %c0_7] : memref<8x16xf32, #tpu.memory_space<vmem>>, vector<8x16xf32>
    %14 = arith.truncf %12 : vector<8x24xf32> to vector<8x24xbf16>
    %c0_8 = arith.constant 0 : index
    %c0_9 = arith.constant 0 : index
    %15 = vector.load %arg3[%c0_8, %c0_9] : memref<24x16xbf16, #tpu.memory_space<vmem>>, vector<24x16xbf16>
    %cst_10 = arith.constant dense<0.000000e+00> : vector<8x16xf32>
    %16 = tpu.matmul %14, %15, %cst_10 {dimension_numbers = #tpu.dot_dimension_numbers<[1], [0], [0], [1], [0, 0, 1, 1], [], []>} : vector<8x24xbf16>, vector<24x16xbf16>, vector<8x16xf32> -> vector<8x16xf32>
    %17 = arith.addf %13, %16 : vector<8x16xf32>
    %c0_11 = arith.constant 0 : index
    %c0_12 = arith.constant 0 : index
    %18 = vector.load %arg7[%c0_11, %c0_12] : memref<8x16xf32, #tpu.memory_space<vmem>>, vector<8x16xf32>
    tpu.vector_store %arg7[%c0_11, %c0_12], %17 {strides = array<i32>} : memref<8x16xf32, #tpu.memory_space<vmem>>, vector<8x16xf32>,
    %c0_i32_13 = arith.constant 0 : i32
    %19 = arith.cmpi eq, %arg1, %c0_i32_13 : i32
    %20 = arith.extui %19 : i1 to i32
    %c0_i32_14 = arith.constant 0 : i32
    %21 = arith.cmpi ne, %20, %c0_i32_14 : i32
    scf.if %21 {
      %c0_15 = arith.constant 0 : index
      %c0_16 = arith.constant 0 : index
      %22 = vector.load %arg7[%c0_15, %c0_16] : memref<8x16xf32, #tpu.memory_space<vmem>>, vector<8x16xf32>
      %23 = arith.truncf %22 : vector<8x16xf32> to vector<8x16xbf16>
      %c0_17 = arith.constant 0 : index
      %c0_18 = arith.constant 0 : index
      %24 = vector.load %arg6[%c0_17, %c0_18] : memref<8x16xbf16, #tpu.memory_space<vmem>>, vector<8x16xbf16>
      tpu.vector_store %arg6[%c0_17, %c0_18], %23 {strides = array<i32>} : memref<8x16xbf16, #tpu.memory_space<vmem>>, vector<8x16xbf16>,
    } else {
    }
    return
  }
  func.func @transform_0(%arg0: i32, %arg1: i32) -> (i32, i32) {
    %c0_i32 = arith.constant 0 : i32
    return %arg0, %arg1 : i32, i32
  }
  func.func @transform_1(%arg0: i32, %arg1: i32) -> (i32, i32) {
    %c0_i32 = arith.constant 0 : i32
    %c0_i32_0 = arith.constant 0 : i32
    return %arg1, %c0_i32 : i32, i32
  }
  func.func @transform_2(%arg0: i32, %arg1: i32) -> (i32, i32) {
    %c0_i32 = arith.constant 0 : i32
    %c0_i32_0 = arith.constant 0 : i32
    return %c0_i32, %arg1 : i32, i32
  }
  func.func @transform_3(%arg0: i32, %arg1: i32) -> (i32, i32) {
    %c0_i32 = arith.constant 0 : i32
    %c0_i32_0 = arith.constant 0 : i32
    return %c0_i32, %arg1 : i32, i32
  }
  func.func @transform_4(%arg0: i32, %arg1: i32) -> (i32, i32) {
    %c0_i32 = arith.constant 0 : i32
    %c0_i32_0 = arith.constant 0 : i32
    return %arg0, %c0_i32 : i32, i32
  }
}

module attributes {stable_mosaic.version = 11 : i64} {
  func.func @_stats_kernel(%arg0: i32, %arg1: memref<8x32xbf16, #tpu.memory_space<vmem>>, %arg2: memref<1x32xf32, #tpu.memory_space<vmem>>, %arg3: memref<1x32xf32, #tpu.memory_space<vmem>>) attributes {dimension_semantics = [#tpu.dimension_semantics<arbitrary>], iteration_bounds = array<i64: 1>, scalar_prefetch = 0 : i64, scratch_operands = 0 : i64, tpu.core_type = #tpu.core_type<tc>, window_params = [{transform_indices = @transform_0, window_bounds = array<i64: 8, 32>}, {pipeline_mode = #tpu.pipeline_mode<synchronous>, transform_indices = @transform_1, window_bounds = array<i64: 1, 32>}, {pipeline_mode = #tpu.pipeline_mode<synchronous>, transform_indices = @transform_2, window_bounds = array<i64: 1, 32>}]} {
    %c0_i32 = arith.constant 0 : i32
    %0 = arith.cmpi eq, %arg0, %c0_i32 : i32
    %1 = arith.extui %0 : i1 to i32
    %c0_i32_0 = arith.constant 0 : i32
    %2 = arith.cmpi ne, %1, %c0_i32_0 : i32
    scf.if %2 {
      %cst_11 = arith.constant 0.000000e+00 : f32
      %16 = vector.broadcast %cst_11 : f32 to vector<1x32xf32>
      %c0_12 = arith.constant 0 : index
      %c0_13 = arith.constant 0 : index
      %17 = vector.load %arg2[%c0_12, %c0_13] : memref<1x32xf32, #tpu.memory_space<vmem>>, vector<1x32xf32>
      tpu.vector_store %arg2[%c0_12, %c0_13], %16 {strides = array<i32>} : memref<1x32xf32, #tpu.memory_space<vmem>>, vector<1x32xf32>,
      %cst_14 = arith.constant 0.000000e+00 : f32
      %18 = vector.broadcast %cst_14 : f32 to vector<1x32xf32>
      %c0_15 = arith.constant 0 : index
      %c0_16 = arith.constant 0 : index
      %19 = vector.load %arg3[%c0_15, %c0_16] : memref<1x32xf32, #tpu.memory_space<vmem>>, vector<1x32xf32>
      tpu.vector_store %arg3[%c0_15, %c0_16], %18 {strides = array<i32>} : memref<1x32xf32, #tpu.memory_space<vmem>>, vector<1x32xf32>,
    } else {
    }
    %c0 = arith.constant 0 : index
    %c0_1 = arith.constant 0 : index
    %3 = vector.load %arg1[%c0, %c0_1] : memref<8x32xbf16, #tpu.memory_space<vmem>>, vector<8x32xbf16>
    %4 = arith.extf %3 : vector<8x32xbf16> to vector<8x32xf32>
    %c0_2 = arith.constant 0 : index
    %c0_3 = arith.constant 0 : index
    %5 = vector.load %arg2[%c0_2, %c0_3] : memref<1x32xf32, #tpu.memory_space<vmem>>, vector<1x32xf32>
    %cst = arith.constant dense<0.000000e+00> : vector<32xf32>
    %6 = vector.multi_reduction <add>, %4, %cst [0] : vector<8x32xf32> to vector<32xf32>
    %7 = vector.shape_cast %6 : vector<32xf32> to vector<1x32xf32>
    %8 = arith.addf %5, %7 : vector<1x32xf32>
    %c0_4 = arith.constant 0 : index
    %c0_5 = arith.constant 0 : index
    %9 = vector.load %arg2[%c0_4, %c0_5] : memref<1x32xf32, #tpu.memory_space<vmem>>, vector<1x32xf32>
    tpu.vector_store %arg2[%c0_4, %c0_5], %8 {strides = array<i32>} : memref<1x32xf32, #tpu.memory_space<vmem>>, vector<1x32xf32>,
    %c0_6 = arith.constant 0 : index
    %c0_7 = arith.constant 0 : index
    %10 = vector.load %arg3[%c0_6, %c0_7] : memref<1x32xf32, #tpu.memory_space<vmem>>, vector<1x32xf32>
    %11 = arith.mulf %4, %4 : vector<8x32xf32>
    %cst_8 = arith.constant dense<0.000000e+00> : vector<32xf32>
    %12 = vector.multi_reduction <add>, %11, %cst_8 [0] : vector<8x32xf32> to vector<32xf32>
    %13 = vector.shape_cast %12 : vector<32xf32> to vector<1x32xf32>
    %14 = arith.addf %10, %13 : vector<1x32xf32>
    %c0_9 = arith.constant 0 : index
    %c0_10 = arith.constant 0 : index
    %15 = vector.load %arg3[%c0_9, %c0_10] : memref<1x32xf32, #tpu.memory_space<vmem>>, vector<1x32xf32>
    tpu.vector_store %arg3[%c0_9, %c0_10], %14 {strides = array<i32>} : memref<1x32xf32, #tpu.memory_space<vmem>>, vector<1x32xf32>,
    return
  }
  func.func @transform_0(%arg0: i32) -> (i32, i32) {
    %c0_i32 = arith.constant 0 : i32
    %c0_i32_0 = arith.constant 0 : i32
    return %arg0, %c0_i32 : i32, i32
  }
  func.func @transform_1(%arg0: i32) -> (i32, i32) {
    %c0_i32 = arith.constant 0 : i32
    %c0_i32_0 = arith.constant 0 : i32
    %c0_i32_1 = arith.constant 0 : i32
    return %c0_i32, %c0_i32_0 : i32, i32
  }
  func.func @transform_2(%arg0: i32) -> (i32, i32) {
    %c0_i32 = arith.constant 0 : i32
    %c0_i32_0 = arith.constant 0 : i32
    %c0_i32_1 = arith.constant 0 : i32
    return %c0_i32, %c0_i32_0 : i32, i32
  }
}

module attributes {stable_mosaic.version = 11 : i64} {
  func.func @_head_kernel(%arg0: memref<2x4x32xbf16, #tpu.memory_space<vmem>>, %arg1: memref<1x1x32xf32, #tpu.memory_space<vmem>>, %arg2: memref<1x1x32xf32, #tpu.memory_space<vmem>>, %arg3: memref<32x16xf32, #tpu.memory_space<vmem>>, %arg4: memref<1x16xf32, #tpu.memory_space<vmem>>, %arg5: memref<2x16xf32, #tpu.memory_space<vmem>>) attributes {dimension_semantics = [], scalar_prefetch = 0 : i64, scratch_operands = 0 : i64, tpu.core_type = #tpu.core_type<tc>} {
    %c0 = arith.constant 0 : index
    %c0_0 = arith.constant 0 : index
    %c0_1 = arith.constant 0 : index
    %0 = vector.load %arg0[%c0, %c0_0, %c0_1] : memref<2x4x32xbf16, #tpu.memory_space<vmem>>, vector<2x4x32xbf16>
    %1 = arith.extf %0 : vector<2x4x32xbf16> to vector<2x4x32xf32>
    %c0_2 = arith.constant 0 : index
    %c0_3 = arith.constant 0 : index
    %c0_4 = arith.constant 0 : index
    %2 = vector.load %arg1[%c0_2, %c0_3, %c0_4] : memref<1x1x32xf32, #tpu.memory_space<vmem>>, vector<1x1x32xf32>
    %3 = vector.broadcast %2 : vector<1x1x32xf32> to vector<2x4x32xf32>
    %4 = arith.mulf %1, %3 : vector<2x4x32xf32>
    %c0_5 = arith.constant 0 : index
    %c0_6 = arith.constant 0 : index
    %c0_7 = arith.constant 0 : index
    %5 = vector.load %arg2[%c0_5, %c0_6, %c0_7] : memref<1x1x32xf32, #tpu.memory_space<vmem>>, vector<1x1x32xf32>
    %6 = vector.broadcast %5 : vector<1x1x32xf32> to vector<2x4x32xf32>
    %7 = arith.addf %4, %6 : vector<2x4x32xf32>
    %cst = arith.constant 0.000000e+00 : f32
    %8 = vector.broadcast %cst : f32 to vector<2x4x32xf32>
    %9 = arith.maximumf %7, %8 : vector<2x4x32xf32>
    %cst_8 = arith.constant dense<0.000000e+00> : vector<2x32xf32>
    %10 = vector.multi_reduction <add>, %9, %cst_8 [1] : vector<2x4x32xf32> to vector<2x32xf32>
    %cst_9 = arith.constant 4.000000e+00 : f32
    %11 = vector.broadcast %cst_9 : f32 to vector<2x32xf32>
    %12 = arith.divf %10, %11 : vector<2x32xf32>
    %c0_10 = arith.constant 0 : index
    %c0_11 = arith.constant 0 : index
    %13 = vector.load %arg3[%c0_10, %c0_11] : memref<32x16xf32, #tpu.memory_space<vmem>>, vector<32x16xf32>
    %cst_12 = arith.constant dense<0.000000e+00> : vector<2x16xf32>
    %14 = tpu.matmul %12, %13, %cst_12 {dimension_numbers = #tpu.dot_dimension_numbers<[1], [0], [0], [1], [0, 0, 1, 1], [], []>} : vector<2x32xf32>, vector<32x16xf32>, vector<2x16xf32> -> vector<2x16xf32>
    %c0_13 = arith.constant 0 : index
    %c0_14 = arith.constant 0 : index
    %15 = vector.load %arg4[%c0_13, %c0_14] : memref<1x16xf32, #tpu.memory_space<vmem>>, vector<1x16xf32>
    %16 = vector.broadcast %15 : vector<1x16xf32> to vector<2x16xf32>
    %17 = arith.addf %14, %16 : vector<2x16xf32>
    %18 = arith.mulf %17, %17 : vector<2x16xf32>
    %cst_15 = arith.constant dense<0.000000e+00> : vector<2xf32>
    %19 = vector.multi_reduction <add>, %18, %cst_15 [1] : vector<2x16xf32> to vector<2xf32>
    %20 = vector.shape_cast %19 : vector<2xf32> to vector<2x1xf32>
    %cst_16 = arith.constant 1.000000e-24 : f32
    %21 = vector.broadcast %cst_16 : f32 to vector<2x1xf32>
    %22 = arith.maximumf %20, %21 : vector<2x1xf32>
    %23 = math.rsqrt %22 : vector<2x1xf32>
    %24 = vector.broadcast %23 : vector<2x1xf32> to vector<2x16xf32>
    %25 = arith.mulf %17, %24 : vector<2x16xf32>
    %c0_17 = arith.constant 0 : index
    %c0_18 = arith.constant 0 : index
    %26 = vector.load %arg5[%c0_17, %c0_18] : memref<2x16xf32, #tpu.memory_space<vmem>>, vector<2x16xf32>
    tpu.vector_store %arg5[%c0_17, %c0_18], %25 {strides = array<i32>} : memref<2x16xf32, #tpu.memory_space<vmem>>, vector<2x16xf32>,
    return
  }
}

</mosaic_0001>

<bundles_post_ra>
// kernel: densenet_forward.28
= control target key start
LH: loop header
LB: loop body
LE: loop exit
PB: predicated region body
PF: predicated region fallthrough
CT: control target
= control target key end

     0   :  { %vm14_vm0 = vcmask 122880   ;;  %v195_v0 = vmov 0.0   ;;  %vm50_vm1 = vcmask 130048   ;;  %s289_s0 = inlined_call_operand.vmem [shape: bf16[128,16], index: 0, kind: input, shape index: {}]   ;;  %s290_s1 = inlined_call_operand.vmem [shape: f32[1,16], index: 1, kind: output, shape index: {0}]   ;;  %s291_s2 = inlined_call_operand.vmem [shape: f32[1,16], index: 2, kind: output, shape index: {1}]  }
   0x1   :  { %15 = vst.msk [vmem:[%s290_s1] sm:$0x1] %vm14_vm0, %v195_v0  ;;  %v156_v1 = vld [vmem:[%s289_s0] sm:$0xff]   ;;  %v187_v2 = vld [vmem:[%s289_s0 + $0x8] sm:$0xff]   ;;  %16 = vst.msk [vmem:[%s291_s2] sm:$0x1] %vm14_vm0, %v195_v0 }
   0x2   :  { %v157_v3 = vunpack.c.l.bf16 %v156_v1  ;;  %v158_v4 = vunpack.c.h.bf16 %v156_v1  ;;  %v161_v5 = vunpack.c.l.bf16 %v187_v2  ;;  %v188_v6 = vld [vmem:[%s289_s0 + $0x10] sm:$0xff]   ;;  %v162_v7 = vunpack.c.h.bf16 %v187_v2  ;;  %v189_v14 = vld [vmem:[%s289_s0 + $0x18] sm:$0xff]   ;;  %v190_v24 = vld [vmem:[%s289_s0 + $0x20] sm:$0xff]  }
   0x3   :  { %v165_v12 = vunpack.c.l.bf16 %v188_v6  ;;  %v166_v16 = vunpack.c.h.bf16 %v188_v6  ;;  %v169_v22 = vunpack.c.l.bf16 %v189_v14  ;;  %v170_v27 = vunpack.c.h.bf16 %v189_v14  ;;  %v191_v37 = vld [vmem:[%s289_s0 + $0x28] sm:$0xff]   ;;  %v192_v50 = vld [vmem:[%s289_s0 + $0x30] sm:$0xff]   ;;  %v193_v63 = vld [vmem:[%s289_s0 + $0x38] sm:$0xff]  }
   0x4   :  { %v51_v8 = vsel %vm50_vm1, %v157_v3, 0.0  ;;  %v52_v9 = vsel %vm50_vm1, %v158_v4, 0.0  ;;  %v54_v10 = vsel %vm50_vm1, %v161_v5, 0.0  ;;  %v56_v13 = vsel %vm50_vm1, %v162_v7, 0.0 }
   0x5   :  { %v53_v11 = vadd.f32 %v52_v9, %v51_v8  ;;  %v58_v17 = vsel %vm50_vm1, %v165_v12, 0.0  ;;  %v92_v19 = vmul.f32 %v157_v3, %v157_v3  ;;  %v93_v20 = vmul.f32 %v158_v4, %v158_v4 }
   0x6   :  { %v94_v21 = vmul.f32 %v161_v5, %v161_v5  ;;  %v60_v23 = vsel %vm50_vm1, %v166_v16, 0.0  ;;  %v95_v26 = vmul.f32 %v162_v7, %v162_v7  ;;  %v62_v28 = vsel %vm50_vm1, %v169_v22, 0.0 }
   0x7   :  { %v55_v15 = vadd.f32 %v54_v10, %v53_v11  ;;  %v96_v29 = vmul.f32 %v165_v12, %v165_v12  ;;  %v108_v31 = vsel %vm50_vm1, %v92_v19, 0.0  ;;  %v109_v32 = vsel %vm50_vm1, %v93_v20, 0.0 }
   0x8   :  { %v111_v33 = vsel %vm50_vm1, %v94_v21, 0.0  ;;  %v173_v34 = vunpack.c.l.bf16 %v190_v24  ;;  %v64_v35 = vsel %vm50_vm1, %v170_v27, 0.0  ;;  %v110_v36 = vadd.f32 %v109_v32, %v108_v31 }
   0x9   :  { %v57_v18 = vadd.f32 %v56_v13, %v55_v15  ;;  %v97_v39 = vmul.f32 %v166_v16, %v166_v16  ;;  %v113_v40 = vsel %vm50_vm1, %v95_v26, 0.0  ;;  %v174_v41 = vunpack.c.h.bf16 %v190_v24 }
   0xa   :  { %v66_v42 = vsel %vm50_vm1, %v173_v34, 0.0  ;;  %v112_v43 = vadd.f32 %v111_v33, %v110_v36  ;;  %v98_v45 = vmul.f32 %v169_v22, %v169_v22  ;;  %v115_v46 = vsel %vm50_vm1, %v96_v29, 0.0 }
   0xb   :  { %v59_v25 = vadd.f32 %v58_v17, %v57_v18  ;;  %v177_v47 = vunpack.c.l.bf16 %v191_v37  ;;  %v68_v48 = vsel %vm50_vm1, %v174_v41, 0.0  ;;  %v99_v52 = vmul.f32 %v170_v27, %v170_v27 }
   0xc   :  { %v114_v49 = vadd.f32 %v113_v40, %v112_v43  ;;  %v117_v53 = vsel %vm50_vm1, %v97_v39, 0.0  ;;  %v178_v54 = vunpack.c.h.bf16 %v191_v37  ;;  %v100_v58 = vmul.f32 %v173_v34, %v173_v34 }
   0xd   :  { %v61_v30 = vadd.f32 %v60_v23, %v59_v25  ;;  %v70_v55 = vsel %vm50_vm1, %v177_v47, 0.0  ;;  %v119_v59 = vsel %vm50_vm1, %v98_v45, 0.0  ;;  %v181_v60 = vunpack.c.l.bf16 %v192_v50 }
   0xe   :  { %v116_v56 = vadd.f32 %v115_v46, %v114_v49  ;;  %v72_v61 = vsel %vm50_vm1, %v178_v54, 0.0  ;;  %v101_v1 = vmul.f32 %v174_v41, %v174_v41  ;;  %v121_v2 = vsel %vm50_vm1, %v99_v52, 0.0  ;;  %v91_v52 = vld [vmem:[%s291_s2] sm:$0x1] }
   0xf   :  { %v63_v38 = vadd.f32 %v62_v28, %v61_v30  ;;  %v182_v3 = vunpack.c.h.bf16 %v192_v50  ;;  %v74_v4 = vsel %vm50_vm1, %v181_v60, 0.0  ;;  %v102_v7 = vmul.f32 %v177_v47, %v177_v47 }
  0x10   :  { %v118_v62 = vadd.f32 %v117_v53, %v116_v56  ;;  %v123_v8 = vsel %vm50_vm1, %v100_v58, 0.0  ;;  %v185_v9 = vunpack.c.l.bf16 %v193_v63  ;;  %v103_v13 = vmul.f32 %v178_v54, %v178_v54 }
  0x11   :  { %v65_v44 = vadd.f32 %v64_v35, %v63_v38  ;;  %v76_v10 = vsel %vm50_vm1, %v182_v3, 0.0  ;;  %v125_v14 = vsel %vm50_vm1, %v101_v1, 0.0  ;;  %v186_v15 = vunpack.c.h.bf16 %v193_v63 }
  0x12   :  { %v120_v5 = vadd.f32 %v119_v59, %v118_v62  ;;  %v78_v16 = vsel %vm50_vm1, %v185_v9, 0.0  ;;  %v104_v19 = vmul.f32 %v181_v60, %v181_v60  ;;  %v127_v20 = vsel %vm50_vm1, %v102_v7, 0.0 }
  0x13   :  { %v67_v51 = vadd.f32 %v66_v42, %v65_v44  ;;  %v80_v21 = vsel %vm50_vm1, %v186_v15, 0.0  ;;  %v105_v24 = vmul.f32 %v182_v3, %v182_v3  ;;  %v129_v25 = vsel %vm50_vm1, %v103_v13, 0.0  ;;  %v49_v44 = vld [vmem:[%s290_s1] sm:$0x1] }
  0x14   :  { %v122_v11 = vadd.f32 %v121_v2, %v120_v5  ;;  %v106_v28 = vmul.f32 %v185_v9, %v185_v9  ;;  %v131_v29 = vsel %vm50_vm1, %v104_v19, 0.0  ;;  %v107_v32 = vmul.f32 %v186_v15, %v186_v15 }
  0x15   :  { %v69_v57 = vadd.f32 %v68_v48, %v67_v51  ;;  %v133_v33 = vsel %vm50_vm1, %v105_v24, 0.0 }
  0x16   :  { %v124_v17 = vadd.f32 %v123_v8, %v122_v11  ;;  %v135_v36 = vsel %vm50_vm1, %v106_v28, 0.0  ;;  %v137_v39 = vsel %vm50_vm1, %v107_v32, 0.0 }
  0x17   :  { %v71_v0 = vadd.f32 %v70_v55, %v69_v57 }
  0x18   :  { %v126_v22 = vadd.f32 %v125_v14, %v124_v17 }
  0x19   :  { %v73_v6 = vadd.f32 %v72_v61, %v71_v0 }
  0x1a   :  { %v128_v26 = vadd.f32 %v127_v20, %v126_v22 }
  0x1b   :  { %v75_v12 = vadd.f32 %v74_v4, %v73_v6 }
  0x1c   :  { %v130_v30 = vadd.f32 %v129_v25, %v128_v26 }
  0x1d   :  { %v77_v18 = vadd.f32 %v76_v10, %v75_v12 }
  0x1e   :  { %v132_v34 = vadd.f32 %v131_v29, %v130_v30 }
  0x1f   :  { %v79_v23 = vadd.f32 %v78_v16, %v77_v18 }
  0x20   :  { %v134_v37 = vadd.f32 %v133_v33, %v132_v34 }
  0x21   :  { %v81_v27 = vadd.f32 %v80_v21, %v79_v23 }
  0x22   :  { %v136_v40 = vadd.f32 %v135_v36, %v134_v37 }
  0x23   :  { %v82_v31 = vrot.slane %v81_v27, 4 }
  0x24   :  { %v138_v42 = vadd.f32 %v137_v39, %v136_v40 }
  0x25   :  { %v83_v35 = vadd.f32 %v82_v31, %v81_v27 }
  0x26   :  { %v139_v45 = vrot.slane %v138_v42, 4 }
  0x27   :  { %v84_v38 = vrot.slane %v83_v35, 2 }
  0x28   :  { %v140_v47 = vadd.f32 %v139_v45, %v138_v42 }
  0x29   :  { %v85_v41 = vadd.f32 %v84_v38, %v83_v35 }
  0x2a   :  { %v141_v49 = vrot.slane %v140_v47, 2 }
  0x2b   :  { %v86_v43 = vrot.slane %v85_v41, 1 }
  0x2c   :  { %v142_v50 = vadd.f32 %v141_v49, %v140_v47 }
  0x2d   :  { %v87_v46 = vadd.f32 %v86_v43, %v85_v41 }
  0x2e   :  { %v143_v51 = vrot.slane %v142_v50, 1 }
  0x2f   :  { %v88_v48 = vadd.f32 %v87_v46, %v49_v44 }
  0x30   :  { %v144_v53 = vadd.f32 %v143_v51, %v142_v50 }
  0x31   :  { %90 = vst.msk [vmem:[%s290_s1] sm:$0x1] %vm14_vm0, %v88_v48 }
  0x32   :  { %v145_v54 = vadd.f32 %v144_v53, %v91_v52 }
  0x34   :  { %146 = vst.msk [vmem:[%s291_s2] sm:$0x1] %vm14_vm0, %v145_v54 }

// kernel: densenet_forward.29
= control target key start
LH: loop header
LB: loop body
LE: loop exit
PB: predicated region body
PF: predicated region fallthrough
CT: control target
= control target key end

     0   :  { %vm172_vm0 = vcmask 125952   ;;  %s416_s0 = inlined_call_operand.vmem [shape: bf16[128,16], index: 0, kind: input, shape index: {}]   ;;  %s417_s1 = inlined_call_operand.vmem [shape: f32[1,16], index: 1, kind: input, shape index: {}]   ;;  %s418_s2 = inlined_call_operand.vmem [shape: f32[1,16], index: 2, kind: input, shape index: {}]   ;;  %s419_s3 = inlined_call_operand.vmem [shape: bf16[128,16], index: 3, kind: output, shape index: {}]  }
   0x1   :  { %v228_v0 = vld [vmem:[%s416_s0] sm:$0xff]   ;;  %v259_v4 = vld [vmem:[%s416_s0 + $0x8] sm:$0xff]   ;;  %v260_v5 = vld [vmem:[%s416_s0 + $0x10] sm:$0xff]  }
   0x2   :  { %v292_v1 = vld [vmem:[%s417_s1] ss:$0 sm:$0xff]  ;;  %v229_v2 = vunpack.c.l.bf16 %v228_v0  ;;  %v230_v3 = vunpack.c.h.bf16 %v228_v0  ;;  %v261_v6 = vld [vmem:[%s416_s0 + $0x18] sm:$0xff]   ;;  %v233_v8 = vunpack.c.l.bf16 %v259_v4  ;;  %v234_v9 = vunpack.c.h.bf16 %v259_v4  ;;  %v263_v41 = vld [vmem:[%s416_s0 + $0x28] sm:$0xff]  }
   0x3   :  { %v306_v7 = vld [vmem:[%s418_s2] ss:$0 sm:$0xff]  ;;  %v237_v10 = vunpack.c.l.bf16 %v260_v5  ;;  %v238_v11 = vunpack.c.h.bf16 %v260_v5  ;;  %v241_v14 = vunpack.c.l.bf16 %v261_v6  ;;  %v242_v15 = vunpack.c.h.bf16 %v261_v6  ;;  %v264_v42 = vld [vmem:[%s416_s0 + $0x30] sm:$0xff]   ;;  %v265_v47 = vld [vmem:[%s416_s0 + $0x38] sm:$0xff]  }
   0x4   :  { %v53_v12 = vmul.f32 %v229_v2, %v292_v1  ;;  %v54_v13 = vmul.f32 %v230_v3, %v292_v1  ;;  %v55_v16 = vmul.f32 %v233_v8, %v292_v1  ;;  %v56_v17 = vmul.f32 %v234_v9, %v292_v1  ;;  %v262_v36 = vld [vmem:[%s416_s0 + $0x20] sm:$0xff]  }
   0x5   :  { %v57_v18 = vmul.f32 %v237_v10, %v292_v1  ;;  %v58_v19 = vmul.f32 %v238_v11, %v292_v1  ;;  %v59_v22 = vmul.f32 %v241_v14, %v292_v1  ;;  %v60_v23 = vmul.f32 %v242_v15, %v292_v1 }
   0x6   :  { %v76_v20 = vadd.f32 %v306_v7, %v53_v12  ;;  %v77_v21 = vadd.f32 %v306_v7, %v54_v13  ;;  %v78_v24 = vadd.f32 %v306_v7, %v55_v16  ;;  %v79_v25 = vadd.f32 %v306_v7, %v56_v17 }
   0x7   :  { %v80_v26 = vadd.f32 %v306_v7, %v57_v18  ;;  %v81_v27 = vadd.f32 %v306_v7, %v58_v19  ;;  %v82_v30 = vadd.f32 %v306_v7, %v59_v22  ;;  %v83_v31 = vadd.f32 %v306_v7, %v60_v23 }
   0x8   :  { %v92_v28 = vmax.f32 %v76_v20, 0.0  ;;  %v93_v29 = vmax.f32 %v77_v21, 0.0  ;;  %v94_v32 = vmax.f32 %v78_v24, 0.0  ;;  %v95_v33 = vmax.f32 %v79_v25, 0.0 }
   0x9   :  { %v96_v34 = vmax.f32 %v80_v26, 0.0  ;;  %v97_v35 = vmax.f32 %v81_v27, 0.0  ;;  %v98_v39 = vmax.f32 %v82_v30, 0.0  ;;  %v99_v40 = vmax.f32 %v83_v31, 0.0 }
   0xa   :  { %v211_v37 = vpack.c.bf16 %v92_v28, %v92_v28  ;;  %v212_v38 = vpack.c.bf16 %v93_v29, %v93_v29  ;;  %v213_v43 = vpack.c.bf16 %v94_v32, %v94_v32  ;;  %v214_v44 = vpack.c.bf16 %v95_v33, %v95_v33 }
   0xb   :  { %v215_v45 = vpack.c.bf16 %v96_v34, %v96_v34  ;;  %v216_v46 = vpack.c.bf16 %v97_v35, %v97_v35  ;;  %v217_v48 = vpack.c.bf16 %v98_v39, %v98_v39  ;;  %v218_v49 = vpack.c.bf16 %v99_v40, %v99_v40 }
   0xc   :  { %173 = vst.msk [vmem:[%s419_s3] sm:$0xf] %vm172_vm0, %v211_v37  ;;  %174 = vst.msk [vmem:[%s419_s3 + $0x4] sm:$0xf] %vm172_vm0, %v212_v38  ;;  %v245_v50 = vunpack.c.l.bf16 %v262_v36  ;;  %v246_v51 = vunpack.c.h.bf16 %v262_v36  ;;  %v249_v52 = vunpack.c.l.bf16 %v263_v41  ;;  %v250_v53 = vunpack.c.h.bf16 %v263_v41 }
   0xd   :  { %175 = vst.msk [vmem:[%s419_s3 + $0x8] sm:$0xf] %vm172_vm0, %v213_v43  ;;  %176 = vst.msk [vmem:[%s419_s3 + $0xc] sm:$0xf] %vm172_vm0, %v214_v44  ;;  %v253_v54 = vunpack.c.l.bf16 %v264_v42  ;;  %v254_v55 = vunpack.c.h.bf16 %v264_v42  ;;  %v257_v58 = vunpack.c.l.bf16 %v265_v47  ;;  %v258_v59 = vunpack.c.h.bf16 %v265_v47 }
   0xe   :  { %177 = vst.msk [vmem:[%s419_s3 + $0x10] sm:$0xf] %vm172_vm0, %v215_v45  ;;  %178 = vst.msk [vmem:[%s419_s3 + $0x14] sm:$0xf] %vm172_vm0, %v216_v46  ;;  %v61_v56 = vmul.f32 %v245_v50, %v292_v1  ;;  %v62_v57 = vmul.f32 %v246_v51, %v292_v1  ;;  %v63_v60 = vmul.f32 %v249_v52, %v292_v1 }
   0xf   :  { %179 = vst.msk [vmem:[%s419_s3 + $0x18] sm:$0xf] %vm172_vm0, %v217_v48  ;;  %180 = vst.msk [vmem:[%s419_s3 + $0x1c] sm:$0xf] %vm172_vm0, %v218_v49  ;;  %v64_v61 = vmul.f32 %v250_v53, %v292_v1  ;;  %v65_v62 = vmul.f32 %v253_v54, %v292_v1  ;;  %v66_v63 = vmul.f32 %v254_v55, %v292_v1 }
  0x10   :  { %v84_v0 = vadd.f32 %v306_v7, %v61_v56  ;;  %v85_v2 = vadd.f32 %v306_v7, %v62_v57  ;;  %v67_v3 = vmul.f32 %v257_v58, %v292_v1  ;;  %v68_v4 = vmul.f32 %v258_v59, %v292_v1 }
  0x11   :  { %v86_v5 = vadd.f32 %v306_v7, %v63_v60  ;;  %v87_v6 = vadd.f32 %v306_v7, %v64_v61  ;;  %v88_v8 = vadd.f32 %v306_v7, %v65_v62  ;;  %v89_v9 = vadd.f32 %v306_v7, %v66_v63 }
  0x12   :  { %v100_v10 = vmax.f32 %v84_v0, 0.0  ;;  %v101_v11 = vmax.f32 %v85_v2, 0.0  ;;  %v90_v12 = vadd.f32 %v306_v7, %v67_v3  ;;  %v91_v13 = vadd.f32 %v306_v7, %v68_v4 }
  0x13   :  { %v102_v14 = vmax.f32 %v86_v5, 0.0  ;;  %v103_v15 = vmax.f32 %v87_v6, 0.0  ;;  %v104_v16 = vmax.f32 %v88_v8, 0.0  ;;  %v105_v17 = vmax.f32 %v89_v9, 0.0 }
  0x14   :  { %v219_v18 = vpack.c.bf16 %v100_v10, %v100_v10  ;;  %v220_v1 = vpack.c.bf16 %v101_v11, %v101_v11  ;;  %v106_v19 = vmax.f32 %v90_v12, 0.0  ;;  %v107_v20 = vmax.f32 %v91_v13, 0.0 }
  0x15   :  { %v221_v21 = vpack.c.bf16 %v102_v14, %v102_v14  ;;  %v222_v22 = vpack.c.bf16 %v103_v15, %v103_v15  ;;  %v223_v23 = vpack.c.bf16 %v104_v16, %v104_v16  ;;  %v224_v24 = vpack.c.bf16 %v105_v17, %v105_v17 }
  0x16   :  { %181 = vst.msk [vmem:[%s419_s3 + $0x20] sm:$0xf] %vm172_vm0, %v219_v18  ;;  %182 = vst.msk [vmem:[%s419_s3 + $0x24] sm:$0xf] %vm172_vm0, %v220_v1  ;;  %v225_v7 = vpack.c.bf16 %v106_v19, %v106_v19  ;;  %v226_v25 = vpack.c.bf16 %v107_v20, %v107_v20 }
  0x17   :  { %183 = vst.msk [vmem:[%s419_s3 + $0x28] sm:$0xf] %vm172_vm0, %v221_v21  ;;  %184 = vst.msk [vmem:[%s419_s3 + $0x2c] sm:$0xf] %vm172_vm0, %v222_v22 }
  0x18   :  { %185 = vst.msk [vmem:[%s419_s3 + $0x30] sm:$0xf] %vm172_vm0, %v223_v23  ;;  %186 = vst.msk [vmem:[%s419_s3 + $0x34] sm:$0xf] %vm172_vm0, %v224_v24 }
  0x19   :  { %187 = vst.msk [vmem:[%s419_s3 + $0x38] sm:$0xf] %vm172_vm0, %v225_v7  ;;  %188 = vst.msk [vmem:[%s419_s3 + $0x3c] sm:$0xf] %vm172_vm0, %v226_v25 }

// kernel: densenet_forward.27
= control target key start
LH: loop header
LB: loop body
LE: loop exit
PB: predicated region body
PF: predicated region fallthrough
CT: control target
= control target key end

     0   :  { %v602_v0 = vmov 0   ;;  %vm16_vm0 = vcmask 130048   ;;  %v603_v3 = vmov 0.0   ;;  %vm213_vm1 = vcmask 154624   ;;  %s822_s1 = inlined_call_operand.vmem [shape: bf16[147,16], index: 1, kind: input, shape index: {}]   ;;  %s823_s0 = inlined_call_operand.vmem [shape: bf16[128,147], index: 0, kind: input, shape index: {}]   ;;  %s824_s2 = inlined_call_operand.vmem [shape: bf16[128,16], index: 2, kind: output, shape index: {}]  }
   0x1   :  { %245 = vmatprep.subr.bf16.mxu0 %v602_v0  ;;  %545 = vmatprep.subr.bf16.mxu1 %v602_v0  ;;  %v568_v1 = vld [vmem:[%s822_s1] sm:$0xff]   ;;  %v569_v2 = vld [vmem:[%s822_s1 + $0x8] sm:$0xff]   ;;  %17 = vst.msk [vmem:[#allocation2] sm:$0xff] %vm16_vm0, %v603_v3  ;;  %18 = vst.msk [vmem:[#allocation2 + $0x8] sm:$0xff] %vm16_vm0, %v603_v3  ;;  %vm238_vm2 = vcmask 1040384   ;;  %vm239_vm3 = vcmask 1041408  }
   0x2   :  { %246 = vmatpush1.bf16.msra.mxu0 %v568_v1  ;;  %555 = vmatpush1.bf16.msra.mxu1 %v568_v1  ;;  %19 = vst.msk [vmem:[#allocation2 + $0x10] sm:$0xff] %vm16_vm0, %v603_v3  ;;  %20 = vst.msk [vmem:[#allocation2 + $0x18] sm:$0xff] %vm16_vm0, %v603_v3  ;;  %v570_v4 = vld [vmem:[%s822_s1 + $0x10] sm:$0xff]   ;;  %v571_v5 = vld [vmem:[%s822_s1 + $0x18] sm:$0xff]   ;;  %v604_v12 = vmov 65535   ;;  %vm458_vm4 = vcmask 125952  }
   0x3   :  { %247 = vmatprep.subr.bf16.mxu0 %v602_v0  ;;  %546 = vmatprep.subr.bf16.mxu1 %v602_v0  ;;  %21 = vst.msk [vmem:[#allocation2 + $0x20] sm:$0xff] %vm16_vm0, %v603_v3  ;;  %22 = vst.msk [vmem:[#allocation2 + $0x28] sm:$0xff] %vm16_vm0, %v603_v3  ;;  %v580_v6 = vld [vmem:[%s823_s0 + $0x4] ss:$8 sps:$4 sm:$0xff]   ;;  %v574_v10 = vld [vmem:[%s822_s1 + $0x30] sm:$0xff]   ;;  %v240_v13 = vsel %vm238_vm2, 4294967295, %v604_v12 }
   0x4   :  { %23 = vst.msk [vmem:[#allocation2 + $0x30] sm:$0xff] %vm16_vm0, %v603_v3  ;;  %24 = vst.msk [vmem:[#allocation2 + $0x38] sm:$0xff] %vm16_vm0, %v603_v3  ;;  %505 = vmatprep.mubr.msk.bf16.mxu0 %vm213_vm1, %v580_v6  ;;  %v583_v7 = vld [vmem:[%s823_s0 + $0x44] ss:$8 sps:$4 sm:$0xff]   ;;  %v575_v11 = vld [vmem:[%s822_s1 + $0x38] sm:$0xff]   ;;  %v241_v16 = vsel %vm239_vm3, %v240_v13, 0 }
   0x5   :  { %25 = vst.msk [vmem:[#allocation2 + $0x40] sm:$0xff] %vm16_vm0, %v603_v3  ;;  %26 = vst.msk [vmem:[#allocation2 + $0x48] sm:$0xff] %vm16_vm0, %v603_v3  ;;  %v572_v8 = vld [vmem:[%s822_s1 + $0x20] sm:$0xff]   ;;  %509 = vmatprep.mubr.msk.bf16.mxu1 %vm213_vm1, %v583_v7  ;;  %v573_v9 = vld [vmem:[%s822_s1 + $0x28] sm:$0xff]  }
   0x6   :  { %27 = vst.msk [vmem:[#allocation2 + $0x50] sm:$0xff] %vm16_vm0, %v603_v3  ;;  %28 = vst.msk [vmem:[#allocation2 + $0x58] sm:$0xff] %vm16_vm0, %v603_v3  ;;  %248 = vmatpush1.bf16.msra.mxu0 %v569_v2  ;;  %556 = vmatpush1.bf16.msra.mxu1 %v569_v2  ;;  %v576_v14 = vld [vmem:[%s822_s1 + $0x40] sm:$0xff]   ;;  %v577_v15 = vld [vmem:[%s822_s1 + $0x48] ss:$0 sps:$4 sm:$0x33]  }
   0x7   :  { %29 = vst.msk [vmem:[#allocation2 + $0x60] sm:$0xff] %vm16_vm0, %v603_v3  ;;  %30 = vst.msk [vmem:[#allocation2 + $0x68] sm:$0xff] %vm16_vm0, %v603_v3  ;;  %249 = vmatprep.subr.bf16.mxu0 %v602_v0  ;;  %547 = vmatprep.subr.bf16.mxu1 %v602_v0  ;;  %v243_v17 = vand.u32 %v577_v15, %v241_v16  ;;  %v578_v18 = vld [vmem:[%s823_s0] ss:$8 sps:$4 sm:$0xff]   ;;  %v584_v20 = vld [vmem:[%s823_s0 + $0x14] ss:$8 sps:$4 sm:$0xff]  }
   0x8   :  { %31 = vst.msk [vmem:[#allocation2 + $0x70] sm:$0xff] %vm16_vm0, %v603_v3  ;;  %32 = vst.msk [vmem:[#allocation2 + $0x78] sm:$0xff] %vm16_vm0, %v603_v3  ;;  %v581_v19 = vld [vmem:[%s823_s0 + $0x40] ss:$8 sps:$4 sm:$0xff]   ;;  %v586_v21 = vld [vmem:[%s823_s0 + $0x54] ss:$8 sps:$4 sm:$0xff]  }
   0x9   :  { %v588_v22 = vld [vmem:[%s823_s0 + $0x10] ss:$8 sps:$4 sm:$0xff]   ;;  %v590_v24 = vld [vmem:[%s823_s0 + $0x24] ss:$8 sps:$4 sm:$0xff]   ;;  %v594_v26 = vld [vmem:[%s823_s0 + $0x20] ss:$8 sps:$4 sm:$0xff]  }
   0xa   :  { %250 = vmatpush1.bf16.msra.mxu0 %v570_v4  ;;  %557 = vmatpush1.bf16.msra.mxu1 %v570_v4  ;;  %v589_v23 = vld [vmem:[%s823_s0 + $0x50] ss:$8 sps:$4 sm:$0xff]   ;;  %v592_v25 = vld [vmem:[%s823_s0 + $0x64] ss:$8 sps:$4 sm:$0xff]   ;;  %v595_v27 = vld [vmem:[%s823_s0 + $0x60] ss:$8 sps:$4 sm:$0xff]  }
   0xb   :  { %251 = vmatprep.subr.bf16.mxu0 %v602_v0  ;;  %548 = vmatprep.subr.bf16.mxu1 %v602_v0  ;;  %v596_v28 = vld [vmem:[%s823_s0 + $0x34] ss:$8 sps:$4 sm:$0xff]   ;;  %v600_v30 = vld [vmem:[%s823_s0 + $0x30] ss:$8 sps:$4 sm:$0xff]   ;;  %v33_v32 = vld [vmem:[#allocation2] sm:$0xff] }
   0xc   :  { %v598_v29 = vld [vmem:[%s823_s0 + $0x74] ss:$8 sps:$4 sm:$0xff]   ;;  %v601_v31 = vld [vmem:[%s823_s0 + $0x70] ss:$8 sps:$4 sm:$0xff]   ;;  %v41_v33 = vld [vmem:[#allocation2 + $0x40] sm:$0xff] }
   0xd   :  { %v34_v36 = vld [vmem:[#allocation2 + $0x8] sm:$0xff]  ;;  %v35_v48 = vld [vmem:[#allocation2 + $0x10] sm:$0xff]  ;;  %v36_v52 = vld [vmem:[#allocation2 + $0x18] sm:$0xff] }
   0xe   :  { %252 = vmatpush1.bf16.msra.mxu0 %v571_v5  ;;  %558 = vmatpush1.bf16.msra.mxu1 %v571_v5  ;;  %v42_v37 = vld [vmem:[#allocation2 + $0x48] sm:$0xff]  ;;  %v43_v49 = vld [vmem:[#allocation2 + $0x50] sm:$0xff]  ;;  %v44_v53 = vld [vmem:[#allocation2 + $0x58] sm:$0xff] }
   0xf   :  { %253 = vmatprep.subr.bf16.mxu0 %v602_v0  ;;  %549 = vmatprep.subr.bf16.mxu1 %v602_v0  ;;  %v38_v12 = vld [vmem:[#allocation2 + $0x28] sm:$0xff] }
  0x10   :  { %v46_v13 = vld [vmem:[#allocation2 + $0x68] sm:$0xff] }
  0x12   :  { %254 = vmatpush1.bf16.msra.mxu0 %v572_v8  ;;  %559 = vmatpush1.bf16.msra.mxu1 %v572_v8  ;;  %v37_v8 = vld [vmem:[#allocation2 + $0x20] sm:$0xff] }
  0x13   :  { %255 = vmatprep.subr.bf16.mxu0 %v602_v0  ;;  %550 = vmatprep.subr.bf16.mxu1 %v602_v0 }
  0x16   :  { %256 = vmatpush1.bf16.msra.mxu0 %v573_v9  ;;  %560 = vmatpush1.bf16.msra.mxu1 %v573_v9  ;;  %v45_v9 = vld [vmem:[#allocation2 + $0x60] sm:$0xff] }
  0x17   :  { %257 = vmatprep.subr.bf16.mxu0 %v602_v0  ;;  %551 = vmatprep.subr.bf16.mxu1 %v602_v0 }
  0x1a   :  { %258 = vmatpush1.bf16.msra.mxu0 %v574_v10  ;;  %561 = vmatpush1.bf16.msra.mxu1 %v574_v10 }
  0x1b   :  { %259 = vmatprep.subr.bf16.mxu0 %v602_v0  ;;  %552 = vmatprep.subr.bf16.mxu1 %v602_v0 }
  0x1e   :  { %260 = vmatpush1.bf16.msra.mxu0 %v575_v11  ;;  %562 = vmatpush1.bf16.msra.mxu1 %v575_v11 }
  0x1f   :  { %261 = vmatprep.subr.bf16.mxu0 %v602_v0  ;;  %553 = vmatprep.subr.bf16.mxu1 %v602_v0 }
  0x22   :  { %262 = vmatpush1.bf16.msra.mxu0 %v576_v14  ;;  %563 = vmatpush1.bf16.msra.mxu1 %v576_v14 }
  0x23   :  { %263 = vmatprep.subr.bf16.mxu0 %v602_v0  ;;  %554 = vmatprep.subr.bf16.mxu1 %v602_v0 }
  0x26   :  { %264 = vmatpush1.bf16.msra.mxu0 %v243_v17  ;;  %564 = vmatpush1.bf16.msra.mxu1 %v243_v17 }
  0x29   :  { %278 = vmatmul.mubr.bf16.vlgmr.msra.gmra.mrb[0].mxu0 %v578_v18  ;;  %310 = vmatmul.mubr.bf16.vlgmr.msra.gmra.mrb[0].mxu1 %v581_v19 }
  0x2a   :  { %506 = vmatprep.mubr.msk.bf16.mxu0 %vm213_vm1, %v584_v20  ;;  %510 = vmatprep.mubr.msk.bf16.mxu1 %vm213_vm1, %v586_v21 }
  0x31   :  { %286 = vmatmul.mubr.bf16.gmra.mrb[4].mxu0 %v588_v22  ;;  %318 = vmatmul.mubr.bf16.gmra.mrb[4].mxu1 %v589_v23 }
  0x32   :  { %507 = vmatprep.mubr.msk.bf16.mxu0 %vm213_vm1, %v590_v24  ;;  %511 = vmatprep.mubr.msk.bf16.mxu1 %vm213_vm1, %v592_v25 }
  0x39   :  { %294 = vmatmul.mubr.bf16.gmra.mrb[8].mxu0 %v594_v26  ;;  %326 = vmatmul.mubr.bf16.gmra.mrb[8].mxu1 %v595_v27 }
  0x3a   :  { %508 = vmatprep.mubr.msk.bf16.mxu0 %vm213_vm1, %v596_v28  ;;  %512 = vmatprep.mubr.msk.bf16.mxu1 %vm213_vm1, %v598_v29 }
  0x41   :  { %302 = vmatmul.mubr.bf16.gmra.mrb[12].mxu0 %v600_v30  ;;  %334 = vmatmul.mubr.bf16.gmra.mrb[12].mxu1 %v601_v31 }
  0xfc   :  { %v279_v34 = vpop.f32.mrb[0].mxu0  ;;  %v311_v35 = vpop.f32.mrb[0].mxu1 }
  0xfd   :  { %v342_v38 = vadd.f32 %v279_v34, %v33_v32  ;;  %v350_v39 = vadd.f32 %v311_v35, %v41_v33  ;;  %v281_v40 = vpop.f32.mrb[1].mxu0  ;;  %v313_v41 = vpop.f32.mrb[1].mxu1  ;;  %v39_v32 = vld [vmem:[#allocation2 + $0x30] sm:$0xff] }
  0xfe   :  { %v282_v42 = vpop.f32.mrb[2].mxu0  ;;  %v314_v43 = vpop.f32.mrb[2].mxu1  ;;  %v47_v33 = vld [vmem:[#allocation2 + $0x70] sm:$0xff] }
  0xff   :  { %359 = vst.msk [vmem:[#allocation2] sm:$0xff] %vm16_vm0, %v342_v38  ;;  %367 = vst.msk [vmem:[#allocation2 + $0x40] sm:$0xff] %vm16_vm0, %v350_v39  ;;  %v343_v44 = vadd.f32 %v282_v42, %v34_v36  ;;  %v351_v45 = vadd.f32 %v314_v43, %v42_v37  ;;  %v284_v46 = vpop.f32.mrb[3].mxu0  ;;  %v316_v47 = vpop.f32.mrb[3].mxu1  ;;  %v40_v36 = vld [vmem:[#allocation2 + $0x38] sm:$0xff] }
 0x100   :  { %v48_v37 = vld [vmem:[#allocation2 + $0x78] sm:$0xff] }
 0x101   :  { %360 = vst.msk [vmem:[#allocation2 + $0x8] sm:$0xff] %vm16_vm0, %v343_v44  ;;  %368 = vst.msk [vmem:[#allocation2 + $0x48] sm:$0xff] %vm16_vm0, %v351_v45 }
 0x104   :  { %v287_v50 = vpop.f32.mrb[4].mxu0  ;;  %v319_v51 = vpop.f32.mrb[4].mxu1 }
 0x105   :  { %v344_v54 = vadd.f32 %v287_v50, %v35_v48  ;;  %v352_v55 = vadd.f32 %v319_v51, %v43_v49  ;;  %v289_v56 = vpop.f32.mrb[5].mxu0  ;;  %v321_v57 = vpop.f32.mrb[5].mxu1 }
 0x106   :  { %v378_v58 = vld [vmem:[#allocation2] sm:$0xff]  ;;  %v290_v60 = vpop.f32.mrb[6].mxu0  ;;  %v322_v61 = vpop.f32.mrb[6].mxu1 }
 0x107   :  { %v386_v59 = vld [vmem:[#allocation2 + $0x40] sm:$0xff]  ;;  %v529_v62 = vpack.c.bf16 %v378_v58, %v378_v58  ;;  %361 = vst.msk [vmem:[#allocation2 + $0x10] sm:$0xff] %vm16_vm0, %v344_v54  ;;  %369 = vst.msk [vmem:[#allocation2 + $0x50] sm:$0xff] %vm16_vm0, %v352_v55  ;;  %v345_v0 = vadd.f32 %v290_v60, %v36_v52  ;;  %v353_v1 = vadd.f32 %v322_v61, %v44_v53  ;;  %v292_v2 = vpop.f32.mrb[7].mxu0  ;;  %v324_v3 = vpop.f32.mrb[7].mxu1 }
 0x108   :  { %v537_v63 = vpack.c.bf16 %v386_v59, %v386_v59  ;;  %v379_v4 = vld [vmem:[#allocation2 + $0x8] sm:$0xff] }
 0x109   :  { %v387_v5 = vld [vmem:[#allocation2 + $0x48] sm:$0xff]  ;;  %459 = vst.msk [vmem:[%s824_s2] sm:$0xf] %vm458_vm4, %v529_v62  ;;  %v530_v6 = vpack.c.bf16 %v379_v4, %v379_v4 }
 0x10a   :  { %467 = vst.msk [vmem:[%s824_s2 + $0x20] sm:$0xf] %vm458_vm4, %v537_v63  ;;  %v538_v7 = vpack.c.bf16 %v387_v5, %v387_v5 }
 0x10b   :  { %362 = vst.msk [vmem:[#allocation2 + $0x18] sm:$0xff] %vm16_vm0, %v345_v0  ;;  %370 = vst.msk [vmem:[#allocation2 + $0x58] sm:$0xff] %vm16_vm0, %v353_v1 }
 0x10c   :  { %460 = vst.msk [vmem:[%s824_s2 + $0x4] sm:$0xf] %vm458_vm4, %v530_v6  ;;  %468 = vst.msk [vmem:[%s824_s2 + $0x24] sm:$0xf] %vm458_vm4, %v538_v7  ;;  %v295_v10 = vpop.f32.mrb[8].mxu0  ;;  %v327_v11 = vpop.f32.mrb[8].mxu1 }
 0x10d   :  { %v346_v14 = vadd.f32 %v295_v10, %v37_v8  ;;  %v354_v15 = vadd.f32 %v327_v11, %v45_v9  ;;  %v297_v16 = vpop.f32.mrb[9].mxu0  ;;  %v329_v17 = vpop.f32.mrb[9].mxu1 }
 0x10e   :  { %v380_v18 = vld [vmem:[#allocation2 + $0x10] sm:$0xff]  ;;  %v298_v20 = vpop.f32.mrb[10].mxu0  ;;  %v330_v21 = vpop.f32.mrb[10].mxu1 }
 0x10f   :  { %v388_v19 = vld [vmem:[#allocation2 + $0x50] sm:$0xff]  ;;  %v531_v22 = vpack.c.bf16 %v380_v18, %v380_v18  ;;  %363 = vst.msk [vmem:[#allocation2 + $0x20] sm:$0xff] %vm16_vm0, %v346_v14  ;;  %371 = vst.msk [vmem:[#allocation2 + $0x60] sm:$0xff] %vm16_vm0, %v354_v15  ;;  %v347_v24 = vadd.f32 %v298_v20, %v38_v12  ;;  %v355_v25 = vadd.f32 %v330_v21, %v46_v13  ;;  %v300_v26 = vpop.f32.mrb[11].mxu0  ;;  %v332_v27 = vpop.f32.mrb[11].mxu1 }
 0x110   :  { %v539_v23 = vpack.c.bf16 %v388_v19, %v388_v19 }
 0x111   :  { %461 = vst.msk [vmem:[%s824_s2 + $0x8] sm:$0xf] %vm458_vm4, %v531_v22 }
 0x112   :  { %v381_v28 = vld [vmem:[#allocation2 + $0x18] sm:$0xff]  ;;  %469 = vst.msk [vmem:[%s824_s2 + $0x28] sm:$0xf] %vm458_vm4, %v539_v23 }
 0x113   :  { %v389_v29 = vld [vmem:[#allocation2 + $0x58] sm:$0xff]  ;;  %v532_v30 = vpack.c.bf16 %v381_v28, %v381_v28  ;;  %364 = vst.msk [vmem:[#allocation2 + $0x28] sm:$0xff] %vm16_vm0, %v347_v24  ;;  %372 = vst.msk [vmem:[#allocation2 + $0x68] sm:$0xff] %vm16_vm0, %v355_v25 }
 0x114   :  { %v540_v31 = vpack.c.bf16 %v389_v29, %v389_v29  ;;  %v303_v34 = vpop.f32.mrb[12].mxu0  ;;  %v335_v35 = vpop.f32.mrb[12].mxu1 }
 0x115   :  { %462 = vst.msk [vmem:[%s824_s2 + $0xc] sm:$0xf] %vm458_vm4, %v532_v30  ;;  %v348_v38 = vadd.f32 %v303_v34, %v39_v32  ;;  %v356_v39 = vadd.f32 %v335_v35, %v47_v33  ;;  %v305_v40 = vpop.f32.mrb[13].mxu0  ;;  %v337_v41 = vpop.f32.mrb[13].mxu1 }
 0x116   :  { %470 = vst.msk [vmem:[%s824_s2 + $0x2c] sm:$0xf] %vm458_vm4, %v540_v31  ;;  %v382_v42 = vld [vmem:[#allocation2 + $0x20] sm:$0xff]  ;;  %v306_v44 = vpop.f32.mrb[14].mxu0  ;;  %v338_v45 = vpop.f32.mrb[14].mxu1 }
 0x117   :  { %v390_v43 = vld [vmem:[#allocation2 + $0x60] sm:$0xff]  ;;  %v533_v46 = vpack.c.bf16 %v382_v42, %v382_v42  ;;  %365 = vst.msk [vmem:[#allocation2 + $0x30] sm:$0xff] %vm16_vm0, %v348_v38  ;;  %373 = vst.msk [vmem:[#allocation2 + $0x70] sm:$0xff] %vm16_vm0, %v356_v39  ;;  %v349_v48 = vadd.f32 %v306_v44, %v40_v36  ;;  %v357_v49 = vadd.f32 %v338_v45, %v48_v37  ;;  %v308_v50 = vpop.f32.mrb[15].mxu0  ;;  %v340_v51 = vpop.f32.mrb[15].mxu1 }
 0x118   :  { %v541_v47 = vpack.c.bf16 %v390_v43, %v390_v43 }
 0x119   :  { %463 = vst.msk [vmem:[%s824_s2 + $0x10] sm:$0xf] %vm458_vm4, %v533_v46 }
 0x11a   :  { %v383_v52 = vld [vmem:[#allocation2 + $0x28] sm:$0xff]  ;;  %471 = vst.msk [vmem:[%s824_s2 + $0x30] sm:$0xf] %vm458_vm4, %v541_v47 }
 0x11b   :  { %v391_v53 = vld [vmem:[#allocation2 + $0x68] sm:$0xff]  ;;  %v534_v54 = vpack.c.bf16 %v383_v52, %v383_v52  ;;  %366 = vst.msk [vmem:[#allocation2 + $0x38] sm:$0xff] %vm16_vm0, %v349_v48  ;;  %374 = vst.msk [vmem:[#allocation2 + $0x78] sm:$0xff] %vm16_vm0, %v357_v49 }
 0x11c   :  { %v542_v55 = vpack.c.bf16 %v391_v53, %v391_v53 }
 0x11d   :  { %464 = vst.msk [vmem:[%s824_s2 + $0x14] sm:$0xf] %vm458_vm4, %v534_v54 }
 0x11e   :  { %472 = vst.msk [vmem:[%s824_s2 + $0x34] sm:$0xf] %vm458_vm4, %v542_v55  ;;  %v384_v56 = vld [vmem:[#allocation2 + $0x30] sm:$0xff] }
 0x11f   :  { %v392_v57 = vld [vmem:[#allocation2 + $0x70] sm:$0xff]  ;;  %v535_v58 = vpack.c.bf16 %v384_v56, %v384_v56 }
 0x120   :  { %v543_v59 = vpack.c.bf16 %v392_v57, %v392_v57 }
 0x121   :  { %465 = vst.msk [vmem:[%s824_s2 + $0x18] sm:$0xf] %vm458_vm4, %v535_v58 }
 0x122   :  { %v385_v60 = vld [vmem:[#allocation2 + $0x38] sm:$0xff]  ;;  %473 = vst.msk [vmem:[%s824_s2 + $0x38] sm:$0xf] %vm458_vm4, %v543_v59 }
 0x123   :  { %v393_v61 = vld [vmem:[#allocation2 + $0x78] sm:$0xff]  ;;  %v536_v62 = vpack.c.bf16 %v385_v60, %v385_v60 }
 0x124   :  { %v544_v63 = vpack.c.bf16 %v393_v61, %v393_v61 }
 0x125   :  { %466 = vst.msk [vmem:[%s824_s2 + $0x1c] sm:$0xf] %vm458_vm4, %v536_v62 }
 0x126   :  { %474 = vst.msk [vmem:[%s824_s2 + $0x3c] sm:$0xf] %vm458_vm4, %v544_v63 }

// kernel: densenet_forward.30
= control target key start
LH: loop header
LB: loop body
LE: loop exit
PB: predicated region body
PF: predicated region fallthrough
CT: control target
= control target key end

     0   :  { %vm14_vm0 = vcmask 122880   ;;  %v81_v0 = vmov 0.0   ;;  %vm26_vm1 = vcmask 130048   ;;  %s133_s0 = inlined_call_operand.vmem [shape: bf16[32,16], index: 0, kind: input, shape index: {}]   ;;  %s134_s1 = inlined_call_operand.vmem [shape: f32[1,16], index: 1, kind: output, shape index: {0}]   ;;  %s135_s2 = inlined_call_operand.vmem [shape: f32[1,16], index: 2, kind: output, shape index: {1}]  }
   0x1   :  { %15 = vst.msk [vmem:[%s134_s1] sm:$0x1] %vm14_vm0, %v81_v0  ;;  %v72_v1 = vld [vmem:[%s133_s0] sm:$0xff]   ;;  %v79_v2 = vld [vmem:[%s133_s0 + $0x8] sm:$0xff]   ;;  %16 = vst.msk [vmem:[%s135_s2] sm:$0x1] %vm14_vm0, %v81_v0 }
   0x2   :  { %v73_v3 = vunpack.c.l.bf16 %v72_v1  ;;  %v74_v4 = vunpack.c.h.bf16 %v72_v1  ;;  %v77_v5 = vunpack.c.l.bf16 %v79_v2  ;;  %v78_v6 = vunpack.c.h.bf16 %v79_v2 }
   0x4   :  { %v27_v7 = vsel %vm26_vm1, %v73_v3, 0.0  ;;  %v28_v8 = vsel %vm26_vm1, %v74_v4, 0.0  ;;  %v30_v9 = vsel %vm26_vm1, %v77_v5, 0.0  ;;  %v44_v11 = vmul.f32 %v73_v3, %v73_v3 }
   0x5   :  { %v29_v10 = vadd.f32 %v28_v8, %v27_v7  ;;  %v45_v12 = vmul.f32 %v74_v4, %v74_v4  ;;  %v46_v13 = vmul.f32 %v77_v5, %v77_v5  ;;  %v32_v14 = vsel %vm26_vm1, %v78_v6, 0.0 }
   0x6   :  { %v47_v15 = vmul.f32 %v78_v6, %v78_v6  ;;  %v48_v17 = vsel %vm26_vm1, %v44_v11, 0.0 }
   0x7   :  { %v31_v16 = vadd.f32 %v30_v9, %v29_v10  ;;  %v49_v18 = vsel %vm26_vm1, %v45_v12, 0.0  ;;  %v51_v19 = vsel %vm26_vm1, %v46_v13, 0.0 }
   0x8   :  { %v50_v20 = vadd.f32 %v49_v18, %v48_v17  ;;  %v53_v22 = vsel %vm26_vm1, %v47_v15, 0.0  ;;  %v25_v33 = vld [vmem:[%s134_s1] sm:$0x1] }
   0x9   :  { %v33_v21 = vadd.f32 %v32_v14, %v31_v16  ;;  %v43_v38 = vld [vmem:[%s135_s2] sm:$0x1] }
   0xa   :  { %v52_v23 = vadd.f32 %v51_v19, %v50_v20 }
   0xb   :  { %v34_v24 = vrot.slane %v33_v21, 4 }
   0xc   :  { %v54_v25 = vadd.f32 %v53_v22, %v52_v23 }
   0xd   :  { %v35_v26 = vadd.f32 %v34_v24, %v33_v21 }
   0xe   :  { %v55_v27 = vrot.slane %v54_v25, 4 }
   0xf   :  { %v36_v28 = vrot.slane %v35_v26, 2 }
  0x10   :  { %v56_v29 = vadd.f32 %v55_v27, %v54_v25 }
  0x11   :  { %v37_v30 = vadd.f32 %v36_v28, %v35_v26 }
  0x12   :  { %v57_v31 = vrot.slane %v56_v29, 2 }
  0x13   :  { %v38_v32 = vrot.slane %v37_v30, 1 }
  0x14   :  { %v58_v34 = vadd.f32 %v57_v31, %v56_v29 }
  0x15   :  { %v39_v35 = vadd.f32 %v38_v32, %v37_v30 }
  0x16   :  { %v59_v36 = vrot.slane %v58_v34, 1 }
  0x17   :  { %v40_v37 = vadd.f32 %v39_v35, %v25_v33 }
  0x18   :  { %v60_v39 = vadd.f32 %v59_v36, %v58_v34 }
  0x19   :  { %42 = vst.msk [vmem:[%s134_s1] sm:$0x1] %vm14_vm0, %v40_v37 }
  0x1a   :  { %v61_v40 = vadd.f32 %v60_v39, %v43_v38 }
  0x1c   :  { %62 = vst.msk [vmem:[%s135_s2] sm:$0x1] %vm14_vm0, %v61_v40 }

// kernel: densenet_forward.33
= control target key start
LH: loop header
LB: loop body
LE: loop exit
PB: predicated region body
PF: predicated region fallthrough
CT: control target
= control target key end

     0   :  { %vm64_vm0 = vcmask 125952   ;;  %s136_s0 = inlined_call_operand.vmem [shape: bf16[32,16], index: 0, kind: input, shape index: {}]   ;;  %s137_s1 = inlined_call_operand.vmem [shape: f32[1,16], index: 1, kind: input, shape index: {}]   ;;  %s138_s2 = inlined_call_operand.vmem [shape: f32[1,16], index: 2, kind: input, shape index: {}]   ;;  %s139_s3 = inlined_call_operand.vmem [shape: bf16[32,16], index: 3, kind: output, shape index: {}]  }
   0x1   :  { %v84_v0 = vld [vmem:[%s136_s0] sm:$0xff]   ;;  %v91_v4 = vld [vmem:[%s136_s0 + $0x8] sm:$0xff]  }
   0x2   :  { %v73_v1 = vld [vmem:[%s137_s1] ss:$0 sm:$0xff]  ;;  %v85_v2 = vunpack.c.l.bf16 %v84_v0  ;;  %v86_v3 = vunpack.c.h.bf16 %v84_v0  ;;  %v89_v6 = vunpack.c.l.bf16 %v91_v4  ;;  %v90_v7 = vunpack.c.h.bf16 %v91_v4 }
   0x3   :  { %v74_v5 = vld [vmem:[%s138_s2] ss:$0 sm:$0xff] }
   0x4   :  { %v29_v8 = vmul.f32 %v85_v2, %v73_v1  ;;  %v30_v9 = vmul.f32 %v86_v3, %v73_v1  ;;  %v31_v10 = vmul.f32 %v89_v6, %v73_v1  ;;  %v32_v11 = vmul.f32 %v90_v7, %v73_v1 }
   0x6   :  { %v40_v12 = vadd.f32 %v74_v5, %v29_v8  ;;  %v41_v13 = vadd.f32 %v74_v5, %v30_v9  ;;  %v42_v14 = vadd.f32 %v74_v5, %v31_v10  ;;  %v43_v15 = vadd.f32 %v74_v5, %v32_v11 }
   0x8   :  { %v44_v16 = vmax.f32 %v40_v12, 0.0  ;;  %v45_v17 = vmax.f32 %v41_v13, 0.0  ;;  %v46_v18 = vmax.f32 %v42_v14, 0.0  ;;  %v47_v19 = vmax.f32 %v43_v15, 0.0 }
   0xa   :  { %v79_v20 = vpack.c.bf16 %v44_v16, %v44_v16  ;;  %v80_v21 = vpack.c.bf16 %v45_v17, %v45_v17  ;;  %v81_v22 = vpack.c.bf16 %v46_v18, %v46_v18  ;;  %v82_v23 = vpack.c.bf16 %v47_v19, %v47_v19 }
   0xc   :  { %65 = vst.msk [vmem:[%s139_s3] sm:$0xf] %vm64_vm0, %v79_v20  ;;  %66 = vst.msk [vmem:[%s139_s3 + $0x4] sm:$0xf] %vm64_vm0, %v80_v21 }
   0xd   :  { %67 = vst.msk [vmem:[%s139_s3 + $0x8] sm:$0xf] %vm64_vm0, %v81_v22  ;;  %68 = vst.msk [vmem:[%s139_s3 + $0xc] sm:$0xf] %vm64_vm0, %v82_v23 }

// kernel: densenet_forward.31
= control target key start
LH: loop header
LB: loop body
LE: loop exit
PB: predicated region body
PF: predicated region fallthrough
CT: control target
= control target key end

     0   :  { %vm22_vm0 = vcmask 130048   ;;  %v204_v1 = vmov 0.0   ;;  %vm162_vm1 = vcmask 125952   ;;  %s267_s1 = inlined_call_operand.vmem [shape: bf16[16,16], index: 1, kind: input, shape index: {}]   ;;  %s268_s0 = inlined_call_operand.vmem [shape: bf16[32,16], index: 0, kind: input, shape index: {}]   ;;  %s269_s2 = inlined_call_operand.vmem [shape: f32[1,16], index: 2, kind: input, shape index: {}]   ;;  %s270_s3 = inlined_call_operand.vmem [shape: f32[1,16], index: 3, kind: input, shape index: {}]   ;;  %s271_s4 = inlined_call_operand.vmem [shape: bf16[32,16], index: 4, kind: output, shape index: {}]  }
   0x1   :  { %v203_v0 = vld [vmem:[%s267_s1] sm:$0xff]   ;;  %25 = vst.msk [vmem:[#allocation2 + $0x10] sm:$0xff] %vm22_vm0, %v204_v1  ;;  %23 = vst.msk [vmem:[#allocation2] sm:$0xff] %vm22_vm0, %v204_v1  ;;  %v192_v3 = vld [vmem:[%s268_s0 + $0x8] sm:$0xff]  }
   0x2   :  { %24 = vst.msk [vmem:[#allocation2 + $0x8] sm:$0xff] %vm22_vm0, %v204_v1  ;;  %26 = vst.msk [vmem:[#allocation2 + $0x18] sm:$0xff] %vm22_vm0, %v204_v1  ;;  %v185_v2 = vld [vmem:[%s268_s0] sm:$0xff]   ;;  %196 = vmatprep.subr.bf16.mxu0 %v203_v0  ;;  %v190_v7 = vunpack.c.l.bf16 %v192_v3  ;;  %v191_v8 = vunpack.c.h.bf16 %v192_v3 }
   0x3   :  { %v171_v4 = vld [vmem:[%s269_s2] ss:$0 sm:$0xff]  ;;  %v186_v5 = vunpack.c.l.bf16 %v185_v2  ;;  %v187_v6 = vunpack.c.h.bf16 %v185_v2  ;;  %197 = vmatpush3.bf16.msra.mxu0 %v203_v0 }
   0x4   :  { %v172_v9 = vld [vmem:[%s270_s3] ss:$0 sm:$0xff]  ;;  %v44_v12 = vmul.f32 %v190_v7, %v171_v4  ;;  %v45_v13 = vmul.f32 %v191_v8, %v171_v4 }
   0x5   :  { %v42_v10 = vmul.f32 %v186_v5, %v171_v4  ;;  %v43_v11 = vmul.f32 %v187_v6, %v171_v4 }
   0x6   :  { %v55_v16 = vadd.f32 %v172_v9, %v44_v12  ;;  %v56_v17 = vadd.f32 %v172_v9, %v45_v13 }
   0x7   :  { %v53_v14 = vadd.f32 %v172_v9, %v42_v10  ;;  %v54_v15 = vadd.f32 %v172_v9, %v43_v11 }
   0x8   :  { %v59_v20 = vmax.f32 %v55_v16, 0.0  ;;  %v60_v21 = vmax.f32 %v56_v17, 0.0  ;;  %v63_v24 = vld [vmem:[#allocation2 + $0x10] sm:$0xff]  ;;  %v61_v25 = vld [vmem:[#allocation2] sm:$0xff] }
   0x9   :  { %v57_v18 = vmax.f32 %v53_v14, 0.0  ;;  %v58_v19 = vmax.f32 %v54_v15, 0.0  ;;  %v64_v27 = vld [vmem:[#allocation2 + $0x18] sm:$0xff]  ;;  %v62_v30 = vld [vmem:[#allocation2 + $0x8] sm:$0xff] }
   0xa   :  { %v66_v23 = vpack.c.bf16 %v60_v21, %v59_v20 }
   0xb   :  { %v65_v22 = vpack.c.bf16 %v58_v19, %v57_v18 }
   0xd   :  { %198 = vmatprep.mubr.msk.bf16.mxu0 %vm22_vm0, %v65_v22 }
   0xe   :  { %199 = vmatmul.mubr.msk.bf16.vlgmr.msra.gmra.mrb[0].mxu0 %vm22_vm0, %v66_v23 }
  0xe1   :  { %v200_v26 = vpop.f32.mrb[0].mxu0 }
  0xe2   :  { %v133_v28 = vadd.f32 %v200_v26, %v63_v24  ;;  %v116_v29 = vpop.f32.mrb[1].mxu0 }
  0xe3   :  { %v131_v31 = vadd.f32 %v116_v29, %v61_v25  ;;  %v201_v32 = vpop.f32.mrb[2].mxu0 }
  0xe4   :  { %137 = vst.msk [vmem:[#allocation2 + $0x10] sm:$0xff] %vm22_vm0, %v133_v28  ;;  %v134_v33 = vadd.f32 %v201_v32, %v64_v27  ;;  %v119_v34 = vpop.f32.mrb[3].mxu0 }
  0xe5   :  { %135 = vst.msk [vmem:[#allocation2] sm:$0xff] %vm22_vm0, %v131_v31  ;;  %v132_v35 = vadd.f32 %v119_v34, %v62_v30 }
  0xe6   :  { %138 = vst.msk [vmem:[#allocation2 + $0x18] sm:$0xff] %vm22_vm0, %v134_v33 }
  0xe7   :  { %136 = vst.msk [vmem:[#allocation2 + $0x8] sm:$0xff] %vm22_vm0, %v132_v35 }
  0xeb   :  { %v144_v36 = vld [vmem:[#allocation2 + $0x10] sm:$0xff] }
  0xec   :  { %v182_v37 = vpack.c.bf16 %v144_v36, %v144_v36  ;;  %v142_v38 = vld [vmem:[#allocation2] sm:$0xff] }
  0xed   :  { %v180_v39 = vpack.c.bf16 %v142_v38, %v142_v38  ;;  %v145_v40 = vld [vmem:[#allocation2 + $0x18] sm:$0xff] }
  0xee   :  { %165 = vst.msk [vmem:[%s271_s4 + $0x8] sm:$0xf] %vm162_vm1, %v182_v37  ;;  %v183_v41 = vpack.c.bf16 %v145_v40, %v145_v40  ;;  %v143_v42 = vld [vmem:[#allocation2 + $0x8] sm:$0xff] }
  0xef   :  { %163 = vst.msk [vmem:[%s271_s4] sm:$0xf] %vm162_vm1, %v180_v39  ;;  %v181_v43 = vpack.c.bf16 %v143_v42, %v143_v42 }
  0xf0   :  { %166 = vst.msk [vmem:[%s271_s4 + $0xc] sm:$0xf] %vm162_vm1, %v183_v41 }
  0xf1   :  { %164 = vst.msk [vmem:[%s271_s4 + $0x4] sm:$0xf] %vm162_vm1, %v181_v43 }

// kernel: densenet_forward.34
= control target key start
LH: loop header
LB: loop body
LE: loop exit
PB: predicated region body
PF: predicated region fallthrough
CT: control target
= control target key end

     0   :  { %vm16_vm0 = vcmask 64512   ;;  %v274_v0 = vmov 0   ;;  %v275_v2 = vmov 0.0   ;;  %vm119_vm1 = vcmask 130048   ;;  %s350_s1 = inlined_call_operand.vmem [shape: bf16[144,8], index: 1, kind: input, shape index: {}]   ;;  %s351_s0 = inlined_call_operand.vmem [shape: bf16[32,144], index: 0, kind: input, shape index: {}]   ;;  %s352_s2 = inlined_call_operand.vmem [shape: bf16[32,8], index: 2, kind: output, shape index: {}]  }
   0x1   :  { %126 = vmatprep.subr.bf16.mxu0 %v274_v0  ;;  %239 = vmatprep.subr.bf16.mxu1 %v274_v0  ;;  %v259_v1 = vld [vmem:[%s350_s1] sm:$0xff]   ;;  %17 = vst.msk [vmem:[#allocation2] sm:$0xff] %vm16_vm0, %v275_v2  ;;  %18 = vst.msk [vmem:[#allocation2 + $0x8] sm:$0xff] %vm16_vm0, %v275_v2  ;;  %v260_v3 = vld [vmem:[%s350_s1 + $0x8] sm:$0xff]   ;;  %vm207_vm2 = vcmask 60416  }
   0x2   :  { %19 = vst.msk [vmem:[#allocation2 + $0x10] sm:$0xff] %vm16_vm0, %v275_v2  ;;  %20 = vst.msk [vmem:[#allocation2 + $0x18] sm:$0xff] %vm16_vm0, %v275_v2  ;;  %127 = vmatpush1.bf16.msra.mxu0 %v259_v1  ;;  %248 = vmatpush1.bf16.msra.mxu1 %v259_v1  ;;  %v261_v4 = vld [vmem:[%s350_s1 + $0x10] sm:$0xff]   ;;  %v262_v5 = vld [vmem:[%s350_s1 + $0x18] sm:$0xff]  }
   0x3   :  { %128 = vmatprep.subr.bf16.mxu0 %v274_v0  ;;  %240 = vmatprep.subr.bf16.mxu1 %v274_v0  ;;  %v270_v6 = vld [vmem:[%s351_s0 + $0x4] ss:$8 sps:$4 sm:$0xff]   ;;  %v273_v7 = vld [vmem:[%s351_s0 + $0x14] ss:$8 sps:$4 sm:$0xff]   ;;  %v268_v13 = vld [vmem:[%s351_s0] ss:$8 sps:$4 sm:$0xff]  }
   0x4   :  { %229 = vmatprep.mubr.msk.bf16.mxu0 %vm119_vm1, %v270_v6  ;;  %230 = vmatprep.mubr.msk.bf16.mxu1 %vm119_vm1, %v273_v7  ;;  %v263_v8 = vld [vmem:[%s350_s1 + $0x20] sm:$0xff]   ;;  %v264_v9 = vld [vmem:[%s350_s1 + $0x28] sm:$0xff]   ;;  %v265_v10 = vld [vmem:[%s350_s1 + $0x30] sm:$0xff]  }
   0x5   :  { %v266_v11 = vld [vmem:[%s350_s1 + $0x38] sm:$0xff]   ;;  %v267_v12 = vld [vmem:[%s350_s1 + $0x40] sm:$0xff]  }
   0x6   :  { %129 = vmatpush1.bf16.msra.mxu0 %v260_v3  ;;  %249 = vmatpush1.bf16.msra.mxu1 %v260_v3  ;;  %v271_v14 = vld [vmem:[%s351_s0 + $0x10] ss:$8 sps:$4 sm:$0xff]  }
   0x7   :  { %130 = vmatprep.subr.bf16.mxu0 %v274_v0  ;;  %241 = vmatprep.subr.bf16.mxu1 %v274_v0 }
   0x8   :  { %v21_v15 = vld [vmem:[#allocation2] sm:$0xff]  ;;  %v22_v19 = vld [vmem:[#allocation2 + $0x8] sm:$0xff] }
   0x9   :  { %v23_v16 = vld [vmem:[#allocation2 + $0x10] sm:$0xff]  ;;  %v24_v20 = vld [vmem:[#allocation2 + $0x18] sm:$0xff] }
   0xa   :  { %131 = vmatpush1.bf16.msra.mxu0 %v261_v4  ;;  %250 = vmatpush1.bf16.msra.mxu1 %v261_v4 }
   0xb   :  { %132 = vmatprep.subr.bf16.mxu0 %v274_v0  ;;  %242 = vmatprep.subr.bf16.mxu1 %v274_v0 }
   0xe   :  { %133 = vmatpush1.bf16.msra.mxu0 %v262_v5  ;;  %251 = vmatpush1.bf16.msra.mxu1 %v262_v5 }
   0xf   :  { %134 = vmatprep.subr.bf16.mxu0 %v274_v0  ;;  %243 = vmatprep.subr.bf16.mxu1 %v274_v0 }
  0x12   :  { %135 = vmatpush1.bf16.msra.mxu0 %v263_v8  ;;  %252 = vmatpush1.bf16.msra.mxu1 %v263_v8 }
  0x13   :  { %136 = vmatprep.subr.bf16.mxu0 %v274_v0  ;;  %244 = vmatprep.subr.bf16.mxu1 %v274_v0 }
  0x16   :  { %137 = vmatpush1.bf16.msra.mxu0 %v264_v9  ;;  %253 = vmatpush1.bf16.msra.mxu1 %v264_v9 }
  0x17   :  { %138 = vmatprep.subr.bf16.mxu0 %v274_v0  ;;  %245 = vmatprep.subr.bf16.mxu1 %v274_v0 }
  0x1a   :  { %139 = vmatpush1.bf16.msra.mxu0 %v265_v10  ;;  %254 = vmatpush1.bf16.msra.mxu1 %v265_v10 }
  0x1b   :  { %140 = vmatprep.subr.bf16.mxu0 %v274_v0  ;;  %246 = vmatprep.subr.bf16.mxu1 %v274_v0 }
  0x1e   :  { %141 = vmatpush1.bf16.msra.mxu0 %v266_v11  ;;  %255 = vmatpush1.bf16.msra.mxu1 %v266_v11 }
  0x1f   :  { %142 = vmatprep.subr.bf16.mxu0 %v274_v0  ;;  %247 = vmatprep.subr.bf16.mxu1 %v274_v0 }
  0x22   :  { %143 = vmatpush1.bf16.msra.mxu0 %v267_v12  ;;  %256 = vmatpush1.bf16.msra.mxu1 %v267_v12 }
  0x25   :  { %159 = vmatmul.mubr.bf16.vlgmr.msra.gmra.mrb[0].mxu0 %v268_v13  ;;  %167 = vmatmul.mubr.bf16.vlgmr.msra.gmra.mrb[0].mxu1 %v271_v14 }
  0xf8   :  { %v160_v17 = vpop.f32.mrb[0].mxu0  ;;  %v168_v18 = vpop.f32.mrb[0].mxu1 }
  0xf9   :  { %v175_v21 = vadd.f32 %v160_v17, %v21_v15  ;;  %v177_v22 = vadd.f32 %v168_v18, %v23_v16  ;;  %v162_v23 = vpop.f32.mrb[1].mxu0  ;;  %v170_v24 = vpop.f32.mrb[1].mxu1 }
  0xfa   :  { %v163_v25 = vpop.f32.mrb[2].mxu0  ;;  %v171_v26 = vpop.f32.mrb[2].mxu1 }
  0xfb   :  { %180 = vst.msk [vmem:[#allocation2] sm:$0xff] %vm16_vm0, %v175_v21  ;;  %182 = vst.msk [vmem:[#allocation2 + $0x10] sm:$0xff] %vm16_vm0, %v177_v22  ;;  %v176_v27 = vadd.f32 %v163_v25, %v22_v19  ;;  %v178_v28 = vadd.f32 %v171_v26, %v24_v20  ;;  %v165_v29 = vpop.f32.mrb[3].mxu0  ;;  %v173_v30 = vpop.f32.mrb[3].mxu1 }
  0xfd   :  { %181 = vst.msk [vmem:[#allocation2 + $0x8] sm:$0xff] %vm16_vm0, %v176_v27  ;;  %183 = vst.msk [vmem:[#allocation2 + $0x18] sm:$0xff] %vm16_vm0, %v178_v28 }
 0x102   :  { %v187_v31 = vld [vmem:[#allocation2] sm:$0xff]  ;;  %v189_v32 = vld [vmem:[#allocation2 + $0x10] sm:$0xff] }
 0x103   :  { %v235_v33 = vpack.c.bf16 %v187_v31, %v187_v31  ;;  %v237_v34 = vpack.c.bf16 %v189_v32, %v189_v32 }
 0x104   :  { %v188_v35 = vld [vmem:[#allocation2 + $0x8] sm:$0xff]  ;;  %v190_v36 = vld [vmem:[#allocation2 + $0x18] sm:$0xff] }
 0x105   :  { %208 = vst.msk [vmem:[%s352_s2] sm:$0xf] %vm207_vm2, %v235_v33  ;;  %210 = vst.msk [vmem:[%s352_s2 + $0x8] sm:$0xf] %vm207_vm2, %v237_v34  ;;  %v236_v37 = vpack.c.bf16 %v188_v35, %v188_v35  ;;  %v238_v38 = vpack.c.bf16 %v190_v36, %v190_v36 }
 0x107   :  { %209 = vst.msk [vmem:[%s352_s2 + $0x4] sm:$0xf] %vm207_vm2, %v236_v37  ;;  %211 = vst.msk [vmem:[%s352_s2 + $0xc] sm:$0xf] %vm207_vm2, %v238_v38 }

// kernel: densenet_forward.35
= control target key start
LH: loop header
LB: loop body
LE: loop exit
PB: predicated region body
PF: predicated region fallthrough
CT: control target
= control target key end

     0   :  { %vm14_vm0 = vcmask 188416   ;;  %v81_v0 = vmov 0.0   ;;  %vm26_vm1 = vcmask 195584   ;;  %s133_s0 = inlined_call_operand.vmem [shape: bf16[32,24], index: 0, kind: input, shape index: {}]   ;;  %s134_s1 = inlined_call_operand.vmem [shape: f32[1,24], index: 1, kind: output, shape index: {0}]   ;;  %s135_s2 = inlined_call_operand.vmem [shape: f32[1,24], index: 2, kind: output, shape index: {1}]  }
   0x1   :  { %15 = vst.msk [vmem:[%s134_s1] sm:$0x1] %vm14_vm0, %v81_v0  ;;  %v72_v1 = vld [vmem:[%s133_s0] sm:$0xff]   ;;  %v79_v2 = vld [vmem:[%s133_s0 + $0x8] sm:$0xff]   ;;  %16 = vst.msk [vmem:[%s135_s2] sm:$0x1] %vm14_vm0, %v81_v0 }
   0x2   :  { %v73_v3 = vunpack.c.l.bf16 %v72_v1  ;;  %v74_v4 = vunpack.c.h.bf16 %v72_v1  ;;  %v77_v5 = vunpack.c.l.bf16 %v79_v2  ;;  %v78_v6 = vunpack.c.h.bf16 %v79_v2 }
   0x4   :  { %v27_v7 = vsel %vm26_vm1, %v73_v3, 0.0  ;;  %v28_v8 = vsel %vm26_vm1, %v74_v4, 0.0  ;;  %v30_v9 = vsel %vm26_vm1, %v77_v5, 0.0  ;;  %v44_v11 = vmul.f32 %v73_v3, %v73_v3 }
   0x5   :  { %v29_v10 = vadd.f32 %v28_v8, %v27_v7  ;;  %v45_v12 = vmul.f32 %v74_v4, %v74_v4  ;;  %v46_v13 = vmul.f32 %v77_v5, %v77_v5  ;;  %v32_v14 = vsel %vm26_vm1, %v78_v6, 0.0 }
   0x6   :  { %v47_v15 = vmul.f32 %v78_v6, %v78_v6  ;;  %v48_v17 = vsel %vm26_vm1, %v44_v11, 0.0 }
   0x7   :  { %v31_v16 = vadd.f32 %v30_v9, %v29_v10  ;;  %v49_v18 = vsel %vm26_vm1, %v45_v12, 0.0  ;;  %v51_v19 = vsel %vm26_vm1, %v46_v13, 0.0 }
   0x8   :  { %v50_v20 = vadd.f32 %v49_v18, %v48_v17  ;;  %v53_v22 = vsel %vm26_vm1, %v47_v15, 0.0  ;;  %v25_v33 = vld [vmem:[%s134_s1] sm:$0x1] }
   0x9   :  { %v33_v21 = vadd.f32 %v32_v14, %v31_v16  ;;  %v43_v38 = vld [vmem:[%s135_s2] sm:$0x1] }
   0xa   :  { %v52_v23 = vadd.f32 %v51_v19, %v50_v20 }
   0xb   :  { %v34_v24 = vrot.slane %v33_v21, 4 }
   0xc   :  { %v54_v25 = vadd.f32 %v53_v22, %v52_v23 }
   0xd   :  { %v35_v26 = vadd.f32 %v34_v24, %v33_v21 }
   0xe   :  { %v55_v27 = vrot.slane %v54_v25, 4 }
   0xf   :  { %v36_v28 = vrot.slane %v35_v26, 2 }
  0x10   :  { %v56_v29 = vadd.f32 %v55_v27, %v54_v25 }
  0x11   :  { %v37_v30 = vadd.f32 %v36_v28, %v35_v26 }
  0x12   :  { %v57_v31 = vrot.slane %v56_v29, 2 }
  0x13   :  { %v38_v32 = vrot.slane %v37_v30, 1 }
  0x14   :  { %v58_v34 = vadd.f32 %v57_v31, %v56_v29 }
  0x15   :  { %v39_v35 = vadd.f32 %v38_v32, %v37_v30 }
  0x16   :  { %v59_v36 = vrot.slane %v58_v34, 1 }
  0x17   :  { %v40_v37 = vadd.f32 %v39_v35, %v25_v33 }
  0x18   :  { %v60_v39 = vadd.f32 %v59_v36, %v58_v34 }
  0x19   :  { %42 = vst.msk [vmem:[%s134_s1] sm:$0x1] %vm14_vm0, %v40_v37 }
  0x1a   :  { %v61_v40 = vadd.f32 %v60_v39, %v43_v38 }
  0x1c   :  { %62 = vst.msk [vmem:[%s135_s2] sm:$0x1] %vm14_vm0, %v61_v40 }

// kernel: densenet_forward.40
= control target key start
LH: loop header
LB: loop body
LE: loop exit
PB: predicated region body
PF: predicated region fallthrough
CT: control target
= control target key end

     0   :  { %vm14_vm0 = vcmask 253952   ;;  %v81_v0 = vmov 0.0   ;;  %vm26_vm1 = vcmask 261120   ;;  %s133_s0 = inlined_call_operand.vmem [shape: bf16[32,32], index: 0, kind: input, shape index: {}]   ;;  %s134_s1 = inlined_call_operand.vmem [shape: f32[1,32], index: 1, kind: output, shape index: {0}]   ;;  %s135_s2 = inlined_call_operand.vmem [shape: f32[1,32], index: 2, kind: output, shape index: {1}]  }
   0x1   :  { %15 = vst.msk [vmem:[%s134_s1] sm:$0x1] %vm14_vm0, %v81_v0  ;;  %v72_v1 = vld [vmem:[%s133_s0] sm:$0xff]   ;;  %v79_v2 = vld [vmem:[%s133_s0 + $0x8] sm:$0xff]   ;;  %16 = vst.msk [vmem:[%s135_s2] sm:$0x1] %vm14_vm0, %v81_v0 }
   0x2   :  { %v73_v3 = vunpack.c.l.bf16 %v72_v1  ;;  %v74_v4 = vunpack.c.h.bf16 %v72_v1  ;;  %v77_v5 = vunpack.c.l.bf16 %v79_v2  ;;  %v78_v6 = vunpack.c.h.bf16 %v79_v2 }
   0x4   :  { %v27_v7 = vsel %vm26_vm1, %v73_v3, 0.0  ;;  %v28_v8 = vsel %vm26_vm1, %v74_v4, 0.0  ;;  %v30_v9 = vsel %vm26_vm1, %v77_v5, 0.0  ;;  %v44_v11 = vmul.f32 %v73_v3, %v73_v3 }
   0x5   :  { %v29_v10 = vadd.f32 %v28_v8, %v27_v7  ;;  %v45_v12 = vmul.f32 %v74_v4, %v74_v4  ;;  %v46_v13 = vmul.f32 %v77_v5, %v77_v5  ;;  %v32_v14 = vsel %vm26_vm1, %v78_v6, 0.0 }
   0x6   :  { %v47_v15 = vmul.f32 %v78_v6, %v78_v6  ;;  %v48_v17 = vsel %vm26_vm1, %v44_v11, 0.0 }
   0x7   :  { %v31_v16 = vadd.f32 %v30_v9, %v29_v10  ;;  %v49_v18 = vsel %vm26_vm1, %v45_v12, 0.0  ;;  %v51_v19 = vsel %vm26_vm1, %v46_v13, 0.0 }
   0x8   :  { %v50_v20 = vadd.f32 %v49_v18, %v48_v17  ;;  %v53_v22 = vsel %vm26_vm1, %v47_v15, 0.0  ;;  %v25_v33 = vld [vmem:[%s134_s1] sm:$0x1] }
   0x9   :  { %v33_v21 = vadd.f32 %v32_v14, %v31_v16  ;;  %v43_v38 = vld [vmem:[%s135_s2] sm:$0x1] }
   0xa   :  { %v52_v23 = vadd.f32 %v51_v19, %v50_v20 }
   0xb   :  { %v34_v24 = vrot.slane %v33_v21, 4 }
   0xc   :  { %v54_v25 = vadd.f32 %v53_v22, %v52_v23 }
   0xd   :  { %v35_v26 = vadd.f32 %v34_v24, %v33_v21 }
   0xe   :  { %v55_v27 = vrot.slane %v54_v25, 4 }
   0xf   :  { %v36_v28 = vrot.slane %v35_v26, 2 }
  0x10   :  { %v56_v29 = vadd.f32 %v55_v27, %v54_v25 }
  0x11   :  { %v37_v30 = vadd.f32 %v36_v28, %v35_v26 }
  0x12   :  { %v57_v31 = vrot.slane %v56_v29, 2 }
  0x13   :  { %v38_v32 = vrot.slane %v37_v30, 1 }
  0x14   :  { %v58_v34 = vadd.f32 %v57_v31, %v56_v29 }
  0x15   :  { %v39_v35 = vadd.f32 %v38_v32, %v37_v30 }
  0x16   :  { %v59_v36 = vrot.slane %v58_v34, 1 }
  0x17   :  { %v40_v37 = vadd.f32 %v39_v35, %v25_v33 }
  0x18   :  { %v60_v39 = vadd.f32 %v59_v36, %v58_v34 }
  0x19   :  { %42 = vst.msk [vmem:[%s134_s1] sm:$0x1] %vm14_vm0, %v40_v37 }
  0x1a   :  { %v61_v40 = vadd.f32 %v60_v39, %v43_v38 }
  0x1c   :  { %62 = vst.msk [vmem:[%s135_s2] sm:$0x1] %vm14_vm0, %v61_v40 }

// kernel: densenet_forward.36
= control target key start
LH: loop header
LB: loop body
LE: loop exit
PB: predicated region body
PF: predicated region fallthrough
CT: control target
= control target key end

     0   :  { %vm22_vm0 = vcmask 130048   ;;  %v219_v0 = vmov 0.0   ;;  %vm86_vm1 = vcmask 1043456   ;;  %vm79_vm2 = vcmask 195584   ;;  %s283_s1 = inlined_call_operand.vmem [shape: bf16[24,16], index: 1, kind: input, shape index: {}]   ;;  %s284_s0 = inlined_call_operand.vmem [shape: bf16[32,24], index: 0, kind: input, shape index: {}]   ;;  %s285_s2 = inlined_call_operand.vmem [shape: f32[1,24], index: 2, kind: input, shape index: {}]   ;;  %s286_s3 = inlined_call_operand.vmem [shape: f32[1,24], index: 3, kind: input, shape index: {}]   ;;  %s287_s4 = inlined_call_operand.vmem [shape: bf16[32,16], index: 4, kind: output, shape index: {}]  }
   0x1   :  { %25 = vst.msk [vmem:[#allocation2 + $0x10] sm:$0xff] %vm22_vm0, %v219_v0  ;;  %23 = vst.msk [vmem:[#allocation2] sm:$0xff] %vm22_vm0, %v219_v0  ;;  %v217_v1 = vld [vmem:[%s283_s1] sm:$0xff]   ;;  %v218_v2 = vld [vmem:[%s283_s1 + $0x8] ss:$0 sps:$4 sm:$0xff]   ;;  %vm171_vm3 = vcmask 125952  }
   0x2   :  { %24 = vst.msk [vmem:[#allocation2 + $0x8] sm:$0xff] %vm22_vm0, %v219_v0  ;;  %26 = vst.msk [vmem:[#allocation2 + $0x18] sm:$0xff] %vm22_vm0, %v219_v0  ;;  %v195_v3 = vld [vmem:[%s284_s0] sm:$0xff]   ;;  %v202_v6 = vld [vmem:[%s284_s0 + $0x8] sm:$0xff]   ;;  %207 = vmatprep.subr.bf16.mxu0 %v217_v1  ;;  %v88_v13 = vsel %vm86_vm1, %v218_v2, 0 }
   0x3   :  { %v196_v4 = vunpack.c.l.bf16 %v195_v3  ;;  %v197_v5 = vunpack.c.h.bf16 %v195_v3  ;;  %v180_v7 = vld [vmem:[%s285_s2] ss:$0 sm:$0xff]  ;;  %v200_v8 = vunpack.c.l.bf16 %v202_v6  ;;  %v201_v9 = vunpack.c.h.bf16 %v202_v6  ;;  %208 = vmatpush3.bf16.msra.mxu0 %v217_v1 }
   0x4   :  { %v181_v10 = vld [vmem:[%s286_s3] ss:$0 sm:$0xff]  ;;  %215 = vmatprep.subr.msk.bf16.mxu0 %vm86_vm1, %v218_v2 }
   0x5   :  { %v42_v11 = vmul.f32 %v196_v4, %v180_v7  ;;  %v43_v12 = vmul.f32 %v197_v5, %v180_v7  ;;  %v44_v14 = vmul.f32 %v200_v8, %v180_v7  ;;  %v45_v15 = vmul.f32 %v201_v9, %v180_v7 }
   0x7   :  { %v53_v16 = vadd.f32 %v181_v10, %v42_v11  ;;  %v54_v17 = vadd.f32 %v181_v10, %v43_v12  ;;  %v55_v18 = vadd.f32 %v181_v10, %v44_v14  ;;  %v56_v19 = vadd.f32 %v181_v10, %v45_v15  ;;  %210 = vmatpush3.bf16.msra.mxu0 %v88_v13 }
   0x8   :  { %v63_v26 = vld [vmem:[#allocation2 + $0x10] sm:$0xff]  ;;  %v61_v27 = vld [vmem:[#allocation2] sm:$0xff] }
   0x9   :  { %v57_v20 = vmax.f32 %v53_v16, 0.0  ;;  %v58_v21 = vmax.f32 %v54_v17, 0.0  ;;  %v59_v22 = vmax.f32 %v55_v18, 0.0  ;;  %v60_v23 = vmax.f32 %v56_v19, 0.0  ;;  %v64_v29 = vld [vmem:[#allocation2 + $0x18] sm:$0xff]  ;;  %v62_v32 = vld [vmem:[#allocation2 + $0x8] sm:$0xff] }
   0xb   :  { %v65_v24 = vpack.c.bf16 %v58_v21, %v57_v20  ;;  %v66_v25 = vpack.c.bf16 %v60_v23, %v59_v22 }
   0xd   :  { %211 = vmatprep.mubr.msk.bf16.mxu0 %vm79_vm2, %v65_v24 }
   0xe   :  { %212 = vmatmul.mubr.msk.bf16.vlgmr.msra.gmra.mrb[0].mxu0 %vm79_vm2, %v66_v25 }
  0xe1   :  { %v213_v28 = vpop.f32.mrb[0].mxu0 }
  0xe2   :  { %v141_v30 = vadd.f32 %v213_v28, %v63_v26  ;;  %v124_v31 = vpop.f32.mrb[1].mxu0 }
  0xe3   :  { %v139_v33 = vadd.f32 %v124_v31, %v61_v27  ;;  %v214_v34 = vpop.f32.mrb[2].mxu0 }
  0xe4   :  { %146 = vst.msk [vmem:[#allocation2 + $0x10] sm:$0xff] %vm22_vm0, %v141_v30  ;;  %v142_v35 = vadd.f32 %v214_v34, %v64_v29  ;;  %v127_v36 = vpop.f32.mrb[3].mxu0 }
  0xe5   :  { %144 = vst.msk [vmem:[#allocation2] sm:$0xff] %vm22_vm0, %v139_v33  ;;  %v140_v37 = vadd.f32 %v127_v36, %v62_v32 }
  0xe6   :  { %147 = vst.msk [vmem:[#allocation2 + $0x18] sm:$0xff] %vm22_vm0, %v142_v35 }
  0xe7   :  { %145 = vst.msk [vmem:[#allocation2 + $0x8] sm:$0xff] %vm22_vm0, %v140_v37 }
  0xeb   :  { %v153_v38 = vld [vmem:[#allocation2 + $0x10] sm:$0xff] }
  0xec   :  { %v192_v39 = vpack.c.bf16 %v153_v38, %v153_v38  ;;  %v151_v40 = vld [vmem:[#allocation2] sm:$0xff] }
  0xed   :  { %v190_v41 = vpack.c.bf16 %v151_v40, %v151_v40  ;;  %v154_v42 = vld [vmem:[#allocation2 + $0x18] sm:$0xff] }
  0xee   :  { %174 = vst.msk [vmem:[%s287_s4 + $0x8] sm:$0xf] %vm171_vm3, %v192_v39  ;;  %v193_v43 = vpack.c.bf16 %v154_v42, %v154_v42  ;;  %v152_v44 = vld [vmem:[#allocation2 + $0x8] sm:$0xff] }
  0xef   :  { %172 = vst.msk [vmem:[%s287_s4] sm:$0xf] %vm171_vm3, %v190_v41  ;;  %v191_v45 = vpack.c.bf16 %v152_v44, %v152_v44 }
  0xf0   :  { %175 = vst.msk [vmem:[%s287_s4 + $0xc] sm:$0xf] %vm171_vm3, %v193_v43 }
  0xf1   :  { %173 = vst.msk [vmem:[%s287_s4 + $0x4] sm:$0xf] %vm171_vm3, %v191_v45 }

// kernel: densenet_forward.42
= control target key start
LH: loop header
LB: loop body
LE: loop exit
PB: predicated region body
PF: predicated region fallthrough
CT: control target
= control target key end

     0   :  { %vm14_vm0 = vcmask 122880   ;;  %v51_v0 = vmov 0.0   ;;  %vm20_vm1 = vcmask 130048   ;;  %s92_s0 = inlined_call_operand.vmem [shape: bf16[8,16], index: 0, kind: input, shape index: {}]   ;;  %s93_s1 = inlined_call_operand.vmem [shape: f32[1,16], index: 1, kind: output, shape index: {0}]   ;;  %s94_s2 = inlined_call_operand.vmem [shape: f32[1,16], index: 2, kind: output, shape index: {1}]  }
   0x1   :  { %15 = vst.msk [vmem:[%s93_s1] sm:$0x1] %vm14_vm0, %v51_v0  ;;  %v17_v1 = vld [vmem:[%s92_s0] sm:$0xf]  ;;  %16 = vst.msk [vmem:[%s94_s2] sm:$0x1] %vm14_vm0, %v51_v0 }
   0x2   :  { %v18_v2 = vunpack.c.l.bf16 %v17_v1 }
   0x4   :  { %v21_v3 = vsel %vm20_vm1, %v18_v2, 0.0  ;;  %v32_v4 = vmul.f32 %v18_v2, %v18_v2 }
   0x5   :  { %v22_v5 = vrot.slane %v21_v3, 4 }
   0x6   :  { %v33_v6 = vsel %vm20_vm1, %v32_v4, 0.0 }
   0x7   :  { %v23_v7 = vadd.f32 %v22_v5, %v21_v3  ;;  %v34_v8 = vrot.slane %v33_v6, 4 }
   0x8   :  { %v19_v15 = vld [vmem:[%s93_s1] sm:$0x1] }
   0x9   :  { %v24_v9 = vrot.slane %v23_v7, 2  ;;  %v35_v10 = vadd.f32 %v34_v8, %v33_v6  ;;  %v31_v18 = vld [vmem:[%s94_s2] sm:$0x1] }
   0xb   :  { %v25_v11 = vadd.f32 %v24_v9, %v23_v7  ;;  %v36_v12 = vrot.slane %v35_v10, 2 }
   0xd   :  { %v26_v13 = vrot.slane %v25_v11, 1  ;;  %v37_v14 = vadd.f32 %v36_v12, %v35_v10 }
   0xf   :  { %v27_v16 = vadd.f32 %v26_v13, %v25_v11  ;;  %v38_v17 = vrot.slane %v37_v14, 1 }
  0x11   :  { %v28_v19 = vadd.f32 %v27_v16, %v19_v15  ;;  %v39_v20 = vadd.f32 %v38_v17, %v37_v14 }
  0x13   :  { %30 = vst.msk [vmem:[%s93_s1] sm:$0x1] %vm14_vm0, %v28_v19  ;;  %v40_v21 = vadd.f32 %v39_v20, %v31_v18 }
  0x15   :  { %41 = vst.msk [vmem:[%s94_s2] sm:$0x1] %vm14_vm0, %v40_v21 }

// kernel: densenet_forward.41
= control target key start
LH: loop header
LB: loop body
LE: loop exit
PB: predicated region body
PF: predicated region fallthrough
CT: control target
= control target key end

     0   :  { %vm22_vm0 = vcmask 130048   ;;  %v218_v1 = vmov 0.0   ;;  %vm83_vm1 = vcmask 261120   ;;  %vm171_vm2 = vcmask 125952   ;;  %s282_s1 = inlined_call_operand.vmem [shape: bf16[32,16], index: 1, kind: input, shape index: {}]   ;;  %s283_s0 = inlined_call_operand.vmem [shape: bf16[32,32], index: 0, kind: input, shape index: {}]   ;;  %s284_s2 = inlined_call_operand.vmem [shape: f32[1,32], index: 2, kind: input, shape index: {}]   ;;  %s285_s3 = inlined_call_operand.vmem [shape: f32[1,32], index: 3, kind: input, shape index: {}]   ;;  %s286_s4 = inlined_call_operand.vmem [shape: bf16[32,16], index: 4, kind: output, shape index: {}]  }
   0x1   :  { %v216_v0 = vld [vmem:[%s282_s1] sm:$0xff]   ;;  %25 = vst.msk [vmem:[#allocation2 + $0x10] sm:$0xff] %vm22_vm0, %v218_v1  ;;  %23 = vst.msk [vmem:[#allocation2] sm:$0xff] %vm22_vm0, %v218_v1  ;;  %v217_v2 = vld [vmem:[%s282_s1 + $0x8] sm:$0xff]  }
   0x2   :  { %24 = vst.msk [vmem:[#allocation2 + $0x8] sm:$0xff] %vm22_vm0, %v218_v1  ;;  %26 = vst.msk [vmem:[#allocation2 + $0x18] sm:$0xff] %vm22_vm0, %v218_v1  ;;  %207 = vmatprep.subr.bf16.mxu0 %v216_v0  ;;  %v195_v3 = vld [vmem:[%s283_s0] sm:$0xff]   ;;  %v202_v4 = vld [vmem:[%s283_s0 + $0x8] sm:$0xff]  }
   0x3   :  { %v180_v5 = vld [vmem:[%s284_s2] ss:$0 sm:$0xff]  ;;  %208 = vmatpush3.bf16.msra.mxu0 %v216_v0  ;;  %v196_v6 = vunpack.c.l.bf16 %v195_v3  ;;  %v197_v7 = vunpack.c.h.bf16 %v195_v3  ;;  %v200_v8 = vunpack.c.l.bf16 %v202_v4  ;;  %v201_v9 = vunpack.c.h.bf16 %v202_v4 }
   0x4   :  { %209 = vmatprep.subr.bf16.mxu0 %v217_v2  ;;  %v181_v10 = vld [vmem:[%s285_s3] ss:$0 sm:$0xff] }
   0x5   :  { %v42_v11 = vmul.f32 %v196_v6, %v180_v5  ;;  %v43_v12 = vmul.f32 %v197_v7, %v180_v5  ;;  %v44_v13 = vmul.f32 %v200_v8, %v180_v5  ;;  %v45_v14 = vmul.f32 %v201_v9, %v180_v5 }
   0x7   :  { %210 = vmatpush3.bf16.msra.mxu0 %v217_v2  ;;  %v53_v15 = vadd.f32 %v181_v10, %v42_v11  ;;  %v54_v16 = vadd.f32 %v181_v10, %v43_v12  ;;  %v55_v17 = vadd.f32 %v181_v10, %v44_v13  ;;  %v56_v18 = vadd.f32 %v181_v10, %v45_v14 }
   0x8   :  { %v63_v25 = vld [vmem:[#allocation2 + $0x10] sm:$0xff]  ;;  %v61_v26 = vld [vmem:[#allocation2] sm:$0xff] }
   0x9   :  { %v57_v19 = vmax.f32 %v53_v15, 0.0  ;;  %v58_v20 = vmax.f32 %v54_v16, 0.0  ;;  %v59_v21 = vmax.f32 %v55_v17, 0.0  ;;  %v60_v22 = vmax.f32 %v56_v18, 0.0  ;;  %v64_v28 = vld [vmem:[#allocation2 + $0x18] sm:$0xff]  ;;  %v62_v31 = vld [vmem:[#allocation2 + $0x8] sm:$0xff] }
   0xb   :  { %v65_v23 = vpack.c.bf16 %v58_v20, %v57_v19  ;;  %v66_v24 = vpack.c.bf16 %v60_v22, %v59_v21 }
   0xd   :  { %211 = vmatprep.mubr.msk.bf16.mxu0 %vm83_vm1, %v65_v23 }
   0xe   :  { %212 = vmatmul.mubr.msk.bf16.vlgmr.msra.gmra.mrb[0].mxu0 %vm83_vm1, %v66_v24 }
  0xe1   :  { %v213_v27 = vpop.f32.mrb[0].mxu0 }
  0xe2   :  { %v141_v29 = vadd.f32 %v213_v27, %v63_v25  ;;  %v124_v30 = vpop.f32.mrb[1].mxu0 }
  0xe3   :  { %v139_v32 = vadd.f32 %v124_v30, %v61_v26  ;;  %v214_v33 = vpop.f32.mrb[2].mxu0 }
  0xe4   :  { %146 = vst.msk [vmem:[#allocation2 + $0x10] sm:$0xff] %vm22_vm0, %v141_v29  ;;  %v142_v34 = vadd.f32 %v214_v33, %v64_v28  ;;  %v127_v35 = vpop.f32.mrb[3].mxu0 }
  0xe5   :  { %144 = vst.msk [vmem:[#allocation2] sm:$0xff] %vm22_vm0, %v139_v32  ;;  %v140_v36 = vadd.f32 %v127_v35, %v62_v31 }
  0xe6   :  { %147 = vst.msk [vmem:[#allocation2 + $0x18] sm:$0xff] %vm22_vm0, %v142_v34 }
  0xe7   :  { %145 = vst.msk [vmem:[#allocation2 + $0x8] sm:$0xff] %vm22_vm0, %v140_v36 }
  0xeb   :  { %v153_v37 = vld [vmem:[#allocation2 + $0x10] sm:$0xff] }
  0xec   :  { %v192_v38 = vpack.c.bf16 %v153_v37, %v153_v37  ;;  %v151_v39 = vld [vmem:[#allocation2] sm:$0xff] }
  0xed   :  { %v190_v40 = vpack.c.bf16 %v151_v39, %v151_v39  ;;  %v154_v41 = vld [vmem:[#allocation2 + $0x18] sm:$0xff] }
  0xee   :  { %174 = vst.msk [vmem:[%s286_s4 + $0x8] sm:$0xf] %vm171_vm2, %v192_v38  ;;  %v193_v42 = vpack.c.bf16 %v154_v41, %v154_v41  ;;  %v152_v43 = vld [vmem:[#allocation2 + $0x8] sm:$0xff] }
  0xef   :  { %172 = vst.msk [vmem:[%s286_s4] sm:$0xf] %vm171_vm2, %v190_v40  ;;  %v191_v44 = vpack.c.bf16 %v152_v43, %v152_v43 }
  0xf0   :  { %175 = vst.msk [vmem:[%s286_s4 + $0xc] sm:$0xf] %vm171_vm2, %v193_v42 }
  0xf1   :  { %173 = vst.msk [vmem:[%s286_s4 + $0x4] sm:$0xf] %vm171_vm2, %v191_v44 }

// kernel: densenet_forward.43
= control target key start
LH: loop header
LB: loop body
LE: loop exit
PB: predicated region body
PF: predicated region fallthrough
CT: control target
= control target key end

     0   :  { %vm22_vm0 = vcmask 130048   ;;  %v125_v0 = vmov 0.0   ;;  %vm126_vm1 = vmmov 0   ;;  %vm104_vm2 = vcmask 125952   ;;  %s170_s1 = inlined_call_operand.vmem [shape: bf16[16,16], index: 1, kind: input, shape index: {}]   ;;  %s171_s0 = inlined_call_operand.vmem [shape: bf16[8,16], index: 0, kind: input, shape index: {}]   ;;  %s172_s2 = inlined_call_operand.vmem [shape: f32[1,16], index: 2, kind: input, shape index: {}]   ;;  %s173_s3 = inlined_call_operand.vmem [shape: f32[1,16], index: 3, kind: input, shape index: {}]   ;;  %s174_s4 = inlined_call_operand.vmem [shape: bf16[8,16], index: 4, kind: output, shape index: {}]  }
   0x1   :  { %116 = vmatprep.subr.bf16.mxu0 %v125_v0  ;;  %v124_v1 = vld [vmem:[%s170_s1] sm:$0xff]   ;;  %118 = vmatprep.mubr.msk.bf16.mxu0 %vm126_vm1, %v125_v0  ;;  %23 = vst.msk [vmem:[#allocation2] sm:$0xff] %vm22_vm0, %v125_v0 }
   0x2   :  { %v24_v2 = vld [vmem:[%s171_s0] sm:$0xf]  ;;  %117 = vmatpush3.bf16.msra.mxu0 %v124_v1 }
   0x3   :  { %v110_v3 = vld [vmem:[%s172_s2] ss:$0 sm:$0xff]  ;;  %v25_v4 = vunpack.c.l.bf16 %v24_v2 }
   0x4   :  { %v111_v5 = vld [vmem:[%s173_s3] ss:$0 sm:$0xff] }
   0x5   :  { %v33_v6 = vmul.f32 %v110_v3, %v25_v4 }
   0x7   :  { %v41_v7 = vadd.f32 %v111_v5, %v33_v6 }
   0x8   :  { %v43_v10 = vld [vmem:[#allocation2] sm:$0xff] }
   0x9   :  { %v42_v8 = vmax.f32 %v41_v7, 0.0 }
   0xb   :  { %v44_v9 = vpack.c.bf16 %v42_v8, %v42_v8 }
   0xd   :  { %119 = vmatmul.mubr.msk.bf16.vlgmr.msra.gmra.mrb[0].mxu0 %vm22_vm0, %v44_v9 }
  0xe0   :  { %v91_v11 = vpop.f32.mrb[0].mxu0 }
  0xe1   :  { %v97_v12 = vadd.f32 %v91_v11, %v43_v10  ;;  %v120_v13 = vpop.f32.mrb[1].mxu0 }
  0xe2   :  { %v94_v14 = vpop.f32.mrb[2].mxu0 }
  0xe3   :  { %98 = vst.msk [vmem:[#allocation2] sm:$0xff] %vm22_vm0, %v97_v12  ;;  %v121_v15 = vpop.f32.mrb[3].mxu0 }
  0xea   :  { %v102_v16 = vld [vmem:[#allocation2] sm:$0xff] }
  0xeb   :  { %v103_v17 = vpack.c.bf16 %v102_v16, %v102_v16 }
  0xed   :  { %105 = vst.msk [vmem:[%s174_s4] sm:$0xf] %vm104_vm2, %v103_v17 }

// kernel: densenet_forward.45
= control target key start
LH: loop header
LB: loop body
LE: loop exit
PB: predicated region body
PF: predicated region fallthrough
CT: control target
= control target key end

     0   :  { %vm34_vm0 = vcmask 125952   ;;  %s74_s0 = inlined_call_operand.vmem [shape: bf16[8,16], index: 0, kind: input, shape index: {}]   ;;  %s75_s1 = inlined_call_operand.vmem [shape: f32[1,16], index: 1, kind: input, shape index: {}]   ;;  %s76_s2 = inlined_call_operand.vmem [shape: f32[1,16], index: 2, kind: input, shape index: {}]   ;;  %s77_s3 = inlined_call_operand.vmem [shape: bf16[8,16], index: 3, kind: output, shape index: {}]  }
   0x1   :  { %v14_v0 = vld [vmem:[%s74_s0] sm:$0xf] }
   0x2   :  { %v40_v1 = vld [vmem:[%s75_s1] ss:$0 sm:$0xff]  ;;  %v15_v2 = vunpack.c.l.bf16 %v14_v0 }
   0x3   :  { %v41_v3 = vld [vmem:[%s76_s2] ss:$0 sm:$0xff] }
   0x4   :  { %v23_v4 = vmul.f32 %v40_v1, %v15_v2 }
   0x6   :  { %v31_v5 = vadd.f32 %v41_v3, %v23_v4 }
   0x8   :  { %v32_v6 = vmax.f32 %v31_v5, 0.0 }
   0xa   :  { %v33_v7 = vpack.c.bf16 %v32_v6, %v32_v6 }
   0xc   :  { %35 = vst.msk [vmem:[%s77_s3] sm:$0xf] %vm34_vm0, %v33_v7 }

// kernel: densenet_forward.47
= control target key start
LH: loop header
LB: loop body
LE: loop exit
PB: predicated region body
PF: predicated region fallthrough
CT: control target
= control target key end

     0   :  { %vm14_vm0 = vcmask 188416   ;;  %v51_v0 = vmov 0.0   ;;  %vm20_vm1 = vcmask 195584   ;;  %s92_s0 = inlined_call_operand.vmem [shape: bf16[8,24], index: 0, kind: input, shape index: {}]   ;;  %s93_s1 = inlined_call_operand.vmem [shape: f32[1,24], index: 1, kind: output, shape index: {0}]   ;;  %s94_s2 = inlined_call_operand.vmem [shape: f32[1,24], index: 2, kind: output, shape index: {1}]  }
   0x1   :  { %15 = vst.msk [vmem:[%s93_s1] sm:$0x1] %vm14_vm0, %v51_v0  ;;  %v17_v1 = vld [vmem:[%s92_s0] sm:$0xf]  ;;  %16 = vst.msk [vmem:[%s94_s2] sm:$0x1] %vm14_vm0, %v51_v0 }
   0x2   :  { %v18_v2 = vunpack.c.l.bf16 %v17_v1 }
   0x4   :  { %v21_v3 = vsel %vm20_vm1, %v18_v2, 0.0  ;;  %v32_v4 = vmul.f32 %v18_v2, %v18_v2 }
   0x5   :  { %v22_v5 = vrot.slane %v21_v3, 4 }
   0x6   :  { %v33_v6 = vsel %vm20_vm1, %v32_v4, 0.0 }
   0x7   :  { %v23_v7 = vadd.f32 %v22_v5, %v21_v3  ;;  %v34_v8 = vrot.slane %v33_v6, 4 }
   0x8   :  { %v19_v15 = vld [vmem:[%s93_s1] sm:$0x1] }
   0x9   :  { %v24_v9 = vrot.slane %v23_v7, 2  ;;  %v35_v10 = vadd.f32 %v34_v8, %v33_v6  ;;  %v31_v18 = vld [vmem:[%s94_s2] sm:$0x1] }
   0xb   :  { %v25_v11 = vadd.f32 %v24_v9, %v23_v7  ;;  %v36_v12 = vrot.slane %v35_v10, 2 }
   0xd   :  { %v26_v13 = vrot.slane %v25_v11, 1  ;;  %v37_v14 = vadd.f32 %v36_v12, %v35_v10 }
   0xf   :  { %v27_v16 = vadd.f32 %v26_v13, %v25_v11  ;;  %v38_v17 = vrot.slane %v37_v14, 1 }
  0x11   :  { %v28_v19 = vadd.f32 %v27_v16, %v19_v15  ;;  %v39_v20 = vadd.f32 %v38_v17, %v37_v14 }
  0x13   :  { %30 = vst.msk [vmem:[%s93_s1] sm:$0x1] %vm14_vm0, %v28_v19  ;;  %v40_v21 = vadd.f32 %v39_v20, %v31_v18 }
  0x15   :  { %41 = vst.msk [vmem:[%s94_s2] sm:$0x1] %vm14_vm0, %v40_v21 }

// kernel: densenet_forward.46
= control target key start
LH: loop header
LB: loop body
LE: loop exit
PB: predicated region body
PF: predicated region fallthrough
CT: control target
= control target key end

     0   :  { %vm16_vm0 = vcmask 64512   ;;  %v181_v0 = vmov 0   ;;  %v182_v2 = vmov 0.0   ;;  %vm98_vm1 = vcmask 130048   ;;  %s233_s1 = inlined_call_operand.vmem [shape: bf16[144,8], index: 1, kind: input, shape index: {}]   ;;  %s234_s0 = inlined_call_operand.vmem [shape: bf16[8,144], index: 0, kind: input, shape index: {}]   ;;  %s235_s2 = inlined_call_operand.vmem [shape: bf16[8,8], index: 2, kind: output, shape index: {}]  }
   0x1   :  { %102 = vmatprep.subr.bf16.mxu0 %v181_v0  ;;  %v170_v1 = vld [vmem:[%s233_s1] sm:$0xff]   ;;  %17 = vst.msk [vmem:[#allocation2] sm:$0xff] %vm16_vm0, %v182_v2  ;;  %v171_v3 = vld [vmem:[%s233_s1 + $0x8] sm:$0xff]   ;;  %v172_v4 = vld [vmem:[%s233_s1 + $0x10] sm:$0xff]   ;;  %vm150_vm2 = vcmask 60416  }
   0x2   :  { %103 = vmatpush1.bf16.msra.mxu0 %v170_v1  ;;  %v19_v5 = vld [vmem:[%s234_s0] sm:$0xff]  ;;  %v173_v6 = vld [vmem:[%s233_s1 + $0x18] sm:$0xff]   ;;  %v175_v9 = vld [vmem:[%s233_s1 + $0x28] sm:$0xff]  }
   0x3   :  { %104 = vmatprep.subr.bf16.mxu0 %v181_v0  ;;  %v157_v7 = vcombine.high %v19_v5, %v19_v5  ;;  %v174_v8 = vld [vmem:[%s233_s1 + $0x20] sm:$0xff]   ;;  %v176_v10 = vld [vmem:[%s233_s1 + $0x30] sm:$0xff]   ;;  %v177_v11 = vld [vmem:[%s233_s1 + $0x38] sm:$0xff]   ;;  %v156_v13 = vcombine.low %v19_v5, %v19_v5 }
   0x4   :  { %v178_v12 = vld [vmem:[%s233_s1 + $0x40] sm:$0xff]  }
   0x5   :  { %167 = vmatprep.mubr.msk.bf16.mxu0 %vm98_vm1, %v157_v7 }
   0x6   :  { %105 = vmatpush1.bf16.msra.mxu0 %v171_v3 }
   0x7   :  { %106 = vmatprep.subr.bf16.mxu0 %v181_v0 }
   0x8   :  { %v18_v14 = vld [vmem:[#allocation2] sm:$0xff] }
   0xa   :  { %107 = vmatpush1.bf16.msra.mxu0 %v172_v4 }
   0xb   :  { %108 = vmatprep.subr.bf16.mxu0 %v181_v0 }
   0xe   :  { %109 = vmatpush1.bf16.msra.mxu0 %v173_v6 }
   0xf   :  { %110 = vmatprep.subr.bf16.mxu0 %v181_v0 }
  0x12   :  { %111 = vmatpush1.bf16.msra.mxu0 %v174_v8 }
  0x13   :  { %112 = vmatprep.subr.bf16.mxu0 %v181_v0 }
  0x16   :  { %113 = vmatpush1.bf16.msra.mxu0 %v175_v9 }
  0x17   :  { %114 = vmatprep.subr.bf16.mxu0 %v181_v0 }
  0x1a   :  { %115 = vmatpush1.bf16.msra.mxu0 %v176_v10 }
  0x1b   :  { %116 = vmatprep.subr.bf16.mxu0 %v181_v0 }
  0x1e   :  { %117 = vmatpush1.bf16.msra.mxu0 %v177_v11 }
  0x1f   :  { %118 = vmatprep.subr.bf16.mxu0 %v181_v0 }
  0x22   :  { %119 = vmatpush1.bf16.msra.mxu0 %v178_v12 }
  0x25   :  { %135 = vmatmul.mubr.bf16.vlgmr.msra.gmra.mrb[0].mxu0 %v156_v13 }
  0xf8   :  { %v136_v15 = vpop.f32.mrb[0].mxu0 }
  0xf9   :  { %v142_v16 = vadd.f32 %v136_v15, %v18_v14  ;;  %v138_v17 = vpop.f32.mrb[1].mxu0 }
  0xfa   :  { %v139_v18 = vpop.f32.mrb[2].mxu0 }
  0xfb   :  { %144 = vst.msk [vmem:[#allocation2] sm:$0xff] %vm16_vm0, %v142_v16  ;;  %v140_v19 = vpop.f32.mrb[3].mxu0 }
 0x102   :  { %v148_v20 = vld [vmem:[#allocation2] sm:$0xff] }
 0x103   :  { %v149_v21 = vpack.c.bf16 %v148_v20, %v148_v20 }
 0x105   :  { %151 = vst.msk [vmem:[%s235_s2] sm:$0xf] %vm150_vm2, %v149_v21 }

// kernel: densenet_forward.52
= control target key start
LH: loop header
LB: loop body
LE: loop exit
PB: predicated region body
PF: predicated region fallthrough
CT: control target
= control target key end

     0   :  { %vm14_vm0 = vcmask 253952   ;;  %v51_v0 = vmov 0.0   ;;  %vm20_vm1 = vcmask 261120   ;;  %s92_s0 = inlined_call_operand.vmem [shape: bf16[8,32], index: 0, kind: input, shape index: {}]   ;;  %s93_s1 = inlined_call_operand.vmem [shape: f32[1,32], index: 1, kind: output, shape index: {0}]   ;;  %s94_s2 = inlined_call_operand.vmem [shape: f32[1,32], index: 2, kind: output, shape index: {1}]  }
   0x1   :  { %15 = vst.msk [vmem:[%s93_s1] sm:$0x1] %vm14_vm0, %v51_v0  ;;  %v17_v1 = vld [vmem:[%s92_s0] sm:$0xf]  ;;  %16 = vst.msk [vmem:[%s94_s2] sm:$0x1] %vm14_vm0, %v51_v0 }
   0x2   :  { %v18_v2 = vunpack.c.l.bf16 %v17_v1 }
   0x4   :  { %v21_v3 = vsel %vm20_vm1, %v18_v2, 0.0  ;;  %v32_v4 = vmul.f32 %v18_v2, %v18_v2 }
   0x5   :  { %v22_v5 = vrot.slane %v21_v3, 4 }
   0x6   :  { %v33_v6 = vsel %vm20_vm1, %v32_v4, 0.0 }
   0x7   :  { %v23_v7 = vadd.f32 %v22_v5, %v21_v3  ;;  %v34_v8 = vrot.slane %v33_v6, 4 }
   0x8   :  { %v19_v15 = vld [vmem:[%s93_s1] sm:$0x1] }
   0x9   :  { %v24_v9 = vrot.slane %v23_v7, 2  ;;  %v35_v10 = vadd.f32 %v34_v8, %v33_v6  ;;  %v31_v18 = vld [vmem:[%s94_s2] sm:$0x1] }
   0xb   :  { %v25_v11 = vadd.f32 %v24_v9, %v23_v7  ;;  %v36_v12 = vrot.slane %v35_v10, 2 }
   0xd   :  { %v26_v13 = vrot.slane %v25_v11, 1  ;;  %v37_v14 = vadd.f32 %v36_v12, %v35_v10 }
   0xf   :  { %v27_v16 = vadd.f32 %v26_v13, %v25_v11  ;;  %v38_v17 = vrot.slane %v37_v14, 1 }
  0x11   :  { %v28_v19 = vadd.f32 %v27_v16, %v19_v15  ;;  %v39_v20 = vadd.f32 %v38_v17, %v37_v14 }
  0x13   :  { %30 = vst.msk [vmem:[%s93_s1] sm:$0x1] %vm14_vm0, %v28_v19  ;;  %v40_v21 = vadd.f32 %v39_v20, %v31_v18 }
  0x15   :  { %41 = vst.msk [vmem:[%s94_s2] sm:$0x1] %vm14_vm0, %v40_v21 }

// kernel: densenet_forward.48
= control target key start
LH: loop header
LB: loop body
LE: loop exit
PB: predicated region body
PF: predicated region fallthrough
CT: control target
= control target key end

     0   :  { %vm22_vm0 = vcmask 130048   ;;  %v139_v0 = vmov 0.0   ;;  %vm61_vm1 = vcmask 1043456   ;;  %vm140_vm2 = vmmov 0   ;;  %s186_s1 = inlined_call_operand.vmem [shape: bf16[24,16], index: 1, kind: input, shape index: {}]   ;;  %s187_s0 = inlined_call_operand.vmem [shape: bf16[8,24], index: 0, kind: input, shape index: {}]   ;;  %s188_s2 = inlined_call_operand.vmem [shape: f32[1,24], index: 2, kind: input, shape index: {}]   ;;  %s189_s3 = inlined_call_operand.vmem [shape: f32[1,24], index: 3, kind: input, shape index: {}]   ;;  %s190_s4 = inlined_call_operand.vmem [shape: bf16[8,16], index: 4, kind: output, shape index: {}]  }
   0x1   :  { %23 = vst.msk [vmem:[#allocation2] sm:$0xff] %vm22_vm0, %v139_v0  ;;  %127 = vmatprep.subr.bf16.mxu0 %v139_v0  ;;  %v137_v1 = vld [vmem:[%s186_s1] sm:$0xff]   ;;  %131 = vmatprep.mubr.msk.bf16.mxu0 %vm140_vm2, %v139_v0  ;;  %v138_v2 = vld [vmem:[%s186_s1 + $0x8] ss:$0 sps:$4 sm:$0xff]   ;;  %vm57_vm3 = vcmask 195584   ;;  %vm113_vm4 = vcmask 125952  }
   0x2   :  { %v24_v3 = vld [vmem:[%s187_s0] sm:$0xf]  ;;  %128 = vmatpush3.bf16.msra.mxu0 %v137_v1  ;;  %v63_v6 = vsel %vm61_vm1, %v138_v2, 0 }
   0x3   :  { %v25_v4 = vunpack.c.l.bf16 %v24_v3  ;;  %v119_v5 = vld [vmem:[%s188_s2] ss:$0 sm:$0xff]  ;;  %129 = vmatprep.subr.bf16.mxu0 %v139_v0 }
   0x4   :  { %v120_v7 = vld [vmem:[%s189_s3] ss:$0 sm:$0xff] }
   0x5   :  { %v33_v8 = vmul.f32 %v119_v5, %v25_v4 }
   0x6   :  { %130 = vmatpush3.bf16.msra.mxu0 %v63_v6 }
   0x7   :  { %v41_v9 = vadd.f32 %v120_v7, %v33_v8 }
   0x8   :  { %v43_v12 = vld [vmem:[#allocation2] sm:$0xff] }
   0x9   :  { %v42_v10 = vmax.f32 %v41_v9, 0.0 }
   0xb   :  { %v44_v11 = vpack.c.bf16 %v42_v10, %v42_v10 }
   0xd   :  { %132 = vmatmul.mubr.msk.bf16.vlgmr.msra.gmra.mrb[0].mxu0 %vm57_vm3, %v44_v11 }
  0xe0   :  { %v99_v13 = vpop.f32.mrb[0].mxu0 }
  0xe1   :  { %v105_v14 = vadd.f32 %v99_v13, %v43_v12  ;;  %v133_v15 = vpop.f32.mrb[1].mxu0 }
  0xe2   :  { %v102_v16 = vpop.f32.mrb[2].mxu0 }
  0xe3   :  { %107 = vst.msk [vmem:[#allocation2] sm:$0xff] %vm22_vm0, %v105_v14  ;;  %v134_v17 = vpop.f32.mrb[3].mxu0 }
  0xea   :  { %v111_v18 = vld [vmem:[#allocation2] sm:$0xff] }
  0xeb   :  { %v112_v19 = vpack.c.bf16 %v111_v18, %v111_v18 }
  0xed   :  { %114 = vst.msk [vmem:[%s190_s4] sm:$0xf] %vm113_vm4, %v112_v19 }

// kernel: densenet_forward.53
= control target key start
LH: loop header
LB: loop body
LE: loop exit
PB: predicated region body
PF: predicated region fallthrough
CT: control target
= control target key end

     0   :  { %v230_v3 = vmov 0.0|0.0   ;;  %vm231_vm0 = vmmov 0   ;;  %v232_v6 = vmov 0.0   ;;  %s303_s0 = inlined_call_operand.vmem [shape: bf16[2,4,32], index: 0, kind: input, shape index: {}]   ;;  %s304_s1 = inlined_call_operand.vmem [shape: f32[1,1,32], index: 1, kind: input, shape index: {}]   ;;  %s305_s2 = inlined_call_operand.vmem [shape: f32[1,1,32], index: 2, kind: input, shape index: {}]   ;;  %s306_s3 = inlined_call_operand.vmem [shape: f32[32,16], index: 3, kind: input, shape index: {}]   ;;  %s307_s4 = inlined_call_operand.vmem [shape: f32[1,16], index: 4, kind: input, shape index: {}]   ;;  %s308_s5 = inlined_call_operand.hbm [shape: f32[2,16], index: 5, kind: output, shape index: {}]  }
   0x1   :  { %v63_v0 = vld [vmem:[%s306_s3] sm:$0xff]  ;;  %v64_v1 = vld [vmem:[%s306_s3 + $0x8] sm:$0xff]  ;;  %v65_v2 = vld [vmem:[%s306_s3 + $0x10] sm:$0xff]  ;;  %194 = vmatprep.subr.bf16.mxu0 %v230_v3  ;;  %191 = vmatprep.mubr.msk.f32.mxu0 %vm231_vm0, %v232_v6 }
   0x2   :  { %v195_v4 = vpack.c.bf16 %v64_v1, %v63_v0  ;;  %v66_v5 = vld [vmem:[%s306_s3 + $0x18] sm:$0xff]  ;;  %v21_v7 = vld [vmem:[%s303_s0] sm:$0x3]  ;;  %v22_v8 = vld [vmem:[%s303_s0 + $0x2] sm:$0x3] }
   0x3   :  { %v23_v9 = vunpack.c.l.bf16 %v21_v7  ;;  %v24_v10 = vunpack.c.l.bf16 %v22_v8  ;;  %v174_v11 = vld [vmem:[%s304_s1] ss:$0 sm:$0xff]  ;;  %v198_v12 = vpack.c.bf16 %v66_v5, %v65_v2 }
   0x4   :  { %196 = vmatpush3.bf16.msra.mxu0 %v195_v4  ;;  %v175_v13 = vld [vmem:[%s305_s2] ss:$0 sm:$0xff] }
   0x5   :  { %10 = vsyncpa [#allocation3], 0  ;;  %197 = vmatprep.subr.bf16.mxu0 %v230_v3  ;;  %v32_v14 = vmul.f32 %v174_v11, %v23_v9  ;;  %v33_v15 = vmul.f32 %v174_v11, %v24_v10  ;;  %vm45_vm1 = vcmask 257024   ;;  %vm76_vm2 = vcmask 1041409   ;;  %v176_v37 = vld [vmem:[%s307_s4] ss:$0 sm:$0xff] }
   0x6   :  { %vm78_vm3 = vcmask 261120   ;;  %vm152_vm4 = vcmask 123904   ;;  %s233_s2 = smov [#allocation2]  }
   0x7   :  { %v41_v16 = vadd.f32 %v175_v13, %v32_v14  ;;  %v42_v17 = vadd.f32 %v175_v13, %v33_v15  ;;  %s166_s8 = sshll.u32 %s233_s2, 4  ;;  %s167_s8 = int_to_ptr.vmem [resolvable:$true] %s166_s8 }
   0x8   :  { %199 = vmatpush3.bf16.msra.mxu0 %v198_v12  ;;  %s206_s9 = scalar_lea.vmem %s167_s8, 32  ;;  %p211_p1 = scmp.lt.s32.totalorder %s167_s8, %s167_s8 }
   0x9   :  { %v43_v18 = vmax.f32 %v41_v16, 0.0  ;;  %v44_v19 = vmax.f32 %v42_v17, 0.0  ;;  %p207_p0 = scmp.ne.s32.totalorder %s167_s8, %s206_s9  ;;  %p212_p2 = scmp.lt.s32.totalorder %s206_s9, %s206_s9 }
   0xb   :  { %v46_v20 = vsel %vm45_vm1, %v43_v18, 0.0  ;;  %v53_v21 = vsel %vm45_vm1, %v44_v19, 0.0  ;;  %p213_p3 = por %p212_p2, %p211_p1 }
   0xc   :  { %v47_v22 = vrot.slane %v46_v20, 4  ;;  %v54_v23 = vrot.slane %v53_v21, 4 }
   0xd   :  { %p214_p4 = pnand %p213_p3, %p207_p0 }
   0xe   :  { %v48_v24 = vadd.f32 %v47_v22, %v46_v20  ;;  %v55_v25 = vadd.f32 %v54_v23, %v53_v21 }
  0x10   :  { %v49_v26 = vrot.slane %v48_v24, 2  ;;  %v56_v27 = vrot.slane %v55_v25, 2 }
  0x12   :  { %v50_v28 = vadd.f32 %v49_v26, %v48_v24  ;;  %v57_v29 = vadd.f32 %v56_v27, %v55_v25 }
  0x14   :  { %v51_v30 = vrot.slane %v50_v28, 1  ;;  %v58_v31 = vrot.slane %v57_v29, 1 }
  0x16   :  { %v52_v32 = vadd.f32 %v51_v30, %v50_v28  ;;  %v59_v33 = vadd.f32 %v58_v31, %v57_v29 }
  0x18   :  { %v61_v34 = vmul.f32 0.25, %v52_v32  ;;  %v62_v35 = vmul.f32 0.25, %v59_v33 }
  0x1a   :  { %v77_v36 = vsel %vm76_vm2, %v62_v35, %v61_v34 }
  0x1b   :  { %192 = vmatmul.mubr.msk.f32.vlgmr.msra.gmra.mrb[0].mxu0 %vm78_vm3, %v77_v36 }
  0xee   :  { %v147_v38 = vpop.f32.mrb[0].mxu0 }
  0xef   :  { %v148_v39 = vadd.f32 %v176_v37, %v147_v38  ;;  %v193_v40 = vpop.f32.mrb[1].mxu0 }
  0xf1   :  { %v151_v41 = vmul.f32 %v148_v39, %v148_v39 }
  0xf3   :  { %v153_v42 = vsel %vm152_vm4, %v151_v41, 0.0 }
  0xf4   :  { %154 = vadd.xlane.f32.xlu0 %v153_v42 }
 0x181   :  { %v155_v43 = vpop.xlane.xlu0 %154 }
 0x182   :  { %v156_v44 = vmax.f32 %v155_v43, 1e-24 }
 0x184   :  { %204 = vrsqrt.f32 %v156_v44 }
 0x18e   :  { %v205_v45 = vpop.eup %204 }
 0x18f   :  { %v158_v46 = vmul.f32 %v205_v45, %v148_v39 }
 0x191   :  { %159 = vst.msk [vmem:[#allocation2] sm:$0x3] %vm152_vm4, %v158_v46 }
 0x192   :  { %217 = shalt.err (!%p214_p4)
}
 0x193   :  { %s218_s11 = scalar_lea.hbm %s308_s5, 32 }
 0x194   :  { %p219_p5 = scmp.ne.s32.totalorder %s308_s5, %s218_s11  ;;  %p222_p6 = scmp.lt.u32.totalorder %s218_s11, %s308_s5 }
 0x196   :  { %p224_p7 = pnand %p222_p6, %p219_p5 }
 0x198   :  { %227 = shalt.err (!%p224_p7)
}
 0x199   :  { %169 = dma.vmem_to_hbm [thread:$0]  %s167_s8, 32, %s308_s5, [#allocation3]  }
 0x19a   :  { %228 = dma.done.wait [#allocation3], 32  }
 0x19b   :  { %229 = vsyncadd [#allocation3], 4294967264 }
 0x19c   :  { %173 = vsyncpa [#allocation3], 1 }

</bundles_post_ra>
